<compile_context>
chip_gen: v7x
topology: tpu7x:2x2x1
jax: 0.10.0
libtpu: 0.0.40
codegen_flags: <defaults>
</compile_context>

<pallas_src>
import math
from functools import partial

import jax
import jax.numpy as jnp
from jax.experimental import pallas as pl
from jax.experimental.pallas import tpu as pltpu

LN_EPS = 1e-6  # matches partial(nn.LayerNorm, eps=1e-06)

_vmem_limit_cache = None


def _vmem_limit_bytes():
    """~75% of physical VMEM: ~96 MiB on v5e/v6e (128 MiB), ~48 MiB on v7x (64 MiB)."""
    global _vmem_limit_cache
    if _vmem_limit_cache is None:
        limit = 32 * 1024 * 1024
        try:
            info = pltpu.get_tpu_info()
            phys = getattr(info, "vmem_capacity_bytes", None)
            if phys:
                limit = int(min(100 * 1024 * 1024, 0.75 * phys))
        except Exception:
            pass
        _vmem_limit_cache = limit
    return _vmem_limit_cache


# ---------------------------------------------------------------------------
# Kernel 1: one or more fused chains of linear stages (optional bias / GELU /
# residual-add / LayerNorm) sharing a single row-tiled input.  Every
# intermediate stays in VMEM/vregs; weights are grid-resident.
#   refs = (x_ref, *stage_param_refs, [res_ref], *out_refs)
# ---------------------------------------------------------------------------
def _chains_kernel(*refs, plans, has_res, eps):
    n_out = len(plans)
    out_refs = refs[len(refs) - n_out:]
    x_ref = refs[0]
    prm = refs[1:len(refs) - n_out]
    if has_res:
        res_ref = prm[-1]
        prm = prm[:-1]

    x_in = x_ref[...]                      # bf16 row tile shared by all chains
    i = 0
    for c, plan in enumerate(plans):
        y = x_in
        for st in plan:
            w_ref = prm[i]; i += 1
            # MXU in bf16, f32 accumulation.  (No-op cast on the first stage.)
            y = jnp.dot(y.astype(jnp.bfloat16), w_ref[...],
                        preferred_element_type=jnp.float32)
            if st["bias"]:
                y = y + prm[i][...]; i += 1
            if st["gelu"]:
                # exact (erf) GELU, matching torch.nn.GELU() default, in f32
                y = 0.5 * y * (1.0 + jax.lax.erf(y * (1.0 / math.sqrt(2.0))))
            if st["res"]:
                y = y + res_ref[...].astype(jnp.float32)
            if st["ln"]:
                g = prm[i][...]; i += 1
                b = prm[i][...]; i += 1
                mean = jnp.mean(y, axis=-1, keepdims=True)
                var = jnp.mean(jnp.square(y - mean), axis=-1, keepdims=True)
                y = (y - mean) * jax.lax.rsqrt(var + eps)
                y = y * g + b
        out_refs[c][...] = y.astype(out_refs[c].dtype)


def fused_chains(x2d, chains, res=None, out_dtypes=None, eps=LN_EPS, row_tile=512):
    """Run one or more fused linear chains that share one (rows, K) input.

    Each chain is a sequence of stage dicts:
      'w'            : (K_i, N_i) bf16 weight, stored (in, out)
      'b'            : optional (1, N_i) f32 bias
      'gelu'         : optional bool, exact GELU after the bias
      'res'          : optional bool, add `res` after bias/GELU (before LN)
      'gamma'/'beta' : optional (1, N_i) f32 LayerNorm affine -> enables LN
    """
    M, K = x2d.shape
    n_chains = len(chains)
    if out_dtypes is None:
        out_dtypes = [jnp.bfloat16] * n_chains
    tm = M if M <= row_tile else row_tile
    grid = (pl.cdiv(M, tm),)

    inputs = [x2d]
    in_specs = [pl.BlockSpec((tm, K), lambda i: (i, 0))]
    plans = []
    for chain in chains:
        plan = []
        for st in chain:
            w = st["w"]
            n = w.shape[1]
            inputs.append(w)                                   # resident bf16 weight
            in_specs.append(pl.BlockSpec(w.shape, lambda i: (0, 0)))
            entry = {
                "bias": st.get("b") is not None,
                "gelu": bool(st.get("gelu", False)),
                "res": bool(st.get("res", False)),
                "ln": st.get("gamma") is not None,
            }
            if entry["bias"]:
                inputs.append(st["b"])
                in_specs.append(pl.BlockSpec((1, n), lambda i: (0, 0)))
            if entry["ln"]:
                inputs.append(st["gamma"])
                in_specs.append(pl.BlockSpec((1, n), lambda i: (0, 0)))
                inputs.append(st["beta"])
                in_specs.append(pl.BlockSpec((1, n), lambda i: (0, 0)))
            plan.append(entry)
        plans.append(tuple(plan))

    has_res = res is not None
    if has_res:
        inputs.append(res)
        in_specs.append(pl.BlockSpec((tm, res.shape[1]), lambda i: (i, 0)))

    out_widths = [chain[-1]["w"].shape[1] for chain in chains]
    out_shapes = [jax.ShapeDtypeStruct((M, n), dt)
                  for n, dt in zip(out_widths, out_dtypes)]
    out_specs = [pl.BlockSpec((tm, n), lambda i: (i, 0)) for n in out_widths]

    kernel = partial(_chains_kernel, plans=tuple(plans), has_res=has_res, eps=eps)
    return pl.pallas_call(
        kernel,
        out_shape=out_shapes[0] if n_chains == 1 else tuple(out_shapes),
        grid=grid,
        in_specs=in_specs,
        out_specs=out_specs[0] if n_chains == 1 else out_specs,
        compiler_params=pltpu.CompilerParams(
            dimension_semantics=("parallel",),
            vmem_limit_bytes=_vmem_limit_bytes()),
    )(*inputs)


# ---------------------------------------------------------------------------
# Kernel 2: multi-head scaled-dot-product attention, one (batch, head) grid
# step.  Heads were zero-padded to 128 lanes and the 1/sqrt(Dh) scale folded
# into the q in_proj, so blocks are lane-dense and the kernel is just two
# MXU matmuls plus an online-softmax-free exact softmax with deferred
# normalization (scale applied to the (Lq, Dh) output, not the (Lq, Lk) probs).
# ---------------------------------------------------------------------------
def _attn_kernel(q_ref, k_ref, v_ref, o_ref):
    s = jax.lax.dot_general(q_ref[...], k_ref[...], (((1,), (1,)), ((), ())),
                            preferred_element_type=jnp.float32)      # (Lq, Lk)
    m = jnp.max(s, axis=-1, keepdims=True)
    p = jnp.exp(s - m)                                               # f32
    denom = jnp.sum(p, axis=-1, keepdims=True)
    o = jnp.dot(p.astype(jnp.bfloat16), v_ref[...],
                preferred_element_type=jnp.float32)                  # (Lq, Dh_pad)
    o_ref[...] = (o * (1.0 / denom)).astype(o_ref.dtype)             # one wide store


def mha_attention(q, k, v, num_heads, out_dtype=jnp.bfloat16):
    # q: (B, Lq, E_pad), k/v: (B, Lk, E_pad); E_pad = num_heads * Dh_pad and the
    # 1/sqrt(Dh) scale is already folded into q.  Grid = (batch, head) keeps the
    # per-step VMEM footprint at 1/num_heads of a per-batch layout.
    # NOTE: for extremely long KV on v7x a flash-style KV-tiled inner loop would
    # further shrink the (Lq, Lk) score footprint; not needed at these sizes.
    B, Lq, E_pad = q.shape
    Lk = k.shape[1]
    Dh_pad = E_pad // num_heads
    return pl.pallas_call(
        _attn_kernel,
        out_shape=jax.ShapeDtypeStruct((B, Lq, E_pad), out_dtype),
        grid=(B, num_heads),
        in_specs=[
            pl.BlockSpec((None, Lq, Dh_pad), lambda b, h: (b, 0, h)),
            pl.BlockSpec((None, Lk, Dh_pad), lambda b, h: (b, 0, h)),
            pl.BlockSpec((None, Lk, Dh_pad), lambda b, h: (b, 0, h)),
        ],
        out_specs=pl.BlockSpec((None, Lq, Dh_pad), lambda b, h: (b, 0, h)),
        compiler_params=pltpu.CompilerParams(
            dimension_semantics=("parallel", "parallel"),
            vmem_limit_bytes=_vmem_limit_bytes()),
    )(q, k, v)


# ---------------------------------------------------------------------------
# One-time parameter preparation: pad heads to 128 lanes, fold 1/sqrt(Dh) into
# the q in_proj, cast weights to bf16, biases / LN affines to (1, n) f32.
# ---------------------------------------------------------------------------
def _round_up(x, m):
    return ((x + m - 1) // m) * m


def _pad_head_cols(w, num_heads, dh, dh_pad):
    if dh_pad == dh:
        return w
    k = w.shape[0]
    w3 = w.reshape(k, num_heads, dh)
    pad = jnp.zeros((k, num_heads, dh_pad - dh), w.dtype)
    return jnp.concatenate([w3, pad], axis=-1).reshape(k, num_heads * dh_pad)


def _pad_head_rows(w, num_heads, dh, dh_pad):
    if dh_pad == dh:
        return w
    n = w.shape[1]
    w3 = w.reshape(num_heads, dh, n)
    pad = jnp.zeros((num_heads, dh_pad - dh, n), w.dtype)
    return jnp.concatenate([w3, pad], axis=1).reshape(num_heads * dh_pad, n)


def _pad_head_vec(b, num_heads, dh, dh_pad):
    if dh_pad == dh:
        return b
    b2 = b.reshape(num_heads, dh)
    pad = jnp.zeros((num_heads, dh_pad - dh), b.dtype)
    return jnp.concatenate([b2, pad], axis=-1).reshape(num_heads * dh_pad)


def prepare_params(raw, num_heads):
    E = raw['w_iq'].shape[1]
    dh = E // num_heads
    dh_pad = _round_up(dh, 128)
    scale = 1.0 / math.sqrt(dh)

    w16 = lambda w: w.astype(jnp.bfloat16)
    row = lambda v: v.reshape(1, -1).astype(jnp.float32)

    return {
        # Q path
        'wq1': w16(raw['wq1']),
        'ln_q_g': row(raw['ln_q_g']), 'ln_q_b': row(raw['ln_q_b']),
        'w_iq': w16(_pad_head_cols(raw['w_iq'] * scale, num_heads, dh, dh_pad)),
        'b_iq': row(_pad_head_vec(raw['b_iq'] * scale, num_heads, dh, dh_pad)),
        # K path
        'wk1': w16(raw['wk1']), 'bk1': row(raw['bk1']),
        'wk2': w16(raw['wk2']), 'bk2': row(raw['bk2']),
        'ln_k_g': row(raw['ln_k_g']), 'ln_k_b': row(raw['ln_k_b']),
        'w_ik': w16(_pad_head_cols(raw['w_ik'], num_heads, dh, dh_pad)),
        'b_ik': row(_pad_head_vec(raw['b_ik'], num_heads, dh, dh_pad)),
        # V path
        'wv1': w16(raw['wv1']), 'bv1': row(raw['bv1']),
        'wv2': w16(raw['wv2']), 'bv2': row(raw['bv2']),
        'ln_v_g': row(raw['ln_v_g']), 'ln_v_b': row(raw['ln_v_b']),
        'w_iv': w16(_pad_head_cols(raw['w_iv'], num_heads, dh, dh_pad)),
        'b_iv': row(_pad_head_vec(raw['b_iv'], num_heads, dh, dh_pad)),
        # out_proj -> mlp -> residual -> LayerNorm
        'w_out': w16(_pad_head_rows(raw['w_out'], num_heads, dh, dh_pad)),
        'b_out': row(raw['b_out']),
        'w_mlp': w16(raw['w_mlp']), 'b_mlp': row(raw['b_mlp']),
        'ln_o_g': row(raw['ln_o_g']), 'ln_o_b': row(raw['ln_o_b']),
    }


# ---------------------------------------------------------------------------
# FFM forward (mirrors the PyTorch module's forward, batch-first layout).
# ---------------------------------------------------------------------------
def ffm_forward(clip, vae, params, num_heads):
    # TODO(synk): attn_mask path not implemented (module is exercised with attn_mask=None).
    B, Lq, E = clip.shape
    _, Lk, DV = vae.shape
    E_pad = params['w_iq'].shape[1]

    x_res = clip.reshape(B * Lq, E)                     # residual_0 (f32)
    x = x_res.astype(jnp.bfloat16)                      # chain inputs in bf16
    xm = vae.reshape(B * Lk, DV).astype(jnp.bfloat16)

    # Q path: qa = (ln_q_1(clip @ Wq1)) @ (W_iq/sqrt(Dh)) + b_iq/sqrt(Dh)
    qa = fused_chains(x, [(
        dict(w=params['wq1'], gamma=params['ln_q_g'], beta=params['ln_q_b']),
        dict(w=params['w_iq'], b=params['b_iq']),
    )])

    # K and V paths fused into one kernel sharing a single read of xm.
    ka, va = fused_chains(xm, [
        (dict(w=params['wk1'], b=params['bk1'], gelu=True),
         dict(w=params['wk2'], b=params['bk2'],
              gamma=params['ln_k_g'], beta=params['ln_k_b']),
         dict(w=params['w_ik'], b=params['b_ik'])),
        (dict(w=params['wv1'], b=params['bv1'], gelu=True),
         dict(w=params['wv2'], b=params['bv2'],
              gamma=params['ln_v_g'], beta=params['ln_v_b']),
         dict(w=params['w_iv'], b=params['b_iv'])),
    ])

    # Multi-head attention over lane-aligned (zero-padded) heads.
    ao = mha_attention(qa.reshape(B, Lq, E_pad),
                       ka.reshape(B, Lk, E_pad),
                       va.reshape(B, Lk, E_pad), num_heads)

    # out = ln_out( mlp( out_proj(ao) ) + residual_0 )
    out = fused_chains(ao.reshape(B * Lq, E_pad), [(
        dict(w=params['w_out'], b=params['b_out']),
        dict(w=params['w_mlp'], b=params['b_mlp'], res=True,
             gamma=params['ln_o_g'], beta=params['ln_o_b']),
    )], res=x_res, out_dtypes=[jnp.float32])
    return out.reshape(B, Lq, E)


# ---------------------------------------------------------------------------
# Deterministic raw parameter init (weights stored transposed, i.e. (in, out)).
# ---------------------------------------------------------------------------
def init_params(key, E, DV):
    ks = jax.random.split(key, 10)
    tn = lambda k, shape: (0.02 * jax.random.truncated_normal(
        k, -2.0, 2.0, shape)).astype(jnp.float32)
    zeros = lambda n: jnp.zeros((n,), jnp.float32)
    ones = lambda n: jnp.ones((n,), jnp.float32)
    return {
        'wq1': tn(ks[0], (E, E)),                         # q_proj_1 (no bias)
        'wk1': tn(ks[1], (DV, E)), 'bk1': zeros(E),       # k_proj_1[0]
        'wk2': tn(ks[2], (E, E)),  'bk2': zeros(E),       # k_proj_1[2]
        'wv1': tn(ks[3], (DV, E)), 'bv1': zeros(E),       # v_proj_1[0]
        'wv2': tn(ks[4], (E, E)),  'bv2': zeros(E),       # v_proj_1[2]
        'ln_q_g': ones(E), 'ln_q_b': zeros(E),
        'ln_k_g': ones(E), 'ln_k_b': zeros(E),
        'ln_v_g': ones(E), 'ln_v_b': zeros(E),
        'ln_o_g': ones(E), 'ln_o_b': zeros(E),
        # nn.MultiheadAttention in_proj (split into q/k/v) and out_proj
        'w_iq': tn(ks[5], (E, E)), 'b_iq': zeros(E),
        'w_ik': tn(ks[6], (E, E)), 'b_ik': zeros(E),
        'w_iv': tn(ks[7], (E, E)), 'b_iv': zeros(E),
        'w_out': tn(ks[8], (E, E)), 'b_out': zeros(E),
        # NOTE: the PyTorch module zero-inits self.mlp; we use deterministic
        # random weights here so the attention path contributes to the output.
        'w_mlp': tn(ks[9], (E, E)), 'b_mlp': zeros(E),
    }


if __name__ == "__main__":
    # Small-scale analog of the real config (embed_dim=768, kv_in=1152,
    # num_heads=8, head_dim=96): dims scaled by 1/4 but head_dim kept at 96 so
    # the 128-lane head-padding path is exercised.
    B, LQ, LKV = 2, 8, 16
    E, DV, H = 192, 288, 2          # head_dim = 96 -> padded to 128 lanes

    root = jax.random.PRNGKey(0)
    k_clip, k_vae, k_par = jax.random.split(root, 3)
    clip = jax.random.normal(k_clip, (B, LQ, E), jnp.float32)
    vae = jax.random.normal(k_vae, (B, LKV, DV), jnp.float32)
    params = prepare_params(init_params(k_par, E, DV), H)

    fwd = jax.jit(partial(ffm_forward, num_heads=H))
    out = fwd(clip, vae, params)
    out = jax.block_until_ready(out)

    assert out.shape == (B, LQ, E), out.shape
    assert bool(jnp.isfinite(out).all())
    print("KERNEL_OK")
</pallas_src>

<mosaic_0001>
module attributes {stable_mosaic.version = 11 : i64} {
  func.func @_chains_kernel(%arg0: i32, %arg1: memref<16x192xbf16, #tpu.memory_space<vmem>>, %arg2: memref<192x192xbf16, #tpu.memory_space<vmem>>, %arg3: memref<1x192xf32, #tpu.memory_space<vmem>>, %arg4: memref<1x192xf32, #tpu.memory_space<vmem>>, %arg5: memref<192x256xbf16, #tpu.memory_space<vmem>>, %arg6: memref<1x256xf32, #tpu.memory_space<vmem>>, %arg7: memref<16x256xbf16, #tpu.memory_space<vmem>>) attributes {dimension_semantics = [#tpu.dimension_semantics<parallel>], iteration_bounds = array<i64: 1>, scalar_prefetch = 0 : i64, scratch_operands = 0 : i64, tpu.core_type = #tpu.core_type<tc>, window_params = [{transform_indices = @transform_0, window_bounds = array<i64: 16, 192>}, {pipeline_mode = #tpu.pipeline_mode<synchronous>, transform_indices = @transform_1, window_bounds = array<i64: 192, 192>}, {pipeline_mode = #tpu.pipeline_mode<synchronous>, transform_indices = @transform_2, window_bounds = array<i64: 1, 192>}, {pipeline_mode = #tpu.pipeline_mode<synchronous>, transform_indices = @transform_3, window_bounds = array<i64: 1, 192>}, {pipeline_mode = #tpu.pipeline_mode<synchronous>, transform_indices = @transform_4, window_bounds = array<i64: 192, 256>}, {pipeline_mode = #tpu.pipeline_mode<synchronous>, transform_indices = @transform_5, window_bounds = array<i64: 1, 256>}, {transform_indices = @transform_6, window_bounds = array<i64: 16, 256>}]} {
    %c0 = arith.constant 0 : index
    %c0_0 = arith.constant 0 : index
    %0 = vector.load %arg1[%c0, %c0_0] : memref<16x192xbf16, #tpu.memory_space<vmem>>, vector<16x192xbf16>
    %c0_1 = arith.constant 0 : index
    %c0_2 = arith.constant 0 : index
    %1 = vector.load %arg2[%c0_1, %c0_2] : memref<192x192xbf16, #tpu.memory_space<vmem>>, vector<192x192xbf16>
    %cst = arith.constant dense<0.000000e+00> : vector<16x192xf32>
    %2 = tpu.matmul %0, %1, %cst {dimension_numbers = #tpu.dot_dimension_numbers<[1], [0], [0], [1], [0, 0, 1, 1], [], []>} : vector<16x192xbf16>, vector<192x192xbf16>, vector<16x192xf32> -> vector<16x192xf32>
    %c0_3 = arith.constant 0 : index
    %c0_4 = arith.constant 0 : index
    %3 = vector.load %arg3[%c0_3, %c0_4] : memref<1x192xf32, #tpu.memory_space<vmem>>, vector<1x192xf32>
    %c0_5 = arith.constant 0 : index
    %c0_6 = arith.constant 0 : index
    %4 = vector.load %arg4[%c0_5, %c0_6] : memref<1x192xf32, #tpu.memory_space<vmem>>, vector<1x192xf32>
    %cst_7 = arith.constant dense<0.000000e+00> : vector<16xf32>
    %5 = vector.multi_reduction <add>, %2, %cst_7 [1] : vector<16x192xf32> to vector<16xf32>
    %6 = vector.shape_cast %5 : vector<16xf32> to vector<16x1xf32>
    %cst_8 = arith.constant 1.920000e+02 : f32
    %7 = vector.broadcast %cst_8 : f32 to vector<16x1xf32>
    %8 = arith.divf %6, %7 : vector<16x1xf32>
    %9 = vector.broadcast %8 : vector<16x1xf32> to vector<16x192xf32>
    %10 = arith.subf %2, %9 : vector<16x192xf32>
    %11 = arith.mulf %10, %10 : vector<16x192xf32>
    %cst_9 = arith.constant dense<0.000000e+00> : vector<16xf32>
    %12 = vector.multi_reduction <add>, %11, %cst_9 [1] : vector<16x192xf32> to vector<16xf32>
    %13 = vector.shape_cast %12 : vector<16xf32> to vector<16x1xf32>
    %cst_10 = arith.constant 1.920000e+02 : f32
    %14 = vector.broadcast %cst_10 : f32 to vector<16x1xf32>
    %15 = arith.divf %13, %14 : vector<16x1xf32>
    %16 = vector.broadcast %8 : vector<16x1xf32> to vector<16x192xf32>
    %17 = arith.subf %2, %16 : vector<16x192xf32>
    %cst_11 = arith.constant 9.99999997E-7 : f32
    %18 = vector.broadcast %cst_11 : f32 to vector<16x1xf32>
    %19 = arith.addf %15, %18 : vector<16x1xf32>
    %20 = math.rsqrt %19 : vector<16x1xf32>
    %21 = vector.broadcast %20 : vector<16x1xf32> to vector<16x192xf32>
    %22 = arith.mulf %17, %21 : vector<16x192xf32>
    %23 = vector.broadcast %3 : vector<1x192xf32> to vector<16x192xf32>
    %24 = arith.mulf %22, %23 : vector<16x192xf32>
    %25 = vector.broadcast %4 : vector<1x192xf32> to vector<16x192xf32>
    %26 = arith.addf %24, %25 : vector<16x192xf32>
    %27 = arith.truncf %26 : vector<16x192xf32> to vector<16x192xbf16>
    %c0_12 = arith.constant 0 : index
    %c0_13 = arith.constant 0 : index
    %28 = vector.load %arg5[%c0_12, %c0_13] : memref<192x256xbf16, #tpu.memory_space<vmem>>, vector<192x256xbf16>
    %cst_14 = arith.constant dense<0.000000e+00> : vector<16x256xf32>
    %29 = tpu.matmul %27, %28, %cst_14 {dimension_numbers = #tpu.dot_dimension_numbers<[1], [0], [0], [1], [0, 0, 1, 1], [], []>} : vector<16x192xbf16>, vector<192x256xbf16>, vector<16x256xf32> -> vector<16x256xf32>
    %c0_15 = arith.constant 0 : index
    %c0_16 = arith.constant 0 : index
    %30 = vector.load %arg6[%c0_15, %c0_16] : memref<1x256xf32, #tpu.memory_space<vmem>>, vector<1x256xf32>
    %31 = vector.broadcast %30 : vector<1x256xf32> to vector<16x256xf32>
    %32 = arith.addf %29, %31 : vector<16x256xf32>
    %33 = arith.truncf %32 : vector<16x256xf32> to vector<16x256xbf16>
    %c0_17 = arith.constant 0 : index
    %c0_18 = arith.constant 0 : index
    %34 = vector.load %arg7[%c0_17, %c0_18] : memref<16x256xbf16, #tpu.memory_space<vmem>>, vector<16x256xbf16>
    tpu.vector_store %arg7[%c0_17, %c0_18], %33 {strides = array<i32>} : memref<16x256xbf16, #tpu.memory_space<vmem>>, vector<16x256xbf16>,
    return
  }
  func.func @transform_0(%arg0: i32) -> (i32, i32) {
    %c0_i32 = arith.constant 0 : i32
    %c0_i32_0 = arith.constant 0 : i32
    return %arg0, %c0_i32 : i32, i32
  }
  func.func @transform_1(%arg0: i32) -> (i32, i32) {
    %c0_i32 = arith.constant 0 : i32
    %c0_i32_0 = arith.constant 0 : i32
    %c0_i32_1 = arith.constant 0 : i32
    return %c0_i32, %c0_i32_0 : i32, i32
  }
  func.func @transform_2(%arg0: i32) -> (i32, i32) {
    %c0_i32 = arith.constant 0 : i32
    %c0_i32_0 = arith.constant 0 : i32
    %c0_i32_1 = arith.constant 0 : i32
    return %c0_i32, %c0_i32_0 : i32, i32
  }
  func.func @transform_3(%arg0: i32) -> (i32, i32) {
    %c0_i32 = arith.constant 0 : i32
    %c0_i32_0 = arith.constant 0 : i32
    %c0_i32_1 = arith.constant 0 : i32
    return %c0_i32, %c0_i32_0 : i32, i32
  }
  func.func @transform_4(%arg0: i32) -> (i32, i32) {
    %c0_i32 = arith.constant 0 : i32
    %c0_i32_0 = arith.constant 0 : i32
    %c0_i32_1 = arith.constant 0 : i32
    return %c0_i32, %c0_i32_0 : i32, i32
  }
  func.func @transform_5(%arg0: i32) -> (i32, i32) {
    %c0_i32 = arith.constant 0 : i32
    %c0_i32_0 = arith.constant 0 : i32
    %c0_i32_1 = arith.constant 0 : i32
    return %c0_i32, %c0_i32_0 : i32, i32
  }
  func.func @transform_6(%arg0: i32) -> (i32, i32) {
    %c0_i32 = arith.constant 0 : i32
    %c0_i32_0 = arith.constant 0 : i32
    return %arg0, %c0_i32 : i32, i32
  }
}

module attributes {stable_mosaic.version = 11 : i64} {
  func.func @_chains_kernel(%arg0: i32, %arg1: memref<32x288xbf16, #tpu.memory_space<vmem>>, %arg2: memref<288x192xbf16, #tpu.memory_space<vmem>>, %arg3: memref<1x192xf32, #tpu.memory_space<vmem>>, %arg4: memref<192x192xbf16, #tpu.memory_space<vmem>>, %arg5: memref<1x192xf32, #tpu.memory_space<vmem>>, %arg6: memref<1x192xf32, #tpu.memory_space<vmem>>, %arg7: memref<1x192xf32, #tpu.memory_space<vmem>>, %arg8: memref<192x256xbf16, #tpu.memory_space<vmem>>, %arg9: memref<1x256xf32, #tpu.memory_space<vmem>>, %arg10: memref<288x192xbf16, #tpu.memory_space<vmem>>, %arg11: memref<1x192xf32, #tpu.memory_space<vmem>>, %arg12: memref<192x192xbf16, #tpu.memory_space<vmem>>, %arg13: memref<1x192xf32, #tpu.memory_space<vmem>>, %arg14: memref<1x192xf32, #tpu.memory_space<vmem>>, %arg15: memref<1x192xf32, #tpu.memory_space<vmem>>, %arg16: memref<192x256xbf16, #tpu.memory_space<vmem>>, %arg17: memref<1x256xf32, #tpu.memory_space<vmem>>, %arg18: memref<32x256xbf16, #tpu.memory_space<vmem>>, %arg19: memref<32x256xbf16, #tpu.memory_space<vmem>>) attributes {dimension_semantics = [#tpu.dimension_semantics<parallel>], iteration_bounds = array<i64: 1>, scalar_prefetch = 0 : i64, scratch_operands = 0 : i64, tpu.core_type = #tpu.core_type<tc>, window_params = [{transform_indices = @transform_0, window_bounds = array<i64: 32, 288>}, {pipeline_mode = #tpu.pipeline_mode<synchronous>, transform_indices = @transform_1, window_bounds = array<i64: 288, 192>}, {pipeline_mode = #tpu.pipeline_mode<synchronous>, transform_indices = @transform_2, window_bounds = array<i64: 1, 192>}, {pipeline_mode = #tpu.pipeline_mode<synchronous>, transform_indices = @transform_3, window_bounds = array<i64: 192, 192>}, {pipeline_mode = #tpu.pipeline_mode<synchronous>, transform_indices = @transform_4, window_bounds = array<i64: 1, 192>}, {pipeline_mode = #tpu.pipeline_mode<synchronous>, transform_indices = @transform_5, window_bounds = array<i64: 1, 192>}, {pipeline_mode = #tpu.pipeline_mode<synchronous>, transform_indices = @transform_6, window_bounds = array<i64: 1, 192>}, {pipeline_mode = #tpu.pipeline_mode<synchronous>, transform_indices = @transform_7, window_bounds = array<i64: 192, 256>}, {pipeline_mode = #tpu.pipeline_mode<synchronous>, transform_indices = @transform_8, window_bounds = array<i64: 1, 256>}, {pipeline_mode = #tpu.pipeline_mode<synchronous>, transform_indices = @transform_9, window_bounds = array<i64: 288, 192>}, {pipeline_mode = #tpu.pipeline_mode<synchronous>, transform_indices = @transform_10, window_bounds = array<i64: 1, 192>}, {pipeline_mode = #tpu.pipeline_mode<synchronous>, transform_indices = @transform_11, window_bounds = array<i64: 192, 192>}, {pipeline_mode = #tpu.pipeline_mode<synchronous>, transform_indices = @transform_12, window_bounds = array<i64: 1, 192>}, {pipeline_mode = #tpu.pipeline_mode<synchronous>, transform_indices = @transform_13, window_bounds = array<i64: 1, 192>}, {pipeline_mode = #tpu.pipeline_mode<synchronous>, transform_indices = @transform_14, window_bounds = array<i64: 1, 192>}, {pipeline_mode = #tpu.pipeline_mode<synchronous>, transform_indices = @transform_15, window_bounds = array<i64: 192, 256>}, {pipeline_mode = #tpu.pipeline_mode<synchronous>, transform_indices = @transform_16, window_bounds = array<i64: 1, 256>}, {transform_indices = @transform_17, window_bounds = array<i64: 32, 256>}, {transform_indices = @transform_18, window_bounds = array<i64: 32, 256>}]} {
    %c0 = arith.constant 0 : index
    %c0_0 = arith.constant 0 : index
    %0 = vector.load %arg1[%c0, %c0_0] : memref<32x288xbf16, #tpu.memory_space<vmem>>, vector<32x288xbf16>
    %c0_1 = arith.constant 0 : index
    %c0_2 = arith.constant 0 : index
    %1 = vector.load %arg2[%c0_1, %c0_2] : memref<288x192xbf16, #tpu.memory_space<vmem>>, vector<288x192xbf16>
    %cst = arith.constant dense<0.000000e+00> : vector<32x192xf32>
    %2 = tpu.matmul %0, %1, %cst {dimension_numbers = #tpu.dot_dimension_numbers<[1], [0], [0], [1], [0, 0, 1, 1], [], []>} : vector<32x288xbf16>, vector<288x192xbf16>, vector<32x192xf32> -> vector<32x192xf32>
    %c0_3 = arith.constant 0 : index
    %c0_4 = arith.constant 0 : index
    %3 = vector.load %arg3[%c0_3, %c0_4] : memref<1x192xf32, #tpu.memory_space<vmem>>, vector<1x192xf32>
    %4 = vector.broadcast %3 : vector<1x192xf32> to vector<32x192xf32>
    %5 = arith.addf %2, %4 : vector<32x192xf32>
    %cst_5 = arith.constant 5.000000e-01 : f32
    %6 = vector.broadcast %cst_5 : f32 to vector<32x192xf32>
    %7 = arith.mulf %6, %5 : vector<32x192xf32>
    %cst_6 = arith.constant 0.707106769 : f32
    %8 = vector.broadcast %cst_6 : f32 to vector<32x192xf32>
    %9 = arith.mulf %5, %8 : vector<32x192xf32>
    %10 = math.erf %9 : vector<32x192xf32>
    %cst_7 = arith.constant 1.000000e+00 : f32
    %11 = vector.broadcast %cst_7 : f32 to vector<32x192xf32>
    %12 = arith.addf %11, %10 : vector<32x192xf32>
    %13 = arith.mulf %7, %12 : vector<32x192xf32>
    %14 = arith.truncf %13 : vector<32x192xf32> to vector<32x192xbf16>
    %c0_8 = arith.constant 0 : index
    %c0_9 = arith.constant 0 : index
    %15 = vector.load %arg4[%c0_8, %c0_9] : memref<192x192xbf16, #tpu.memory_space<vmem>>, vector<192x192xbf16>
    %cst_10 = arith.constant dense<0.000000e+00> : vector<32x192xf32>
    %16 = tpu.matmul %14, %15, %cst_10 {dimension_numbers = #tpu.dot_dimension_numbers<[1], [0], [0], [1], [0, 0, 1, 1], [], []>} : vector<32x192xbf16>, vector<192x192xbf16>, vector<32x192xf32> -> vector<32x192xf32>
    %c0_11 = arith.constant 0 : index
    %c0_12 = arith.constant 0 : index
    %17 = vector.load %arg5[%c0_11, %c0_12] : memref<1x192xf32, #tpu.memory_space<vmem>>, vector<1x192xf32>
    %18 = vector.broadcast %17 : vector<1x192xf32> to vector<32x192xf32>
    %19 = arith.addf %16, %18 : vector<32x192xf32>
    %c0_13 = arith.constant 0 : index
    %c0_14 = arith.constant 0 : index
    %20 = vector.load %arg6[%c0_13, %c0_14] : memref<1x192xf32, #tpu.memory_space<vmem>>, vector<1x192xf32>
    %c0_15 = arith.constant 0 : index
    %c0_16 = arith.constant 0 : index
    %21 = vector.load %arg7[%c0_15, %c0_16] : memref<1x192xf32, #tpu.memory_space<vmem>>, vector<1x192xf32>
    %cst_17 = arith.constant dense<0.000000e+00> : vector<32xf32>
    %22 = vector.multi_reduction <add>, %19, %cst_17 [1] : vector<32x192xf32> to vector<32xf32>
    %23 = vector.shape_cast %22 : vector<32xf32> to vector<32x1xf32>
    %cst_18 = arith.constant 1.920000e+02 : f32
    %24 = vector.broadcast %cst_18 : f32 to vector<32x1xf32>
    %25 = arith.divf %23, %24 : vector<32x1xf32>
    %26 = vector.broadcast %25 : vector<32x1xf32> to vector<32x192xf32>
    %27 = arith.subf %19, %26 : vector<32x192xf32>
    %28 = arith.mulf %27, %27 : vector<32x192xf32>
    %cst_19 = arith.constant dense<0.000000e+00> : vector<32xf32>
    %29 = vector.multi_reduction <add>, %28, %cst_19 [1] : vector<32x192xf32> to vector<32xf32>
    %30 = vector.shape_cast %29 : vector<32xf32> to vector<32x1xf32>
    %cst_20 = arith.constant 1.920000e+02 : f32
    %31 = vector.broadcast %cst_20 : f32 to vector<32x1xf32>
    %32 = arith.divf %30, %31 : vector<32x1xf32>
    %33 = vector.broadcast %25 : vector<32x1xf32> to vector<32x192xf32>
    %34 = arith.subf %19, %33 : vector<32x192xf32>
    %cst_21 = arith.constant 9.99999997E-7 : f32
    %35 = vector.broadcast %cst_21 : f32 to vector<32x1xf32>
    %36 = arith.addf %32, %35 : vector<32x1xf32>
    %37 = math.rsqrt %36 : vector<32x1xf32>
    %38 = vector.broadcast %37 : vector<32x1xf32> to vector<32x192xf32>
    %39 = arith.mulf %34, %38 : vector<32x192xf32>
    %40 = vector.broadcast %20 : vector<1x192xf32> to vector<32x192xf32>
    %41 = arith.mulf %39, %40 : vector<32x192xf32>
    %42 = vector.broadcast %21 : vector<1x192xf32> to vector<32x192xf32>
    %43 = arith.addf %41, %42 : vector<32x192xf32>
    %44 = arith.truncf %43 : vector<32x192xf32> to vector<32x192xbf16>
    %c0_22 = arith.constant 0 : index
    %c0_23 = arith.constant 0 : index
    %45 = vector.load %arg8[%c0_22, %c0_23] : memref<192x256xbf16, #tpu.memory_space<vmem>>, vector<192x256xbf16>
    %cst_24 = arith.constant dense<0.000000e+00> : vector<32x256xf32>
    %46 = tpu.matmul %44, %45, %cst_24 {dimension_numbers = #tpu.dot_dimension_numbers<[1], [0], [0], [1], [0, 0, 1, 1], [], []>} : vector<32x192xbf16>, vector<192x256xbf16>, vector<32x256xf32> -> vector<32x256xf32>
    %c0_25 = arith.constant 0 : index
    %c0_26 = arith.constant 0 : index
    %47 = vector.load %arg9[%c0_25, %c0_26] : memref<1x256xf32, #tpu.memory_space<vmem>>, vector<1x256xf32>
    %48 = vector.broadcast %47 : vector<1x256xf32> to vector<32x256xf32>
    %49 = arith.addf %46, %48 : vector<32x256xf32>
    %50 = arith.truncf %49 : vector<32x256xf32> to vector<32x256xbf16>
    %c0_27 = arith.constant 0 : index
    %c0_28 = arith.constant 0 : index
    %51 = vector.load %arg18[%c0_27, %c0_28] : memref<32x256xbf16, #tpu.memory_space<vmem>>, vector<32x256xbf16>
    tpu.vector_store %arg18[%c0_27, %c0_28], %50 {strides = array<i32>} : memref<32x256xbf16, #tpu.memory_space<vmem>>, vector<32x256xbf16>,
    %c0_29 = arith.constant 0 : index
    %c0_30 = arith.constant 0 : index
    %52 = vector.load %arg10[%c0_29, %c0_30] : memref<288x192xbf16, #tpu.memory_space<vmem>>, vector<288x192xbf16>
    %cst_31 = arith.constant dense<0.000000e+00> : vector<32x192xf32>
    %53 = tpu.matmul %0, %52, %cst_31 {dimension_numbers = #tpu.dot_dimension_numbers<[1], [0], [0], [1], [0, 0, 1, 1], [], []>} : vector<32x288xbf16>, vector<288x192xbf16>, vector<32x192xf32> -> vector<32x192xf32>
    %c0_32 = arith.constant 0 : index
    %c0_33 = arith.constant 0 : index
    %54 = vector.load %arg11[%c0_32, %c0_33] : memref<1x192xf32, #tpu.memory_space<vmem>>, vector<1x192xf32>
    %55 = vector.broadcast %54 : vector<1x192xf32> to vector<32x192xf32>
    %56 = arith.addf %53, %55 : vector<32x192xf32>
    %cst_34 = arith.constant 5.000000e-01 : f32
    %57 = vector.broadcast %cst_34 : f32 to vector<32x192xf32>
    %58 = arith.mulf %57, %56 : vector<32x192xf32>
    %cst_35 = arith.constant 0.707106769 : f32
    %59 = vector.broadcast %cst_35 : f32 to vector<32x192xf32>
    %60 = arith.mulf %56, %59 : vector<32x192xf32>
    %61 = math.erf %60 : vector<32x192xf32>
    %cst_36 = arith.constant 1.000000e+00 : f32
    %62 = vector.broadcast %cst_36 : f32 to vector<32x192xf32>
    %63 = arith.addf %62, %61 : vector<32x192xf32>
    %64 = arith.mulf %58, %63 : vector<32x192xf32>
    %65 = arith.truncf %64 : vector<32x192xf32> to vector<32x192xbf16>
    %c0_37 = arith.constant 0 : index
    %c0_38 = arith.constant 0 : index
    %66 = vector.load %arg12[%c0_37, %c0_38] : memref<192x192xbf16, #tpu.memory_space<vmem>>, vector<192x192xbf16>
    %cst_39 = arith.constant dense<0.000000e+00> : vector<32x192xf32>
    %67 = tpu.matmul %65, %66, %cst_39 {dimension_numbers = #tpu.dot_dimension_numbers<[1], [0], [0], [1], [0, 0, 1, 1], [], []>} : vector<32x192xbf16>, vector<192x192xbf16>, vector<32x192xf32> -> vector<32x192xf32>
    %c0_40 = arith.constant 0 : index
    %c0_41 = arith.constant 0 : index
    %68 = vector.load %arg13[%c0_40, %c0_41] : memref<1x192xf32, #tpu.memory_space<vmem>>, vector<1x192xf32>
    %69 = vector.broadcast %68 : vector<1x192xf32> to vector<32x192xf32>
    %70 = arith.addf %67, %69 : vector<32x192xf32>
    %c0_42 = arith.constant 0 : index
    %c0_43 = arith.constant 0 : index
    %71 = vector.load %arg14[%c0_42, %c0_43] : memref<1x192xf32, #tpu.memory_space<vmem>>, vector<1x192xf32>
    %c0_44 = arith.constant 0 : index
    %c0_45 = arith.constant 0 : index
    %72 = vector.load %arg15[%c0_44, %c0_45] : memref<1x192xf32, #tpu.memory_space<vmem>>, vector<1x192xf32>
    %cst_46 = arith.constant dense<0.000000e+00> : vector<32xf32>
    %73 = vector.multi_reduction <add>, %70, %cst_46 [1] : vector<32x192xf32> to vector<32xf32>
    %74 = vector.shape_cast %73 : vector<32xf32> to vector<32x1xf32>
    %cst_47 = arith.constant 1.920000e+02 : f32
    %75 = vector.broadcast %cst_47 : f32 to vector<32x1xf32>
    %76 = arith.divf %74, %75 : vector<32x1xf32>
    %77 = vector.broadcast %76 : vector<32x1xf32> to vector<32x192xf32>
    %78 = arith.subf %70, %77 : vector<32x192xf32>
    %79 = arith.mulf %78, %78 : vector<32x192xf32>
    %cst_48 = arith.constant dense<0.000000e+00> : vector<32xf32>
    %80 = vector.multi_reduction <add>, %79, %cst_48 [1] : vector<32x192xf32> to vector<32xf32>
    %81 = vector.shape_cast %80 : vector<32xf32> to vector<32x1xf32>
    %cst_49 = arith.constant 1.920000e+02 : f32
    %82 = vector.broadcast %cst_49 : f32 to vector<32x1xf32>
    %83 = arith.divf %81, %82 : vector<32x1xf32>
    %84 = vector.broadcast %76 : vector<32x1xf32> to vector<32x192xf32>
    %85 = arith.subf %70, %84 : vector<32x192xf32>
    %cst_50 = arith.constant 9.99999997E-7 : f32
    %86 = vector.broadcast %cst_50 : f32 to vector<32x1xf32>
    %87 = arith.addf %83, %86 : vector<32x1xf32>
    %88 = math.rsqrt %87 : vector<32x1xf32>
    %89 = vector.broadcast %88 : vector<32x1xf32> to vector<32x192xf32>
    %90 = arith.mulf %85, %89 : vector<32x192xf32>
    %91 = vector.broadcast %71 : vector<1x192xf32> to vector<32x192xf32>
    %92 = arith.mulf %90, %91 : vector<32x192xf32>
    %93 = vector.broadcast %72 : vector<1x192xf32> to vector<32x192xf32>
    %94 = arith.addf %92, %93 : vector<32x192xf32>
    %95 = arith.truncf %94 : vector<32x192xf32> to vector<32x192xbf16>
    %c0_51 = arith.constant 0 : index
    %c0_52 = arith.constant 0 : index
    %96 = vector.load %arg16[%c0_51, %c0_52] : memref<192x256xbf16, #tpu.memory_space<vmem>>, vector<192x256xbf16>
    %cst_53 = arith.constant dense<0.000000e+00> : vector<32x256xf32>
    %97 = tpu.matmul %95, %96, %cst_53 {dimension_numbers = #tpu.dot_dimension_numbers<[1], [0], [0], [1], [0, 0, 1, 1], [], []>} : vector<32x192xbf16>, vector<192x256xbf16>, vector<32x256xf32> -> vector<32x256xf32>
    %c0_54 = arith.constant 0 : index
    %c0_55 = arith.constant 0 : index
    %98 = vector.load %arg17[%c0_54, %c0_55] : memref<1x256xf32, #tpu.memory_space<vmem>>, vector<1x256xf32>
    %99 = vector.broadcast %98 : vector<1x256xf32> to vector<32x256xf32>
    %100 = arith.addf %97, %99 : vector<32x256xf32>
    %101 = arith.truncf %100 : vector<32x256xf32> to vector<32x256xbf16>
    %c0_56 = arith.constant 0 : index
    %c0_57 = arith.constant 0 : index
    %102 = vector.load %arg19[%c0_56, %c0_57] : memref<32x256xbf16, #tpu.memory_space<vmem>>, vector<32x256xbf16>
    tpu.vector_store %arg19[%c0_56, %c0_57], %101 {strides = array<i32>} : memref<32x256xbf16, #tpu.memory_space<vmem>>, vector<32x256xbf16>,
    return
  }
  func.func @transform_0(%arg0: i32) -> (i32, i32) {
    %c0_i32 = arith.constant 0 : i32
    %c0_i32_0 = arith.constant 0 : i32
    return %arg0, %c0_i32 : i32, i32
  }
  func.func @transform_1(%arg0: i32) -> (i32, i32) {
    %c0_i32 = arith.constant 0 : i32
    %c0_i32_0 = arith.constant 0 : i32
    %c0_i32_1 = arith.constant 0 : i32
    return %c0_i32, %c0_i32_0 : i32, i32
  }
  func.func @transform_2(%arg0: i32) -> (i32, i32) {
    %c0_i32 = arith.constant 0 : i32
    %c0_i32_0 = arith.constant 0 : i32
    %c0_i32_1 = arith.constant 0 : i32
    return %c0_i32, %c0_i32_0 : i32, i32
  }
  func.func @transform_3(%arg0: i32) -> (i32, i32) {
    %c0_i32 = arith.constant 0 : i32
    %c0_i32_0 = arith.constant 0 : i32
    %c0_i32_1 = arith.constant 0 : i32
    return %c0_i32, %c0_i32_0 : i32, i32
  }
  func.func @transform_4(%arg0: i32) -> (i32, i32) {
    %c0_i32 = arith.constant 0 : i32
    %c0_i32_0 = arith.constant 0 : i32
    %c0_i32_1 = arith.constant 0 : i32
    return %c0_i32, %c0_i32_0 : i32, i32
  }
  func.func @transform_5(%arg0: i32) -> (i32, i32) {
    %c0_i32 = arith.constant 0 : i32
    %c0_i32_0 = arith.constant 0 : i32
    %c0_i32_1 = arith.constant 0 : i32
    return %c0_i32, %c0_i32_0 : i32, i32
  }
  func.func @transform_6(%arg0: i32) -> (i32, i32) {
    %c0_i32 = arith.constant 0 : i32
    %c0_i32_0 = arith.constant 0 : i32
    %c0_i32_1 = arith.constant 0 : i32
    return %c0_i32, %c0_i32_0 : i32, i32
  }
  func.func @transform_7(%arg0: i32) -> (i32, i32) {
    %c0_i32 = arith.constant 0 : i32
    %c0_i32_0 = arith.constant 0 : i32
    %c0_i32_1 = arith.constant 0 : i32
    return %c0_i32, %c0_i32_0 : i32, i32
  }
  func.func @transform_8(%arg0: i32) -> (i32, i32) {
    %c0_i32 = arith.constant 0 : i32
    %c0_i32_0 = arith.constant 0 : i32
    %c0_i32_1 = arith.constant 0 : i32
    return %c0_i32, %c0_i32_0 : i32, i32
  }
  func.func @transform_9(%arg0: i32) -> (i32, i32) {
    %c0_i32 = arith.constant 0 : i32
    %c0_i32_0 = arith.constant 0 : i32
    %c0_i32_1 = arith.constant 0 : i32
    return %c0_i32, %c0_i32_0 : i32, i32
  }
  func.func @transform_10(%arg0: i32) -> (i32, i32) {
    %c0_i32 = arith.constant 0 : i32
    %c0_i32_0 = arith.constant 0 : i32
    %c0_i32_1 = arith.constant 0 : i32
    return %c0_i32, %c0_i32_0 : i32, i32
  }
  func.func @transform_11(%arg0: i32) -> (i32, i32) {
    %c0_i32 = arith.constant 0 : i32
    %c0_i32_0 = arith.constant 0 : i32
    %c0_i32_1 = arith.constant 0 : i32
    return %c0_i32, %c0_i32_0 : i32, i32
  }
  func.func @transform_12(%arg0: i32) -> (i32, i32) {
    %c0_i32 = arith.constant 0 : i32
    %c0_i32_0 = arith.constant 0 : i32
    %c0_i32_1 = arith.constant 0 : i32
    return %c0_i32, %c0_i32_0 : i32, i32
  }
  func.func @transform_13(%arg0: i32) -> (i32, i32) {
    %c0_i32 = arith.constant 0 : i32
    %c0_i32_0 = arith.constant 0 : i32
    %c0_i32_1 = arith.constant 0 : i32
    return %c0_i32, %c0_i32_0 : i32, i32
  }
  func.func @transform_14(%arg0: i32) -> (i32, i32) {
    %c0_i32 = arith.constant 0 : i32
    %c0_i32_0 = arith.constant 0 : i32
    %c0_i32_1 = arith.constant 0 : i32
    return %c0_i32, %c0_i32_0 : i32, i32
  }
  func.func @transform_15(%arg0: i32) -> (i32, i32) {
    %c0_i32 = arith.constant 0 : i32
    %c0_i32_0 = arith.constant 0 : i32
    %c0_i32_1 = arith.constant 0 : i32
    return %c0_i32, %c0_i32_0 : i32, i32
  }
  func.func @transform_16(%arg0: i32) -> (i32, i32) {
    %c0_i32 = arith.constant 0 : i32
    %c0_i32_0 = arith.constant 0 : i32
    %c0_i32_1 = arith.constant 0 : i32
    return %c0_i32, %c0_i32_0 : i32, i32
  }
  func.func @transform_17(%arg0: i32) -> (i32, i32) {
    %c0_i32 = arith.constant 0 : i32
    %c0_i32_0 = arith.constant 0 : i32
    return %arg0, %c0_i32 : i32, i32
  }
  func.func @transform_18(%arg0: i32) -> (i32, i32) {
    %c0_i32 = arith.constant 0 : i32
    %c0_i32_0 = arith.constant 0 : i32
    return %arg0, %c0_i32 : i32, i32
  }
}

module attributes {stable_mosaic.version = 11 : i64} {
  func.func @_attn_kernel(%arg0: i32, %arg1: i32, %arg2: memref<1x8x128xbf16, #tpu.memory_space<vmem>>, %arg3: memref<1x16x128xbf16, #tpu.memory_space<vmem>>, %arg4: memref<1x16x128xbf16, #tpu.memory_space<vmem>>, %arg5: memref<1x8x128xbf16, #tpu.memory_space<vmem>>) attributes {dimension_semantics = [#tpu.dimension_semantics<parallel>, #tpu.dimension_semantics<parallel>], iteration_bounds = array<i64: 2, 2>, scalar_prefetch = 0 : i64, scratch_operands = 0 : i64, tpu.core_type = #tpu.core_type<tc>, window_params = [{transform_indices = @transform_0, window_bounds = array<i64: 1, 8, 128>}, {transform_indices = @transform_1, window_bounds = array<i64: 1, 16, 128>}, {transform_indices = @transform_2, window_bounds = array<i64: 1, 16, 128>}, {transform_indices = @transform_3, window_bounds = array<i64: 1, 8, 128>}]} {
    %c0 = arith.constant 0 : index
    %c0_0 = arith.constant 0 : index
    %c0_1 = arith.constant 0 : index
    %0 = vector.load %arg2[%c0, %c0_0, %c0_1] : memref<1x8x128xbf16, #tpu.memory_space<vmem>>, vector<1x8x128xbf16>
    %1 = vector.shape_cast %0 : vector<1x8x128xbf16> to vector<8x128xbf16>
    %c0_2 = arith.constant 0 : index
    %c0_3 = arith.constant 0 : index
    %c0_4 = arith.constant 0 : index
    %2 = vector.load %arg3[%c0_2, %c0_3, %c0_4] : memref<1x16x128xbf16, #tpu.memory_space<vmem>>, vector<1x16x128xbf16>
    %3 = vector.shape_cast %2 : vector<1x16x128xbf16> to vector<16x128xbf16>
    %cst = arith.constant dense<0.000000e+00> : vector<8x16xf32>
    %4 = tpu.matmul %1, %3, %cst {dimension_numbers = #tpu.dot_dimension_numbers<[1], [1], [0], [0], [0, 0, 1, 0], [], []>} : vector<8x128xbf16>, vector<16x128xbf16>, vector<8x16xf32> -> vector<8x16xf32>
    %cst_5 = arith.constant dense<0xFF800000> : vector<8xf32>
    %5 = vector.multi_reduction <maximumf>, %4, %cst_5 [1] : vector<8x16xf32> to vector<8xf32>
    %6 = vector.shape_cast %5 : vector<8xf32> to vector<8x1xf32>
    %7 = vector.broadcast %6 : vector<8x1xf32> to vector<8x16xf32>
    %8 = arith.subf %4, %7 : vector<8x16xf32>
    %9 = math.exp %8 : vector<8x16xf32>
    %cst_6 = arith.constant dense<0.000000e+00> : vector<8xf32>
    %10 = vector.multi_reduction <add>, %9, %cst_6 [1] : vector<8x16xf32> to vector<8xf32>
    %11 = vector.shape_cast %10 : vector<8xf32> to vector<8x1xf32>
    %12 = arith.truncf %9 : vector<8x16xf32> to vector<8x16xbf16>
    %c0_7 = arith.constant 0 : index
    %c0_8 = arith.constant 0 : index
    %c0_9 = arith.constant 0 : index
    %13 = vector.load %arg4[%c0_7, %c0_8, %c0_9] : memref<1x16x128xbf16, #tpu.memory_space<vmem>>, vector<1x16x128xbf16>
    %14 = vector.shape_cast %13 : vector<1x16x128xbf16> to vector<16x128xbf16>
    %cst_10 = arith.constant dense<0.000000e+00> : vector<8x128xf32>
    %15 = tpu.matmul %12, %14, %cst_10 {dimension_numbers = #tpu.dot_dimension_numbers<[1], [0], [0], [1], [0, 0, 1, 1], [], []>} : vector<8x16xbf16>, vector<16x128xbf16>, vector<8x128xf32> -> vector<8x128xf32>
    %cst_11 = arith.constant 1.000000e+00 : f32
    %16 = vector.broadcast %cst_11 : f32 to vector<8x1xf32>
    %17 = arith.divf %16, %11 : vector<8x1xf32>
    %18 = vector.broadcast %17 : vector<8x1xf32> to vector<8x128xf32>
    %19 = arith.mulf %15, %18 : vector<8x128xf32>
    %20 = arith.truncf %19 : vector<8x128xf32> to vector<8x128xbf16>
    %c0_12 = arith.constant 0 : index
    %c0_13 = arith.constant 0 : index
    %c0_14 = arith.constant 0 : index
    %21 = vector.load %arg5[%c0_12, %c0_13, %c0_14] : memref<1x8x128xbf16, #tpu.memory_space<vmem>>, vector<1x8x128xbf16>
    %22 = vector.shape_cast %21 : vector<1x8x128xbf16> to vector<8x128xbf16>
    %23 = vector.shape_cast %20 : vector<8x128xbf16> to vector<1x8x128xbf16>
    tpu.vector_store %arg5[%c0_12, %c0_13, %c0_14], %23 {strides = array<i32>} : memref<1x8x128xbf16, #tpu.memory_space<vmem>>, vector<1x8x128xbf16>,
    return
  }
  func.func @transform_0(%arg0: i32, %arg1: i32) -> (i32, i32, i32) {
    %c0_i32 = arith.constant 0 : i32
    %c0_i32_0 = arith.constant 0 : i32
    return %arg0, %c0_i32, %arg1 : i32, i32, i32
  }
  func.func @transform_1(%arg0: i32, %arg1: i32) -> (i32, i32, i32) {
    %c0_i32 = arith.constant 0 : i32
    %c0_i32_0 = arith.constant 0 : i32
    return %arg0, %c0_i32, %arg1 : i32, i32, i32
  }
  func.func @transform_2(%arg0: i32, %arg1: i32) -> (i32, i32, i32) {
    %c0_i32 = arith.constant 0 : i32
    %c0_i32_0 = arith.constant 0 : i32
    return %arg0, %c0_i32, %arg1 : i32, i32, i32
  }
  func.func @transform_3(%arg0: i32, %arg1: i32) -> (i32, i32, i32) {
    %c0_i32 = arith.constant 0 : i32
    %c0_i32_0 = arith.constant 0 : i32
    return %arg0, %c0_i32, %arg1 : i32, i32, i32
  }
}

module attributes {stable_mosaic.version = 11 : i64} {
  func.func @_chains_kernel(%arg0: i32, %arg1: memref<16x256xbf16, #tpu.memory_space<vmem>>, %arg2: memref<256x192xbf16, #tpu.memory_space<vmem>>, %arg3: memref<1x192xf32, #tpu.memory_space<vmem>>, %arg4: memref<192x192xbf16, #tpu.memory_space<vmem>>, %arg5: memref<1x192xf32, #tpu.memory_space<vmem>>, %arg6: memref<1x192xf32, #tpu.memory_space<vmem>>, %arg7: memref<1x192xf32, #tpu.memory_space<vmem>>, %arg8: memref<16x192xf32, #tpu.memory_space<vmem>>, %arg9: memref<16x192xf32, #tpu.memory_space<vmem>>) attributes {dimension_semantics = [#tpu.dimension_semantics<parallel>], iteration_bounds = array<i64: 1>, scalar_prefetch = 0 : i64, scratch_operands = 0 : i64, tpu.core_type = #tpu.core_type<tc>, window_params = [{transform_indices = @transform_0, window_bounds = array<i64: 16, 256>}, {pipeline_mode = #tpu.pipeline_mode<synchronous>, transform_indices = @transform_1, window_bounds = array<i64: 256, 192>}, {pipeline_mode = #tpu.pipeline_mode<synchronous>, transform_indices = @transform_2, window_bounds = array<i64: 1, 192>}, {pipeline_mode = #tpu.pipeline_mode<synchronous>, transform_indices = @transform_3, window_bounds = array<i64: 192, 192>}, {pipeline_mode = #tpu.pipeline_mode<synchronous>, transform_indices = @transform_4, window_bounds = array<i64: 1, 192>}, {pipeline_mode = #tpu.pipeline_mode<synchronous>, transform_indices = @transform_5, window_bounds = array<i64: 1, 192>}, {pipeline_mode = #tpu.pipeline_mode<synchronous>, transform_indices = @transform_6, window_bounds = array<i64: 1, 192>}, {transform_indices = @transform_7, window_bounds = array<i64: 16, 192>}, {transform_indices = @transform_8, window_bounds = array<i64: 16, 192>}]} {
    %c0 = arith.constant 0 : index
    %c0_0 = arith.constant 0 : index
    %0 = vector.load %arg1[%c0, %c0_0] : memref<16x256xbf16, #tpu.memory_space<vmem>>, vector<16x256xbf16>
    %c0_1 = arith.constant 0 : index
    %c0_2 = arith.constant 0 : index
    %1 = vector.load %arg2[%c0_1, %c0_2] : memref<256x192xbf16, #tpu.memory_space<vmem>>, vector<256x192xbf16>
    %cst = arith.constant dense<0.000000e+00> : vector<16x192xf32>
    %2 = tpu.matmul %0, %1, %cst {dimension_numbers = #tpu.dot_dimension_numbers<[1], [0], [0], [1], [0, 0, 1, 1], [], []>} : vector<16x256xbf16>, vector<256x192xbf16>, vector<16x192xf32> -> vector<16x192xf32>
    %c0_3 = arith.constant 0 : index
    %c0_4 = arith.constant 0 : index
    %3 = vector.load %arg3[%c0_3, %c0_4] : memref<1x192xf32, #tpu.memory_space<vmem>>, vector<1x192xf32>
    %4 = vector.broadcast %3 : vector<1x192xf32> to vector<16x192xf32>
    %5 = arith.addf %2, %4 : vector<16x192xf32>
    %6 = arith.truncf %5 : vector<16x192xf32> to vector<16x192xbf16>
    %c0_5 = arith.constant 0 : index
    %c0_6 = arith.constant 0 : index
    %7 = vector.load %arg4[%c0_5, %c0_6] : memref<192x192xbf16, #tpu.memory_space<vmem>>, vector<192x192xbf16>
    %cst_7 = arith.constant dense<0.000000e+00> : vector<16x192xf32>
    %8 = tpu.matmul %6, %7, %cst_7 {dimension_numbers = #tpu.dot_dimension_numbers<[1], [0], [0], [1], [0, 0, 1, 1], [], []>} : vector<16x192xbf16>, vector<192x192xbf16>, vector<16x192xf32> -> vector<16x192xf32>
    %c0_8 = arith.constant 0 : index
    %c0_9 = arith.constant 0 : index
    %9 = vector.load %arg5[%c0_8, %c0_9] : memref<1x192xf32, #tpu.memory_space<vmem>>, vector<1x192xf32>
    %10 = vector.broadcast %9 : vector<1x192xf32> to vector<16x192xf32>
    %11 = arith.addf %8, %10 : vector<16x192xf32>
    %c0_10 = arith.constant 0 : index
    %c0_11 = arith.constant 0 : index
    %12 = vector.load %arg8[%c0_10, %c0_11] : memref<16x192xf32, #tpu.memory_space<vmem>>, vector<16x192xf32>
    %13 = arith.addf %11, %12 : vector<16x192xf32>
    %c0_12 = arith.constant 0 : index
    %c0_13 = arith.constant 0 : index
    %14 = vector.load %arg6[%c0_12, %c0_13] : memref<1x192xf32, #tpu.memory_space<vmem>>, vector<1x192xf32>
    %c0_14 = arith.constant 0 : index
    %c0_15 = arith.constant 0 : index
    %15 = vector.load %arg7[%c0_14, %c0_15] : memref<1x192xf32, #tpu.memory_space<vmem>>, vector<1x192xf32>
    %cst_16 = arith.constant dense<0.000000e+00> : vector<16xf32>
    %16 = vector.multi_reduction <add>, %13, %cst_16 [1] : vector<16x192xf32> to vector<16xf32>
    %17 = vector.shape_cast %16 : vector<16xf32> to vector<16x1xf32>
    %cst_17 = arith.constant 1.920000e+02 : f32
    %18 = vector.broadcast %cst_17 : f32 to vector<16x1xf32>
    %19 = arith.divf %17, %18 : vector<16x1xf32>
    %20 = vector.broadcast %19 : vector<16x1xf32> to vector<16x192xf32>
    %21 = arith.subf %13, %20 : vector<16x192xf32>
    %22 = arith.mulf %21, %21 : vector<16x192xf32>
    %cst_18 = arith.constant dense<0.000000e+00> : vector<16xf32>
    %23 = vector.multi_reduction <add>, %22, %cst_18 [1] : vector<16x192xf32> to vector<16xf32>
    %24 = vector.shape_cast %23 : vector<16xf32> to vector<16x1xf32>
    %cst_19 = arith.constant 1.920000e+02 : f32
    %25 = vector.broadcast %cst_19 : f32 to vector<16x1xf32>
    %26 = arith.divf %24, %25 : vector<16x1xf32>
    %27 = vector.broadcast %19 : vector<16x1xf32> to vector<16x192xf32>
    %28 = arith.subf %13, %27 : vector<16x192xf32>
    %cst_20 = arith.constant 9.99999997E-7 : f32
    %29 = vector.broadcast %cst_20 : f32 to vector<16x1xf32>
    %30 = arith.addf %26, %29 : vector<16x1xf32>
    %31 = math.rsqrt %30 : vector<16x1xf32>
    %32 = vector.broadcast %31 : vector<16x1xf32> to vector<16x192xf32>
    %33 = arith.mulf %28, %32 : vector<16x192xf32>
    %34 = vector.broadcast %14 : vector<1x192xf32> to vector<16x192xf32>
    %35 = arith.mulf %33, %34 : vector<16x192xf32>
    %36 = vector.broadcast %15 : vector<1x192xf32> to vector<16x192xf32>
    %37 = arith.addf %35, %36 : vector<16x192xf32>
    %c0_21 = arith.constant 0 : index
    %c0_22 = arith.constant 0 : index
    %38 = vector.load %arg9[%c0_21, %c0_22] : memref<16x192xf32, #tpu.memory_space<vmem>>, vector<16x192xf32>
    tpu.vector_store %arg9[%c0_21, %c0_22], %37 {strides = array<i32>} : memref<16x192xf32, #tpu.memory_space<vmem>>, vector<16x192xf32>,
    return
  }
  func.func @transform_0(%arg0: i32) -> (i32, i32) {
    %c0_i32 = arith.constant 0 : i32
    %c0_i32_0 = arith.constant 0 : i32
    return %arg0, %c0_i32 : i32, i32
  }
  func.func @transform_1(%arg0: i32) -> (i32, i32) {
    %c0_i32 = arith.constant 0 : i32
    %c0_i32_0 = arith.constant 0 : i32
    %c0_i32_1 = arith.constant 0 : i32
    return %c0_i32, %c0_i32_0 : i32, i32
  }
  func.func @transform_2(%arg0: i32) -> (i32, i32) {
    %c0_i32 = arith.constant 0 : i32
    %c0_i32_0 = arith.constant 0 : i32
    %c0_i32_1 = arith.constant 0 : i32
    return %c0_i32, %c0_i32_0 : i32, i32
  }
  func.func @transform_3(%arg0: i32) -> (i32, i32) {
    %c0_i32 = arith.constant 0 : i32
    %c0_i32_0 = arith.constant 0 : i32
    %c0_i32_1 = arith.constant 0 : i32
    return %c0_i32, %c0_i32_0 : i32, i32
  }
  func.func @transform_4(%arg0: i32) -> (i32, i32) {
    %c0_i32 = arith.constant 0 : i32
    %c0_i32_0 = arith.constant 0 : i32
    %c0_i32_1 = arith.constant 0 : i32
    return %c0_i32, %c0_i32_0 : i32, i32
  }
  func.func @transform_5(%arg0: i32) -> (i32, i32) {
    %c0_i32 = arith.constant 0 : i32
    %c0_i32_0 = arith.constant 0 : i32
    %c0_i32_1 = arith.constant 0 : i32
    return %c0_i32, %c0_i32_0 : i32, i32
  }
  func.func @transform_6(%arg0: i32) -> (i32, i32) {
    %c0_i32 = arith.constant 0 : i32
    %c0_i32_0 = arith.constant 0 : i32
    %c0_i32_1 = arith.constant 0 : i32
    return %c0_i32, %c0_i32_0 : i32, i32
  }
  func.func @transform_7(%arg0: i32) -> (i32, i32) {
    %c0_i32 = arith.constant 0 : i32
    %c0_i32_0 = arith.constant 0 : i32
    return %arg0, %c0_i32 : i32, i32
  }
  func.func @transform_8(%arg0: i32) -> (i32, i32) {
    %c0_i32 = arith.constant 0 : i32
    %c0_i32_0 = arith.constant 0 : i32
    return %arg0, %c0_i32 : i32, i32
  }
}

</mosaic_0001>

<bundles_post_ra>
// kernel: ffm_forward.4
= control target key start
LH: loop header
LB: loop body
LE: loop exit
PB: predicated region body
PF: predicated region fallthrough
CT: control target
= control target key end

     0   :  { %11 = vsyncpa [#allocation3], 0  ;;  %s824_s0 = inlined_call_operand.vmem [shape: bf16[16,192], index: 0, kind: input, shape index: {}]   ;;  %s825_s1 = inlined_call_operand.hbm [shape: bf16[192,192], index: 1, kind: input, shape index: {}]   ;;  %s826_s2 = inlined_call_operand.vmem [shape: f32[1,192], index: 2, kind: input, shape index: {}]   ;;  %s827_s3 = inlined_call_operand.vmem [shape: f32[1,192], index: 3, kind: input, shape index: {}]   ;;  %s828_s4 = inlined_call_operand.hbm [shape: bf16[192,256], index: 4, kind: input, shape index: {}]   ;;  %s829_s5 = inlined_call_operand.vmem [shape: f32[1,256], index: 5, kind: input, shape index: {}]   ;;  %s830_s6 = inlined_call_operand.vmem [shape: bf16[16,256], index: 6, kind: output, shape index: {}]  }
   0x1   :  { %12 = vsyncpa [#allocation5], 0  ;;  %s734_s21 = smov [#allocation2]   ;;  %s686_s25 = scalar_lea.hbm %s825_s1, 3072 }
   0x2   :  { %s20_s22 = sshll.u32 %s734_s21, 4  ;;  %p687_p0 = scmp.ne.s32.totalorder %s825_s1, %s686_s25  ;;  %s21_s22 = int_to_ptr.vmem [resolvable:$true] %s20_s22 }
   0x3   :  { %p690_p1 = scmp.lt.u32.totalorder %s686_s25, %s825_s1 }
   0x5   :  { %p692_p2 = pnand %p690_p1, %p687_p0 }
   0x7   :  { %695 = shalt.err (!%p692_p2)
}
   0x8   :  { %s696_s30 = scalar_lea.vmem %s21_s22, 3072  ;;  %p701_p4 = scmp.lt.s32.totalorder %s21_s22, %s21_s22 }
   0x9   :  { %p697_p3 = scmp.ne.s32.totalorder %s21_s22, %s696_s30  ;;  %p702_p5 = scmp.lt.s32.totalorder %s696_s30, %s696_s30 }
   0xb   :  { %p703_p6 = por %p702_p5, %p701_p4 }
   0xd   :  { %p704_p7 = pnand %p703_p6, %p697_p3 }
   0xf   :  { %707 = shalt.err (!%p704_p7)
}
  0x10   :  { %s735_s7 = smov 128   ;;  %s736_s8 = smov 8  }
  0x11   :  { %26 = dma.hbm_to_vmem [thread:$0]  %s825_s1, 3072, %s21_s22, [#allocation3], %s735_s7, %s735_s7, %s736_s8  }
  0x12   :  { %s737_s11 = smov [#allocation4]   ;;  %s708_s15 = scalar_lea.hbm %s828_s4, 3072 }
  0x13   :  { %s36_s12 = sshll.u32 %s737_s11, 4  ;;  %p709_p8 = scmp.ne.s32.totalorder %s828_s4, %s708_s15  ;;  %s37_s12 = int_to_ptr.vmem [resolvable:$true] %s36_s12 }
  0x14   :  { %p712_p9 = scmp.lt.u32.totalorder %s708_s15, %s828_s4 }
  0x16   :  { %p714_p10 = pnand %p712_p9, %p709_p8 }
  0x18   :  { %717 = shalt.err (!%p714_p10)
}
  0x19   :  { %s718_s20 = scalar_lea.vmem %s37_s12, 3072  ;;  %p723_p12 = scmp.lt.s32.totalorder %s37_s12, %s37_s12 }
  0x1a   :  { %p719_p11 = scmp.ne.s32.totalorder %s37_s12, %s718_s20  ;;  %p724_p13 = scmp.lt.s32.totalorder %s718_s20, %s718_s20 }
  0x1c   :  { %p725_p0 = por %p724_p13, %p723_p12 }
  0x1e   :  { %p726_p1 = pnand %p725_p0, %p719_p11 }
  0x20   :  { %729 = shalt.err (!%p726_p1)
}
  0x21   :  { %42 = dma.hbm_to_vmem [thread:$0]  %s828_s4, 3072, %s37_s12, [#allocation5], %s735_s7, %s735_s7, %s736_s8  }
  0x22   :  { %730 = dma.done.wait [#allocation3], 3072  }
  0x23   :  { %731 = vsyncadd [#allocation3], 4294964224 }
  0x24   :  { %732 = dma.done.wait [#allocation5], 3072  }
  0x25   :  { %733 = vsyncadd [#allocation5], 4294964224  ;;  %v607_v0 = vld [vmem:[#allocation2 + $0x4] ss:$8 sps:$4 sm:$0xff]   ;;  %v609_v1 = vld [vmem:[#allocation2] ss:$8 sps:$4 sm:$0xff]  }
  0x26   :  { %211 = vmatprep.subr.bf16.mxu0 %v607_v0  ;;  %v610_v2 = vld [vmem:[#allocation2 + $0x14] ss:$8 sps:$4 sm:$0xff]   ;;  %v612_v3 = vld [vmem:[#allocation2 + $0x10] ss:$8 sps:$4 sm:$0xff]   ;;  %v613_v4 = vld [vmem:[#allocation2 + $0x24] ss:$8 sps:$4 sm:$0xff]  }
  0x27   :  { %212 = vmatpush1.bf16.msra.mxu0 %v609_v1  ;;  %v615_v5 = vld [vmem:[#allocation2 + $0x20] ss:$8 sps:$4 sm:$0xff]   ;;  %v616_v6 = vld [vmem:[#allocation2 + $0x34] ss:$8 sps:$4 sm:$0xff]   ;;  %v618_v7 = vld [vmem:[#allocation2 + $0x30] ss:$8 sps:$4 sm:$0xff]  }
  0x28   :  { %213 = vmatprep.subr.bf16.mxu0 %v610_v2  ;;  %v619_v8 = vld [vmem:[#allocation2 + $0x44] ss:$8 sps:$4 sm:$0xff]   ;;  %v621_v9 = vld [vmem:[#allocation2 + $0x40] ss:$8 sps:$4 sm:$0xff]   ;;  %v622_v10 = vld [vmem:[#allocation2 + $0x54] ss:$8 sps:$4 sm:$0xff]  }
  0x29   :  { %vm207_vm0 = vcmask 523264   ;;  %v624_v11 = vld [vmem:[#allocation2 + $0x50] ss:$8 sps:$4 sm:$0xff]   ;;  %v645_v12 = vld [vmem:[%s824_s0 + $0x4] ss:$8 sps:$4 sm:$0xff]  }
  0x2a   :  { %v625_v13 = vld [vmem:[#allocation2 + $0x64] ss:$8 sps:$4 sm:$0xff]   ;;  %573 = vmatprep.mubr.msk.bf16.mxu0 %vm207_vm0, %v645_v12  ;;  %v627_v14 = vld [vmem:[#allocation2 + $0x60] ss:$8 sps:$4 sm:$0xff]   ;;  %v628_v15 = vld [vmem:[#allocation2 + $0x74] ss:$8 sps:$4 sm:$0xff]  }
  0x2b   :  { %214 = vmatpush1.bf16.msra.mxu0 %v612_v3  ;;  %v630_v16 = vld [vmem:[#allocation2 + $0x70] ss:$8 sps:$4 sm:$0xff]   ;;  %v631_v17 = vld [vmem:[#allocation2 + $0x84] ss:$8 sps:$4 sm:$0xff]   ;;  %v633_v18 = vld [vmem:[#allocation2 + $0x80] ss:$8 sps:$4 sm:$0xff]  }
  0x2c   :  { %215 = vmatprep.subr.bf16.mxu0 %v613_v4  ;;  %v634_v19 = vld [vmem:[#allocation2 + $0x94] ss:$8 sps:$4 sm:$0xff]   ;;  %v636_v20 = vld [vmem:[#allocation2 + $0x90] ss:$8 sps:$4 sm:$0xff]   ;;  %v637_v21 = vld [vmem:[#allocation2 + $0xa4] ss:$8 sps:$4 sm:$0xff]  }
  0x2d   :  { %v639_v22 = vld [vmem:[#allocation2 + $0xa0] ss:$8 sps:$4 sm:$0xff]   ;;  %v640_v23 = vld [vmem:[#allocation2 + $0xb4] ss:$8 sps:$4 sm:$0xff]   ;;  %v642_v24 = vld [vmem:[#allocation2 + $0xb0] ss:$8 sps:$4 sm:$0xff]  }
  0x2e   :  { %v643_v25 = vld [vmem:[%s824_s0] ss:$8 sps:$4 sm:$0xff]   ;;  %v646_v34 = vld [vmem:[#allocation4 + $0x4] ss:$8 sps:$4 sm:$0xff]   ;;  %v649_v36 = vld [vmem:[#allocation4 + $0x14] ss:$8 sps:$4 sm:$0xff]  }
  0x2f   :  { %216 = vmatpush1.bf16.msra.mxu0 %v615_v5  ;;  %v648_v35 = vld [vmem:[#allocation4] ss:$8 sps:$4 sm:$0xff]   ;;  %484 = vmatprep.subr.bf16.mxu1 %v646_v34  ;;  %v651_v37 = vld [vmem:[#allocation4 + $0x10] ss:$8 sps:$4 sm:$0xff]   ;;  %v652_v38 = vld [vmem:[#allocation4 + $0x24] ss:$8 sps:$4 sm:$0xff]  }
  0x30   :  { %217 = vmatprep.subr.bf16.mxu0 %v616_v6  ;;  %485 = vmatpush1.bf16.msra.mxu1 %v648_v35  ;;  %v654_v39 = vld [vmem:[#allocation4 + $0x20] ss:$8 sps:$4 sm:$0xff]   ;;  %v655_v40 = vld [vmem:[#allocation4 + $0x34] ss:$8 sps:$4 sm:$0xff]   ;;  %v657_v41 = vld [vmem:[#allocation4 + $0x30] ss:$8 sps:$4 sm:$0xff]  }
  0x31   :  { %486 = vmatprep.subr.bf16.mxu1 %v649_v36  ;;  %v658_v42 = vld [vmem:[#allocation4 + $0x44] ss:$8 sps:$4 sm:$0xff]   ;;  %v660_v43 = vld [vmem:[#allocation4 + $0x40] ss:$8 sps:$4 sm:$0xff]   ;;  %v661_v60 = vld [vmem:[#allocation4 + $0x54] ss:$8 sps:$4 sm:$0xff]  }
  0x32   :  { %v663_v61 = vld [vmem:[#allocation4 + $0x50] ss:$8 sps:$4 sm:$0xff]   ;;  %v664_v62 = vld [vmem:[#allocation4 + $0x64] ss:$8 sps:$4 sm:$0xff]   ;;  %v666_v63 = vld [vmem:[#allocation4 + $0x60] ss:$8 sps:$4 sm:$0xff]  }
  0x33   :  { %218 = vmatpush1.bf16.msra.mxu0 %v618_v7  ;;  %v667_v0 = vld [vmem:[#allocation4 + $0x74] ss:$8 sps:$4 sm:$0xff]   ;;  %v669_v1 = vld [vmem:[#allocation4 + $0x70] ss:$8 sps:$4 sm:$0xff]   ;;  %v670_v2 = vld [vmem:[#allocation4 + $0x84] ss:$8 sps:$4 sm:$0xff]  }
  0x34   :  { %219 = vmatprep.subr.bf16.mxu0 %v619_v8  ;;  %487 = vmatpush1.bf16.msra.mxu1 %v651_v37  ;;  %v672_v3 = vld [vmem:[#allocation4 + $0x80] ss:$8 sps:$4 sm:$0xff]   ;;  %v673_v4 = vld [vmem:[#allocation4 + $0x94] ss:$8 sps:$4 sm:$0xff]   ;;  %v675_v5 = vld [vmem:[#allocation4 + $0x90] ss:$8 sps:$4 sm:$0xff]  }
  0x35   :  { %488 = vmatprep.subr.bf16.mxu1 %v652_v38  ;;  %v676_v6 = vld [vmem:[#allocation4 + $0xa4] ss:$8 sps:$4 sm:$0xff]   ;;  %v678_v7 = vld [vmem:[#allocation4 + $0xa0] ss:$8 sps:$4 sm:$0xff]   ;;  %v679_v8 = vld [vmem:[#allocation4 + $0xb4] ss:$8 sps:$4 sm:$0xff]  }
  0x37   :  { %220 = vmatpush1.bf16.msra.mxu0 %v621_v9  ;;  %v681_v9 = vld [vmem:[#allocation4 + $0xb0] ss:$8 sps:$4 sm:$0xff]  }
  0x38   :  { %221 = vmatprep.subr.bf16.mxu0 %v622_v10  ;;  %489 = vmatpush1.bf16.msra.mxu1 %v654_v39 }
  0x39   :  { %490 = vmatprep.subr.bf16.mxu1 %v655_v40 }
  0x3b   :  { %222 = vmatpush1.bf16.msra.mxu0 %v624_v11 }
  0x3c   :  { %223 = vmatprep.subr.bf16.mxu0 %v625_v13  ;;  %491 = vmatpush1.bf16.msra.mxu1 %v657_v41 }
  0x3d   :  { %492 = vmatprep.subr.bf16.mxu1 %v658_v42  ;;  %v349_v42 = vld [vmem:[%s829_s5] sm:$0x3] }
  0x3f   :  { %224 = vmatpush1.bf16.msra.mxu0 %v627_v14  ;;  %v294_v14 = vlaneseq }
  0x40   :  { %225 = vmatprep.subr.bf16.mxu0 %v628_v15  ;;  %493 = vmatpush1.bf16.msra.mxu1 %v660_v43 }
  0x41   :  { %494 = vmatprep.subr.bf16.mxu1 %v661_v60 }
  0x43   :  { %226 = vmatpush1.bf16.msra.mxu0 %v630_v16 }
  0x44   :  { %227 = vmatprep.subr.bf16.mxu0 %v631_v17  ;;  %495 = vmatpush1.bf16.msra.mxu1 %v663_v61  ;;  %v295_v17 = vshrl.u32 %v294_v14, 7 }
  0x45   :  { %496 = vmatprep.subr.bf16.mxu1 %v664_v62 }
  0x47   :  { %228 = vmatpush1.bf16.msra.mxu0 %v633_v18  ;;  %v296_v18 = vsub.s32 0, %v295_v17 }
  0x48   :  { %229 = vmatprep.subr.bf16.mxu0 %v634_v19  ;;  %497 = vmatpush1.bf16.msra.mxu1 %v666_v63  ;;  %v300_v19 = vsub.s32 1, %v295_v17 }
  0x49   :  { %498 = vmatprep.subr.bf16.mxu1 %v667_v0  ;;  %v354_v43 = vrot.slane %v349_v42, %v296_v18 }
  0x4b   :  { %230 = vmatpush1.bf16.msra.mxu0 %v636_v20  ;;  %v254_v20 = vld [vmem:[%s826_s2] sm:$0x3] }
  0x4c   :  { %231 = vmatprep.subr.bf16.mxu0 %v637_v21  ;;  %499 = vmatpush1.bf16.msra.mxu1 %v669_v1 }
  0x4d   :  { %500 = vmatprep.subr.bf16.mxu1 %v670_v2 }
  0x4f   :  { %232 = vmatpush1.bf16.msra.mxu0 %v639_v22  ;;  %v255_v22 = vld [vmem:[%s827_s3] sm:$0x3] }
  0x50   :  { %233 = vmatprep.subr.bf16.mxu0 %v640_v23  ;;  %501 = vmatpush1.bf16.msra.mxu1 %v672_v3 }
  0x51   :  { %502 = vmatprep.subr.bf16.mxu1 %v673_v4 }
  0x53   :  { %234 = vmatpush1.bf16.msra.mxu0 %v642_v24  ;;  %v297_v24 = vrot.slane %v254_v20, %v296_v18 }
  0x54   :  { %503 = vmatpush1.bf16.msra.mxu1 %v675_v5 }
  0x55   :  { %504 = vmatprep.subr.bf16.mxu1 %v676_v6 }
  0x56   :  { %244 = vmatmul.mubr.bf16.vlgmr.msra.gmra.mrb[0].mxu0 %v643_v25  ;;  %v301_v25 = vrot.slane %v254_v20, %v300_v19 }
  0x58   :  { %505 = vmatpush1.bf16.msra.mxu1 %v678_v7 }
  0x59   :  { %506 = vmatprep.subr.bf16.mxu1 %v679_v8 }
  0x5c   :  { %507 = vmatpush1.bf16.msra.mxu1 %v681_v9 }
 0x129   :  { %v245_v26 = vpop.f32.mrb[0].mxu0 }
 0x12a   :  { %v247_v27 = vpop.f32.mrb[1].mxu0 }
 0x12b   :  { %v249_v28 = vpop.f32.mrb[2].mxu0  ;;  %v256_v29 = vsel %vm207_vm0, %v247_v27, 0.0 }
 0x12c   :  { %v251_v30 = vpop.f32.mrb[3].mxu0  ;;  %v257_v31 = vadd.f32 %v256_v29, %v245_v26  ;;  %v316_v29 = vrot.slane %v255_v22, %v300_v19 }
 0x12d   :  { %v260_v32 = vsel %vm207_vm0, %v251_v30, 0.0 }
 0x12e   :  { %258 = vadd.xlane.f32.xlu0 %v257_v31  ;;  %v261_v33 = vadd.f32 %v260_v32, %v249_v28 }
 0x132   :  { %262 = vadd.xlane.f32.xlu0 %v261_v33 }
 0x1bb   :  { %v259_v44 = vpop.xlane.xlu0 %258 }
 0x1bc   :  { %v265_v45 = vmul.f32 0.0052083335, %v259_v44  ;;  %v358_v44 = vrot.slane %v349_v42, %v300_v19 }
 0x1be   :  { %v267_v46 = vsub.f32 %v245_v26, %v265_v45  ;;  %v268_v47 = vsub.f32 %v247_v27, %v265_v45 }
 0x1bf   :  { %v263_v48 = vpop.xlane.xlu0 %262 }
 0x1c0   :  { %v266_v49 = vmul.f32 0.0052083335, %v263_v48  ;;  %v271_v50 = vmul.f32 %v267_v46, %v267_v46  ;;  %v272_v51 = vmul.f32 %v268_v47, %v268_v47 }
 0x1c2   :  { %v269_v52 = vsub.f32 %v249_v28, %v266_v49  ;;  %v270_v53 = vsub.f32 %v251_v30, %v266_v49  ;;  %v275_v54 = vsel %vm207_vm0, %v272_v51, 0.0  ;;  %v312_v28 = vrot.slane %v255_v22, %v296_v18 }
 0x1c3   :  { %v276_v55 = vadd.f32 %v275_v54, %v271_v50 }
 0x1c4   :  { %v274_v56 = vmul.f32 %v270_v53, %v270_v53  ;;  %v273_v57 = vmul.f32 %v269_v52, %v269_v52 }
 0x1c5   :  { %277 = vadd.xlane.f32.xlu1 %v276_v55 }
 0x1c6   :  { %v279_v58 = vsel %vm207_vm0, %v274_v56, 0.0 }
 0x1c7   :  { %v280_v59 = vadd.f32 %v279_v58, %v273_v57 }
 0x1c9   :  { %281 = vadd.xlane.f32.xlu1 %v280_v59 }
 0x252   :  { %v278_v10 = vpop.xlane.xlu1 %277 }
 0x253   :  { %v283_v11 = vmul.f32 0.0052083335, %v278_v10 }
 0x255   :  { %v285_v12 = vadd.f32 1e-06, %v283_v11 }
 0x256   :  { %v282_v13 = vpop.xlane.xlu1 %281 }
 0x257   :  { %682 = vrsqrt.f32 %v285_v12  ;;  %v284_v15 = vmul.f32 0.0052083335, %v282_v13 }
 0x259   :  { %v286_v16 = vadd.f32 1e-06, %v284_v15 }
 0x25b   :  { %684 = vrsqrt.f32 %v286_v16 }
 0x261   :  { %v683_v21 = vpop.eup %682 }
 0x262   :  { %v290_v23 = vmul.f32 %v683_v21, %v268_v47  ;;  %v289_v26 = vmul.f32 %v683_v21, %v267_v46 }
 0x264   :  { %v305_v31 = vmul.f32 %v301_v25, %v290_v23  ;;  %v304_v33 = vmul.f32 %v297_v24, %v289_v26 }
 0x265   :  { %v685_v27 = vpop.eup %684 }
 0x266   :  { %v292_v30 = vmul.f32 %v685_v27, %v270_v53  ;;  %v291_v32 = vmul.f32 %v685_v27, %v269_v52  ;;  %v320_v36 = vadd.f32 %v316_v29, %v305_v31  ;;  %v319_v38 = vadd.f32 %v312_v28, %v304_v33 }
 0x268   :  { %v307_v34 = vmul.f32 %v301_v25, %v292_v30  ;;  %v306_v35 = vmul.f32 %v297_v24, %v291_v32 }
 0x26a   :  { %v322_v37 = vadd.f32 %v316_v29, %v307_v34  ;;  %v321_v39 = vadd.f32 %v312_v28, %v306_v35 }
 0x26c   :  { %v324_v40 = vpack.c.bf16 %v322_v37, %v320_v36  ;;  %v323_v41 = vpack.c.bf16 %v321_v39, %v319_v38 }
 0x26e   :  { %598 = vmatprep.mubr.msk.bf16.mxu1 %vm207_vm0, %v324_v40 }
 0x26f   :  { %517 = vmatmul.mubr.bf16.vlgmr.msra.gmra.mrb[0].mxu1 %v323_v41 }
 0x342   :  { %v518_v45 = vpop.f32.mrb[0].mxu1 }
 0x343   :  { %v519_v46 = vadd.f32 %v518_v45, %v354_v43  ;;  %v520_v47 = vpop.f32.mrb[1].mxu1 }
 0x344   :  { %v521_v48 = vadd.f32 %v520_v47, %v358_v44  ;;  %v522_v49 = vpop.f32.mrb[2].mxu1 }
 0x345   :  { %v523_v50 = vadd.f32 %v522_v49, %v354_v43  ;;  %v524_v51 = vpop.f32.mrb[3].mxu1 }
 0x346   :  { %v601_v52 = vpack.c.bf16 %v521_v48, %v519_v46  ;;  %v525_v53 = vadd.f32 %v524_v51, %v358_v44 }
 0x348   :  { %539 = vst [vmem:[%s830_s6] sm:$0xff] %v601_v52  ;;  %v602_v54 = vpack.c.bf16 %v525_v53, %v523_v50 }
 0x34a   :  { %540 = vst [vmem:[%s830_s6 + $0x8] sm:$0xff] %v602_v54 }
 0x34b   :  { %545 = vsyncpa [#allocation3], 1 }
 0x34c   :  { %546 = vsyncpa [#allocation5], 1 }

// kernel: ffm_forward.6
= control target key start
LH: loop header
LB: loop body
LE: loop exit
PB: predicated region body
PF: predicated region fallthrough
CT: control target
= control target key end

     0   :  { %s763_s12 = smov 0   ;;  %s765_s13 = smov 0   ;;  %s881_s0 = inlined_call_operand.vmem [shape: bf16[2,8,256], index: 0, kind: input, shape index: {}]   ;;  %s882_s1 = inlined_call_operand.vmem [shape: bf16[2,16,256], index: 1, kind: input, shape index: {}]   ;;  %s883_s2 = inlined_call_operand.vmem [shape: bf16[2,16,256], index: 2, kind: input, shape index: {}]   ;;  %s884_s3 = inlined_call_operand.vmem [shape: bf16[2,8,256], index: 3, kind: output, shape index: {}]  }
   0x1   :  { %s767_s14 = smov 0   ;;  %s769_s15 = smov 0  }
   0x2   :  { %s771_s16 = smov 0   ;;  %s773_s17 = smov 0  }
   0x3   :  { %s775_s18 = smov 0  }
   0x4 LB: > { %s22_s19 = sadd.s32 1, %s731_s16  ;;  %s25_s20 = sadd.s32 1, %s735_s17  ;;  %s739_s18 = sphi %s775_s18, %s13_s18   ;;  %s735_s17 = sphi %s773_s17, %s891_s17   ;;  %s731_s16 = sphi %s771_s16, %s890_s16   ;;  %s727_s15 = sphi %s769_s15, %s889_s15   ;;  %s723_s14 = sphi %s767_s14, %s888_s14   ;;  %s719_s13 = sphi %s765_s13, %s887_s13   ;;  %s715_s12 = sphi %s763_s12, %s886_s12  }
   0x5   : > { %p23_p0 = scmp.ge.s32.totalorder %s22_s19, 2  ;;  %p69_p1 = scmp.ne.s32.totalorder %s719_s13, %s715_s12 }
   0x6   : > { %p70_p2 = scmp.eq.s32.totalorder %s739_s18, 0  ;;  %s62_s25 = sadd.s32 1, %s719_s13 }
   0x7   : > { %s893_s19 = smov (%p23_p0, %s22_s19), 0  ;;  %s895_s20 = smov (!%p23_p0, %s25_s20), %s735_s17 }
   0x8   : > { %p806_p3 = por %p70_p2, %p69_p1  ;;  %p27_p4 = scmp.ge.s32.totalorder %s895_s20, 2 }
   0x9   : > { %s58_s22 = ssub.s32 %s731_s16, %s893_s19  ;;  %p586_p6 = scmp.ge.s32.totalorder %s739_s18, 4 }
   0xa   : > { %s897_s20 = smov (%p27_p4, %s895_s20), 0 }
   0xb   : > { %s57_s23 = ssub.s32 %s735_s17, %s897_s20  ;;  %151 = sbr.rel (%p586_p6) target bundleno = 32 (0x20), region = 16 }
   0xc   : > { %s59_s24 = sor.u32 %s58_s22, %s57_s23 }
   0xd   : > { %p60_p5 = scmp.eq.s32.totalorder %s59_s24, 0 }
   0xf   : > { %s818_s26 = scalar_select %p60_p5, %s719_s13, %s62_s25  }
  0x12   : > { %165 = sbr.rel (!%p806_p3) target bundleno = 25 (0x19), region = 24  ;;  %s167_s27 = sand.u32 (%p806_p3), 1, %s719_s13  }
  0x13   : > { %s588_s28 = sshll.u32 (%p806_p3), %s735_s17, 2  ;;  %s587_s29 = sshll.u32 (%p806_p3), %s167_s27, 3 }
  0x14   : > { %s171_s30 = sadd.s32 (%p806_p3), %s731_s16, %s588_s28  ;;  %s169_s8 = scalar_lea.vmem (%p806_p3), [#allocation2], %s587_s29 }
  0x15   : > { %s589_s4 = sshll.u32 (%p806_p3), %s171_s30, 2 }
  0x16   : > { %s173_s7 = scalar_lea.vmem (%p806_p3), %s882_s1, %s589_s4 }
  0x17   : > { %v189_v0 = vld [vmem:[%s173_s7] sm:$0xf] (%p806_p3)  ;;  %v191_v1 = vld [vmem:[%s173_s7 + $0x8] sm:$0xf] (%p806_p3) }
  0x18   : > { %190 = vst [vmem:[%s169_s8] sm:$0xf] (%p806_p3), %v189_v0  ;;  %192 = vst [vmem:[%s169_s8 + $0x4] sm:$0xf] (%p806_p3), %v191_v1 }
  0x19 PF: > { %219 = sbr.rel (!%p806_p3) target bundleno = 32 (0x20), region = 65  ;;  %s221_s9 = sand.u32 (%p806_p3), 1, %s719_s13  }
  0x1a   : > { %s591_s10 = sshll.u32 (%p806_p3), %s735_s17, 2  ;;  %s590_s11 = sshll.u32 (%p806_p3), %s221_s9, 3 }
  0x1b   : > { %s225_s22 = sadd.s32 (%p806_p3), %s731_s16, %s591_s10  ;;  %s223_s28 = scalar_lea.vmem (%p806_p3), [#allocation3], %s590_s11 }
  0x1c   : > { %s592_s23 = sshll.u32 (%p806_p3), %s225_s22, 2 }
  0x1d   : > { %s227_s27 = scalar_lea.vmem (%p806_p3), %s883_s2, %s592_s23 }
  0x1e   : > { %v243_v2 = vld [vmem:[%s227_s27] sm:$0xf] (%p806_p3)  ;;  %v245_v3 = vld [vmem:[%s227_s27 + $0x8] sm:$0xf] (%p806_p3) }
  0x1f   : > { %244 = vst [vmem:[%s223_s28] sm:$0xf] (%p806_p3), %v243_v2  ;;  %246 = vst [vmem:[%s223_s28 + $0x4] sm:$0xf] (%p806_p3), %v245_v3 }
  0x20 PF: > { %p593_p7 = scmp.ge.s32.totalorder %s739_s18, 1  ;;  %p272_p8 = scmp.lt.s32.totalorder %s739_s18, 5 }
  0x22   : > { %p273_p9 = pnand %p593_p7, %p272_p8 }
  0x23   : > { %s279_s21 = sand.u32 (!%p273_p9), 1, %s715_s12   ;;  %p324_p10 = scmp.lt.s32.totalorder (!%p273_p9), %s727_s15, 1  ;;  %v741_v4 = vmov (!%p273_p9), 0.0   ;;  %vm742_vm0 = vmmov (!%p273_p9), 0   ;;  %vm390_vm1 = vcmask (!%p273_p9), 130048  }
  0x24   : > { %276 = sbr.rel (%p273_p9) target bundleno = 638 (0x27e), region = 106  ;;  %609 = vmatprep.subr.bf16.mxu0 (!%p273_p9), %v741_v4  ;;  %s594_s29 = sshll.u32 (!%p273_p9), %s279_s21, 3  ;;  %611 = vmatprep.mubr.msk.bf16.mxu0 (!%p273_p9), %vm742_vm0, %v741_v4 }
  0x25   : > { %p326_p11 = scmp.lt.s32.totalorder (!%p273_p9), %s723_s14, 1  ;;  %615 = vmatprep.subr.bf16.mxu1 (!%p273_p9), %v741_v4  ;;  %617 = vmatprep.mubr.msk.bf16.mxu1 (!%p273_p9), %vm742_vm0, %v741_v4  ;;  %s281_s30 = scalar_lea.vmem (!%p273_p9), [#allocation2], %s594_s29 }
  0x26   : > { %v679_v5 = vld [vmem:[%s281_s30] sm:$0xff] (!%p273_p9)  }
  0x27   : > { %610 = vmatpush3.bf16.xpose.msra.mxu0 (!%p273_p9), %v679_v5 }
  0x2b   : > { %s899_s15 = smov (!%p324_p10, %s727_s15), 1  ;;  %s901_s14 = smov (!%p326_p11, %s723_s14), 1 }
  0x2c   : > { %s596_s4 = sshll.u32 %s899_s15, 1 }
  0x2d   : > { %s844_s5 = sadd.s32 %s596_s4, %s901_s14  ;;  %s288_s14 = scalar_lea.vmem [#allocation3], %s594_s29 }
  0x2e   : > { %s597_s12 = sshll.u32 %s844_s5, 2  ;;  %v680_v12 = vld [vmem:[%s288_s14] sm:$0xff]  }
  0x2f   : > { %s331_s8 = scalar_lea.vmem %s881_s0, %s597_s12  ;;  %616 = vmatpush3.bf16.msra.mxu1 %v680_v12  ;;  %s339_s10 = scalar_lea.vmem %s884_s3, %s597_s12 }
  0x30   : > { %v341_v6 = vld [vmem:[%s331_s8] sm:$0xf] }
  0x31   : > { %612 = vmatmul.mubr.bf16.vlgmr.msra.gmra.mrb[0].mxu0 %v341_v6 }
 0x104   : > { %v384_v7 = vpop.f32.mrb[0].mxu0 }
 0x105   : > { %v613_v8 = vpop.f32.mrb[1].mxu0  ;;  %v391_v9 = vsel %vm390_vm1, %v384_v7, -inf }
 0x106   : > { %392 = vmax.xlane.f32.xlu0 %v391_v9  ;;  %v387_v10 = vpop.f32.mrb[2].mxu0 }
 0x107   : > { %v614_v11 = vpop.f32.mrb[3].mxu0 }
 0x193   : > { %v393_v13 = vpop.xlane.xlu0 %392 }
 0x194   : > { %v394_v14 = vsub.f32 %v384_v7, %v393_v13 }
 0x196   : > { %v395_v15 = vmul.f32 1.442695, %v394_v14 }
 0x198   : > { %681 = vpow2.f32 %v395_v15 }
 0x1a2   : > { %v682_v16 = vpop.eup %681 }
 0x1a3   : > { %v397_v17 = vsel %vm390_vm1, %v682_v16, 0.0  ;;  %v400_v18 = vpack.c.bf16 %v682_v16, %v682_v16 }
 0x1a4   : > { %398 = vadd.xlane.f32.xlu0 %v397_v17 }
 0x1a5   : > { %618 = vmatmul.mubr.msk.bf16.vlgmr.msra.gmra.mrb[0].mxu1 %vm390_vm1, %v400_v18 }
 0x231   : > { %v399_v19 = vpop.xlane.xlu0 %398 }
 0x232   : > { %683 = vrcp.f32 %v399_v19 }
 0x23c   : > { %v684_v20 = vpop.eup %683 }
 0x278   : > { %v446_v21 = vpop.f32.mrb[0].mxu1 }
 0x279   : > { %v454_v22 = vmul.f32 %v684_v20, %v446_v21  ;;  %v619_v23 = vpop.f32.mrb[1].mxu1 }
 0x27a   : > { %v449_v24 = vpop.f32.mrb[2].mxu1 }
 0x27b   : > { %v455_v25 = vpack.c.bf16 %v454_v22, %v454_v22  ;;  %v620_v26 = vpop.f32.mrb[3].mxu1 }
 0x27d   : > { %456 = vst [vmem:[%s339_s10] sm:$0xf] %v455_v25 }
 0x27e PF: > { %s13_s18 = sadd.s32 1, %s739_s18   ;;  %s886_s12 = smov %s719_s13 }
 0x27f   : > { %p10_p12 = scmp.ge.s32.totalorder %s13_s18, 6   ;;  %s887_s13 = smov %s818_s26 }
 0x280   : > { %s888_s14 = smov %s731_s16  ;;  %s889_s15 = smov %s735_s17 }
 0x281   : > { %s890_s16 = smov %s893_s19  ;;  %s891_s17 = smov %s897_s20 }
 0x282   :  { %12 = sbr.rel (!%p10_p12) target bundleno = 4 (0x4), region = 160 }

// kernel: ffm_forward.5
= control target key start
LH: loop header
LB: loop body
LE: loop exit
PB: predicated region body
PF: predicated region fallthrough
CT: control target
= control target key end

     0   :  { %s3379_s0 = inlined_call_operand.vmem [shape: bf16[32,288], index: 0, kind: input, shape index: {}]   ;;  %s3380_s1 = inlined_call_operand.vmem [shape: bf16[288,192], index: 1, kind: input, shape index: {}]   ;;  %s3381_s2 = inlined_call_operand.vmem [shape: f32[1,192], index: 2, kind: input, shape index: {}]   ;;  %s3382_s3 = inlined_call_operand.hbm [shape: bf16[192,192], index: 3, kind: input, shape index: {}]   ;;  %s3383_s4 = inlined_call_operand.vmem [shape: f32[1,192], index: 4, kind: input, shape index: {}]   ;;  %s3384_s5 = inlined_call_operand.vmem [shape: f32[1,192], index: 5, kind: input, shape index: {}]   ;;  %s3385_s6 = inlined_call_operand.vmem [shape: f32[1,192], index: 6, kind: input, shape index: {}]   ;;  %s3386_s7 = inlined_call_operand.hbm [shape: bf16[192,256], index: 7, kind: input, shape index: {}]   ;;  %s3387_s8 = inlined_call_operand.vmem [shape: f32[1,256], index: 8, kind: input, shape index: {}]   ;;  %s3388_s9 = inlined_call_operand.vmem [shape: bf16[288,192], index: 9, kind: input, shape index: {}]   ;;  %s3389_s10 = inlined_call_operand.vmem [shape: f32[1,192], index: 10, kind: input, shape index: {}]   ;;  %s3390_s11 = inlined_call_operand.hbm [shape: bf16[192,192], index: 11, kind: input, shape index: {}]   ;;  %s3391_s12 = inlined_call_operand.vmem [shape: f32[1,192], index: 12, kind: input, shape index: {}]   ;;  %s3392_s13 = inlined_call_operand.vmem [shape: f32[1,192], index: 13, kind: input, shape index: {}]   ;;  %s3393_s14 = inlined_call_operand.vmem [shape: f32[1,192], index: 14, kind: input, shape index: {}]   ;;  %s3394_s15 = inlined_call_operand.hbm [shape: bf16[192,256], index: 15, kind: input, shape index: {}]   ;;  %s3395_s16 = inlined_call_operand.vmem [shape: f32[1,256], index: 16, kind: input, shape index: {}]   ;;  %s3396_s17 = inlined_call_operand.vmem [shape: bf16[32,256], index: 17, kind: output, shape index: {0}]   ;;  %s3397_s18 = inlined_call_operand.vmem [shape: bf16[32,256], index: 18, kind: output, shape index: {1}]  }
   0x1   :  { %3400 = sst [smem:[#allocation12_spill]] %s3379_s0 }
   0x2   :  { %3401 = sst [smem:[#allocation13_spill]] %s3380_s1 }
   0x3   :  { %3402 = sst [smem:[#allocation14_spill]] %s3381_s2 }
   0x4   :  { %24 = vsyncpa [#allocation3], 0 }
   0x5   :  { %25 = vsyncpa [#allocation5], 0 }
   0x6   :  { %26 = vsyncpa [#allocation8], 0  ;;  %s2719_s27 = smov [#allocation4]   ;;  %s2720_s29 = smov [#allocation2]  }
   0x7   :  { %s56_s28 = sshll.u32 %s2719_s27, 4  ;;  %s38_s30 = sshll.u32 %s2720_s29, 4  ;;  %s57_s28 = int_to_ptr.vmem [resolvable:$true] %s56_s28  ;;  %s2821_s30 = int_to_ptr.vmem [resolvable:$true] %s38_s30 }
   0x8   :  { %s2625_s1 = scalar_lea.hbm %s3386_s7, 3072 }
   0x9   :  { %p2626_p0 = scmp.ne.s32.totalorder %s3386_s7, %s2625_s1  ;;  %p2629_p1 = scmp.lt.u32.totalorder %s2625_s1, %s3386_s7 }
   0xb   :  { %p2631_p2 = pnand %p2629_p1, %p2626_p0 }
   0xd   :  { %2634 = shalt.err (!%p2631_p2)
}
   0xe   :  { %s2635_s23 = scalar_lea.vmem %s57_s28, 3072  ;;  %p2640_p4 = scmp.lt.s32.totalorder %s57_s28, %s57_s28 }
   0xf   :  { %p2636_p3 = scmp.ne.s32.totalorder %s57_s28, %s2635_s23  ;;  %p2641_p5 = scmp.lt.s32.totalorder %s2635_s23, %s2635_s23 }
  0x11   :  { %p2642_p6 = por %p2641_p5, %p2640_p4 }
  0x13   :  { %p2643_p7 = pnand %p2642_p6, %p2636_p3 }
  0x15   :  { %2646 = shalt.err (!%p2643_p7)
}
  0x16   :  { %s2721_s24 = smov 128   ;;  %s2722_s25 = smov 8  }
  0x17   :  { %62 = dma.hbm_to_vmem [thread:$0]  %s3386_s7, 3072, %s57_s28, [#allocation5], %s2721_s24, %s2721_s24, %s2722_s25  }
  0x18   :  { %s2647_s19 = scalar_lea.hbm %s3382_s3, 3072 }
  0x19   :  { %p2648_p8 = scmp.ne.s32.totalorder %s3382_s3, %s2647_s19  ;;  %p2651_p9 = scmp.lt.u32.totalorder %s2647_s19, %s3382_s3 }
  0x1b   :  { %p2653_p10 = pnand %p2651_p9, %p2648_p8 }
  0x1d   :  { %2656 = shalt.err (!%p2653_p10)
}
  0x1e   :  { %s2657_s2 = scalar_lea.vmem %s2821_s30, 3072  ;;  %p2662_p12 = scmp.lt.s32.totalorder %s2821_s30, %s2821_s30 }
  0x1f   :  { %p2658_p11 = scmp.ne.s32.totalorder %s2821_s30, %s2657_s2  ;;  %p2663_p13 = scmp.lt.s32.totalorder %s2657_s2, %s2657_s2 }
  0x21   :  { %p2664_p0 = por %p2663_p13, %p2662_p12 }
  0x23   :  { %p2665_p1 = pnand %p2664_p0, %p2658_p11 }
  0x25   :  { %2668 = shalt.err (!%p2665_p1)
}
  0x26   :  { %44 = dma.hbm_to_vmem [thread:$0]  %s3382_s3, 3072, %s2821_s30, [#allocation3], %s2721_s24, %s2721_s24, %s2722_s25  }
  0x27   :  { %s2723_s23 = smov [#allocation6]   ;;  %s2724_s27 = smov [#allocation7]  }
  0x28   :  { %s74_s26 = sshll.u32 %s2723_s23, 4  ;;  %s92_s29 = sshll.u32 %s2724_s27, 4  ;;  %s75_s26 = int_to_ptr.vmem [resolvable:$true] %s74_s26  ;;  %s2858_s29 = int_to_ptr.vmem [resolvable:$true] %s92_s29 }
  0x29   :  { %s2669_s1 = scalar_lea.hbm %s3390_s11, 3072 }
  0x2a   :  { %p2670_p2 = scmp.ne.s32.totalorder %s3390_s11, %s2669_s1  ;;  %p2673_p3 = scmp.lt.u32.totalorder %s2669_s1, %s3390_s11 }
  0x2c   :  { %p2675_p4 = pnand %p2673_p3, %p2670_p2 }
  0x2e   :  { %2678 = shalt.err (!%p2675_p4)
}
  0x2f   :  { %s2679_s3 = scalar_lea.vmem %s75_s26, 3072  ;;  %p2684_p6 = scmp.lt.s32.totalorder %s75_s26, %s75_s26 }
  0x30   :  { %p2680_p5 = scmp.ne.s32.totalorder %s75_s26, %s2679_s3  ;;  %p2685_p7 = scmp.lt.s32.totalorder %s2679_s3, %s2679_s3 }
  0x32   :  { %p2686_p8 = por %p2685_p7, %p2684_p6 }
  0x34   :  { %p2687_p9 = pnand %p2686_p8, %p2680_p5 }
  0x36   :  { %2690 = shalt.err (!%p2687_p9)
}
  0x37   :  { %80 = dma.hbm_to_vmem [thread:$0]  %s3390_s11, 3072, %s75_s26, [#allocation5], %s2721_s24, %s2721_s24, %s2722_s25  }
  0x38   :  { %s2691_s27 = scalar_lea.hbm %s3394_s15, 3072 }
  0x39   :  { %p2692_p10 = scmp.ne.s32.totalorder %s3394_s15, %s2691_s27  ;;  %p2695_p11 = scmp.lt.u32.totalorder %s2691_s27, %s3394_s15 }
  0x3b   :  { %p2697_p12 = pnand %p2695_p11, %p2692_p10 }
  0x3d   :  { %2700 = shalt.err (!%p2697_p12)
}
  0x3e   :  { %s2701_s21 = scalar_lea.vmem %s2858_s29, 3072  ;;  %p2706_p0 = scmp.lt.s32.totalorder %s2858_s29, %s2858_s29 }
  0x3f   :  { %p2702_p13 = scmp.ne.s32.totalorder %s2858_s29, %s2701_s21  ;;  %p2707_p1 = scmp.lt.s32.totalorder %s2701_s21, %s2701_s21 }
  0x41   :  { %p2708_p2 = por %p2707_p1, %p2706_p0 }
  0x43   :  { %p2709_p3 = pnand %p2708_p2, %p2702_p13 }
  0x45   :  { %2712 = shalt.err (!%p2709_p3)
}
  0x46   :  { %98 = dma.hbm_to_vmem [thread:$0]  %s3394_s15, 3072, %s2858_s29, [#allocation8], %s2721_s24, %s2721_s24, %s2722_s25  }
  0x47   :  { %2713 = dma.done.wait [#allocation3], 3072  }
  0x48   :  { %2714 = vsyncadd [#allocation3], 4294964224 }
  0x49   :  { %2715 = dma.done.wait [#allocation5], 6144  }
  0x4a   :  { %2716 = vsyncadd [#allocation5], 4294961152 }
  0x4b   :  { %2717 = dma.done.wait [#allocation8], 3072  }
  0x4c   :  { %2718 = vsyncadd [#allocation8], 4294964224  ;;  %s3403_s3 = sld [smem:[#allocation13_spill]]  ;;  %s3404_s27 = sld [smem:[#allocation12_spill]]  ;;  %v2379_v18 = vld [vmem:[#allocation2 + $0x4] ss:$8 sps:$4 sm:$0xff]  }
  0x4d   :  { %v2381_v19 = vld [vmem:[#allocation2] ss:$8 sps:$4 sm:$0xff]   ;;  %v2382_v20 = vld [vmem:[#allocation2 + $0x14] ss:$8 sps:$4 sm:$0xff]   ;;  %700 = vmatprep.subr.bf16.mxu1 %v2379_v18  ;;  %v2384_v23 = vld [vmem:[#allocation2 + $0x10] ss:$8 sps:$4 sm:$0xff]  }
  0x4e   :  { %701 = vmatpush1.bf16.msra.mxu1 %v2381_v19  ;;  %v2385_v24 = vld [vmem:[#allocation2 + $0x24] ss:$8 sps:$4 sm:$0xff]   ;;  %v2387_v27 = vld [vmem:[#allocation2 + $0x20] ss:$8 sps:$4 sm:$0xff]   ;;  %v2388_v28 = vld [vmem:[#allocation2 + $0x34] ss:$8 sps:$4 sm:$0xff]  }
  0x4f   :  { %702 = vmatprep.subr.bf16.mxu1 %v2382_v20  ;;  %v2390_v31 = vld [vmem:[#allocation2 + $0x30] ss:$8 sps:$4 sm:$0xff]   ;;  %v2391_v32 = vld [vmem:[#allocation2 + $0x44] ss:$8 sps:$4 sm:$0xff]   ;;  %v2393_v35 = vld [vmem:[#allocation2 + $0x40] ss:$8 sps:$4 sm:$0xff]  }
  0x50   :  { %v2394_v36 = vld [vmem:[#allocation2 + $0x54] ss:$8 sps:$4 sm:$0xff]   ;;  %v2396_v39 = vld [vmem:[#allocation2 + $0x50] ss:$8 sps:$4 sm:$0xff]   ;;  %v2725_v52 = vmov 0   ;;  %vm380_vm0 = vcmask 261120  }
  0x51   :  { %v2397_v55 = vld [vmem:[#allocation2 + $0x64] ss:$8 sps:$4 sm:$0xff]   ;;  %v2399_v56 = vld [vmem:[#allocation2 + $0x60] ss:$8 sps:$4 sm:$0xff]   ;;  %v2400_v57 = vld [vmem:[#allocation2 + $0x74] ss:$8 sps:$4 sm:$0xff]  }
  0x52   :  { %v2317_v0 = vld [vmem:[%s3403_s3 + $0x4] ss:$8 sps:$4 sm:$0xff]   ;;  %v2319_v1 = vld [vmem:[%s3403_s3] ss:$8 sps:$4 sm:$0xff]   ;;  %v2320_v2 = vld [vmem:[%s3403_s3 + $0x14] ss:$8 sps:$4 sm:$0xff]   ;;  %703 = vmatpush1.bf16.msra.mxu1 %v2384_v23 }
  0x53   :  { %387 = vmatprep.subr.bf16.mxu0 %v2317_v0  ;;  %v2322_v3 = vld [vmem:[%s3403_s3 + $0x10] ss:$8 sps:$4 sm:$0xff]   ;;  %v2323_v4 = vld [vmem:[%s3403_s3 + $0x24] ss:$8 sps:$4 sm:$0xff]   ;;  %v2325_v5 = vld [vmem:[%s3403_s3 + $0x20] ss:$8 sps:$4 sm:$0xff]   ;;  %704 = vmatprep.subr.bf16.mxu1 %v2385_v24 }
  0x54   :  { %388 = vmatpush1.bf16.msra.mxu0 %v2319_v1  ;;  %v2326_v6 = vld [vmem:[%s3403_s3 + $0x34] ss:$8 sps:$4 sm:$0xff]   ;;  %v2328_v7 = vld [vmem:[%s3403_s3 + $0x30] ss:$8 sps:$4 sm:$0xff]   ;;  %v2329_v8 = vld [vmem:[%s3403_s3 + $0x44] ss:$8 sps:$4 sm:$0xff]  }
  0x55   :  { %389 = vmatprep.subr.bf16.mxu0 %v2320_v2  ;;  %v2331_v9 = vld [vmem:[%s3403_s3 + $0x40] ss:$8 sps:$4 sm:$0xff]   ;;  %v2332_v10 = vld [vmem:[%s3403_s3 + $0x54] ss:$8 sps:$4 sm:$0xff]   ;;  %v2334_v11 = vld [vmem:[%s3403_s3 + $0x50] ss:$8 sps:$4 sm:$0xff]  }
  0x56   :  { %v2335_v12 = vld [vmem:[%s3403_s3 + $0x64] ss:$8 sps:$4 sm:$0xff]   ;;  %v2337_v14 = vld [vmem:[%s3403_s3 + $0x60] ss:$8 sps:$4 sm:$0xff]   ;;  %v2338_v15 = vld [vmem:[%s3403_s3 + $0x74] ss:$8 sps:$4 sm:$0xff]   ;;  %705 = vmatpush1.bf16.msra.mxu1 %v2387_v27 }
  0x57   :  { %v2937_v13 = vld [vmem:[%s3404_s27 + $0x4] ss:$12 sps:$4 sm:$0xff]   ;;  %v2343_v21 = vld [vmem:[%s3403_s3 + $0x80] ss:$8 sps:$4 sm:$0xff]   ;;  %v2344_v22 = vld [vmem:[%s3403_s3 + $0x94] ss:$8 sps:$4 sm:$0xff]   ;;  %706 = vmatprep.subr.bf16.mxu1 %v2388_v28 }
  0x58   :  { %390 = vmatpush1.bf16.msra.mxu0 %v2322_v3  ;;  %419 = vmatprep.mubr.bf16.mxu0 %v2937_v13  ;;  %v2340_v16 = vld [vmem:[%s3403_s3 + $0x70] ss:$8 sps:$4 sm:$0xff]   ;;  %v2341_v17 = vld [vmem:[%s3403_s3 + $0x84] ss:$8 sps:$4 sm:$0xff]   ;;  %v2349_v29 = vld [vmem:[%s3403_s3 + $0xa0] ss:$8 sps:$4 sm:$0xff]   ;;  %v160_v3 = vlaneseq }
  0x59   :  { %391 = vmatprep.subr.bf16.mxu0 %v2323_v4  ;;  %v2346_v25 = vld [vmem:[%s3403_s3 + $0x90] ss:$8 sps:$4 sm:$0xff]   ;;  %v2347_v26 = vld [vmem:[%s3403_s3 + $0xa4] ss:$8 sps:$4 sm:$0xff]   ;;  %v2350_v30 = vld [vmem:[%s3403_s3 + $0xb4] ss:$8 sps:$4 sm:$0xff]  }
  0x5a   :  { %v2352_v33 = vld [vmem:[%s3403_s3 + $0xb0] ss:$8 sps:$4 sm:$0xff]   ;;  %v2353_v34 = vld [vmem:[%s3403_s3 + $0xc4] ss:$8 sps:$4 sm:$0xff]   ;;  %707 = vmatpush1.bf16.msra.mxu1 %v2390_v31  ;;  %v2355_v37 = vld [vmem:[%s3403_s3 + $0xc0] ss:$8 sps:$4 sm:$0xff]  }
  0x5b   :  { %708 = vmatprep.subr.bf16.mxu1 %v2391_v32  ;;  %v2356_v38 = vld [vmem:[%s3403_s3 + $0xd4] ss:$8 sps:$4 sm:$0xff]   ;;  %v2358_v40 = vld [vmem:[%s3403_s3 + $0xd0] ss:$8 sps:$4 sm:$0xff]   ;;  %v2359_v41 = vld [vmem:[%s3403_s3 + $0xe4] ss:$8 sps:$4 sm:$0xff]  }
  0x5c   :  { %392 = vmatpush1.bf16.msra.mxu0 %v2325_v5  ;;  %v2361_v42 = vld [vmem:[%s3403_s3 + $0xe0] ss:$8 sps:$4 sm:$0xff]   ;;  %v2362_v43 = vld [vmem:[%s3403_s3 + $0xf4] ss:$8 sps:$4 sm:$0xff]   ;;  %v2364_v44 = vld [vmem:[%s3403_s3 + $0xf0] ss:$8 sps:$4 sm:$0xff]  }
  0x5d   :  { %393 = vmatprep.subr.bf16.mxu0 %v2326_v6  ;;  %v2370_v45 = vld [vmem:[%s3403_s3 + $0x104] ss:$8 sps:$4 sm:$0xff]   ;;  %v2368_v47 = vld [vmem:[%s3403_s3 + $0x100] ss:$8 sps:$4 sm:$0xff]   ;;  %v2376_v49 = vld [vmem:[%s3403_s3 + $0x114] ss:$8 sps:$4 sm:$0xff]  }
  0x5e   :  { %709 = vmatpush1.bf16.msra.mxu1 %v2393_v35  ;;  %v3003_v46 = vld [vmem:[%s3404_s27] ss:$12 sps:$4 sm:$0xff]   ;;  %v3011_v48 = vld [vmem:[%s3404_s27 + $0x1c] ss:$12 sps:$4 sm:$0xff]   ;;  %v2374_v50 = vld [vmem:[%s3403_s3 + $0x110] ss:$8 sps:$4 sm:$0xff]  }
  0x5f   :  { %710 = vmatprep.subr.bf16.mxu1 %v2394_v36  ;;  %v3024_v51 = vld [vmem:[%s3404_s27 + $0x18] ss:$12 sps:$4 sm:$0xff]   ;;  %v3031_v53 = vld [vmem:[%s3404_s27 + $0x8] ss:$12 sps:$4 sm:$0xff]   ;;  %v3039_v54 = vld [vmem:[%s3404_s27 + $0x20] ss:$12 sps:$4 sm:$0xff]  }
  0x60   :  { %394 = vmatpush1.bf16.msra.mxu0 %v2328_v7  ;;  %v2402_v58 = vld [vmem:[#allocation2 + $0x70] ss:$8 sps:$4 sm:$0xff]   ;;  %v2403_v59 = vld [vmem:[#allocation2 + $0x84] ss:$8 sps:$4 sm:$0xff]   ;;  %v2405_v60 = vld [vmem:[#allocation2 + $0x80] ss:$8 sps:$4 sm:$0xff]  }
  0x61   :  { %395 = vmatprep.subr.bf16.mxu0 %v2329_v8  ;;  %v2406_v61 = vld [vmem:[#allocation2 + $0x94] ss:$8 sps:$4 sm:$0xff]   ;;  %v2408_v62 = vld [vmem:[#allocation2 + $0x90] ss:$8 sps:$4 sm:$0xff]   ;;  %v2409_v63 = vld [vmem:[#allocation2 + $0xa4] ss:$8 sps:$4 sm:$0xff]  }
  0x62   :  { %711 = vmatpush1.bf16.msra.mxu1 %v2396_v39  ;;  %v2411_v0 = vld [vmem:[#allocation2 + $0xa0] ss:$8 sps:$4 sm:$0xff]   ;;  %v2412_v1 = vld [vmem:[#allocation2 + $0xb4] ss:$8 sps:$4 sm:$0xff]   ;;  %v2414_v2 = vld [vmem:[#allocation2 + $0xb0] ss:$8 sps:$4 sm:$0xff]  }
  0x63   :  { %712 = vmatprep.subr.bf16.mxu1 %v2397_v55  ;;  %v161_v4 = vshrl.u32 %v160_v3, 7  ;;  %s3405_s11 = sld [smem:[#allocation14_spill]]  ;;  %vm693_vm1 = vcmask 523264  }
  0x64   :  { %396 = vmatpush1.bf16.msra.mxu0 %v2331_v9 }
  0x65   :  { %397 = vmatprep.subr.bf16.mxu0 %v2332_v10  ;;  %v3044_v5 = vsub.s32 0, %v161_v4  ;;  %v3049_v7 = vsub.s32 1, %v161_v4 }
  0x66   :  { %713 = vmatpush1.bf16.msra.mxu1 %v2399_v56 }
  0x67   :  { %714 = vmatprep.subr.bf16.mxu1 %v2400_v57 }
  0x68   :  { %398 = vmatpush1.bf16.msra.mxu0 %v2334_v11 }
  0x69   :  { %399 = vmatprep.subr.bf16.mxu0 %v2335_v12  ;;  %v158_v6 = vld [vmem:[%s3405_s11] sm:$0x3] }
  0x6a   :  { %715 = vmatpush1.bf16.msra.mxu1 %v2402_v58  ;;  %v163_v8 = vrot.slane %v158_v6, %v3044_v5  ;;  %v167_v9 = vrot.slane %v158_v6, %v3049_v7 }
  0x6b   :  { %716 = vmatprep.subr.bf16.mxu1 %v2403_v59 }
  0x6c   :  { %400 = vmatpush1.bf16.msra.mxu0 %v2337_v14 }
  0x6d   :  { %401 = vmatprep.subr.bf16.mxu0 %v2338_v15 }
  0x6e   :  { %717 = vmatpush1.bf16.msra.mxu1 %v2405_v60 }
  0x6f   :  { %718 = vmatprep.subr.bf16.mxu1 %v2406_v61 }
  0x70   :  { %402 = vmatpush1.bf16.msra.mxu0 %v2340_v16 }
  0x71   :  { %403 = vmatprep.subr.bf16.mxu0 %v2341_v17 }
  0x72   :  { %719 = vmatpush1.bf16.msra.mxu1 %v2408_v62 }
  0x73   :  { %720 = vmatprep.subr.bf16.mxu1 %v2409_v63 }
  0x74   :  { %404 = vmatpush1.bf16.msra.mxu0 %v2343_v21 }
  0x75   :  { %405 = vmatprep.subr.bf16.mxu0 %v2344_v22 }
  0x76   :  { %721 = vmatpush1.bf16.msra.mxu1 %v2411_v0 }
  0x77   :  { %722 = vmatprep.subr.bf16.mxu1 %v2412_v1 }
  0x78   :  { %406 = vmatpush1.bf16.msra.mxu0 %v2346_v25 }
  0x79   :  { %407 = vmatprep.subr.bf16.mxu0 %v2347_v26 }
  0x7a   :  { %723 = vmatpush1.bf16.msra.mxu1 %v2414_v2 }
  0x7c   :  { %408 = vmatpush1.bf16.msra.mxu0 %v2349_v29 }
  0x7d   :  { %409 = vmatprep.subr.bf16.mxu0 %v2350_v30 }
  0x80   :  { %410 = vmatpush1.bf16.msra.mxu0 %v2352_v33 }
  0x81   :  { %411 = vmatprep.subr.bf16.mxu0 %v2353_v34 }
  0x84   :  { %412 = vmatpush1.bf16.msra.mxu0 %v2355_v37 }
  0x85   :  { %413 = vmatprep.subr.bf16.mxu0 %v2356_v38 }
  0x88   :  { %414 = vmatpush1.bf16.msra.mxu0 %v2358_v40 }
  0x89   :  { %415 = vmatprep.subr.bf16.mxu0 %v2359_v41 }
  0x8c   :  { %416 = vmatpush1.bf16.msra.mxu0 %v2361_v42 }
  0x8d   :  { %417 = vmatprep.subr.bf16.mxu0 %v2362_v43 }
  0x90   :  { %418 = vmatpush1.bf16.msra.mxu0 %v2364_v44 }
  0x91   :  { %440 = vmatprep.subr.bf16.mxu0 %v2370_v45 }
  0x93   :  { %420 = vmatmul.mubr.bf16.vlgmr.msra.gmra.mrb[0].mxu0 %v3003_v46 }
  0x94   :  { %441 = vmatpush1.bf16.msra.mxu0 %v2368_v47  ;;  %429 = vmatprep.mubr.bf16.mxu0 %v3011_v48 }
  0x95   :  { %442 = vmatprep.subr.bf16.mxu0 %v2376_v49 }
  0x98   :  { %443 = vmatpush1.bf16.msra.mxu0 %v2374_v50 }
  0x9b   :  { %430 = vmatmul.mubr.bf16.gmra.mrb[4].mxu0 %v3024_v51 }
  0x9c   :  { %472 = vmatprep.mubr.bf16.mxu0 %v2725_v52 }
  0xa3   :  { %2118 = vmatmul.mubr.msk.bf16.vlgmr.msra.gmra.mrb[0].mxu0 %vm380_vm0, %v3031_v53 }
  0xa4   :  { %482 = vmatprep.mubr.bf16.mxu0 %v2725_v52 }
  0xab   :  { %2119 = vmatmul.mubr.msk.bf16.gmra.mrb[4].mxu0 %vm380_vm0, %v3039_v54 }
  0xac   :  { %1373 = vmatprep.mubr.bf16.mxu0 %v2937_v13 }
 0x176   :  { %v474_v10 = vpop.f32.mrb[0].mxu0 }
 0x177   :  { %v2278_v11 = vadd.f32 %v474_v10, %v163_v8  ;;  %v476_v12 = vpop.f32.mrb[1].mxu0 }
 0x178   :  { %v2279_v13 = vadd.f32 %v476_v12, %v167_v9  ;;  %v478_v14 = vpop.f32.mrb[2].mxu0 }
 0x179   :  { %v501_v15 = vmul.f32 0.70710677, %v2278_v11  ;;  %v2280_v16 = vadd.f32 %v478_v14, %v163_v8  ;;  %v480_v17 = vpop.f32.mrb[3].mxu0  ;;  %v493_v40 = vmul.f32 0.5, %v2278_v11  ;;  %v2415_v14 = vld [vmem:[%s3388_s9] ss:$8 sps:$4 sm:$0xff]  }
 0x17a   :  { %v502_v18 = vmul.f32 0.70710677, %v2279_v13  ;;  %v2281_v19 = vadd.f32 %v480_v17, %v167_v9  ;;  %v494_v43 = vmul.f32 0.5, %v2279_v13  ;;  %v2418_v17 = vld [vmem:[%s3388_s9 + $0x10] ss:$8 sps:$4 sm:$0xff]  }
 0x17b   :  { %2577 = verf.f32 %v501_v15  ;;  %v503_v20 = vmul.f32 0.70710677, %v2280_v16  ;;  %v495_v41 = vmul.f32 0.5, %v2280_v16  ;;  %v2417_v15 = vld [vmem:[%s3388_s9 + $0x4] ss:$8 sps:$4 sm:$0xff]  }
 0x17c   :  { %2579 = verf.f32 %v502_v18  ;;  %v504_v21 = vmul.f32 0.70710677, %v2281_v19  ;;  %v496_v44 = vmul.f32 0.5, %v2281_v19  ;;  %v2420_v16 = vld [vmem:[%s3388_s9 + $0x14] ss:$8 sps:$4 sm:$0xff]   ;;  %1341 = vmatprep.subr.bf16.mxu0 %v2417_v15 }
 0x17d   :  { %2581 = verf.f32 %v503_v20  ;;  %1342 = vmatpush1.bf16.msra.mxu0 %v2415_v14  ;;  %v2423_v18 = vld [vmem:[%s3388_s9 + $0x24] ss:$8 sps:$4 sm:$0xff]   ;;  %v2421_v19 = vld [vmem:[%s3388_s9 + $0x20] ss:$8 sps:$4 sm:$0xff]   ;;  %v2426_v20 = vld [vmem:[%s3388_s9 + $0x34] ss:$8 sps:$4 sm:$0xff]  }
 0x17e   :  { %2583 = verf.f32 %v504_v21  ;;  %v484_v22 = vpop.f32.mrb[4].mxu0  ;;  %1343 = vmatprep.subr.bf16.mxu0 %v2420_v16  ;;  %v2424_v21 = vld [vmem:[%s3388_s9 + $0x30] ss:$8 sps:$4 sm:$0xff]   ;;  %v2469_v15 = vld [vmem:[#allocation4] ss:$8 sps:$4 sm:$0xff]  }
 0x17f   :  { %v2282_v23 = vadd.f32 %v484_v22, %v163_v8  ;;  %v486_v24 = vpop.f32.mrb[5].mxu0  ;;  %v2429_v22 = vld [vmem:[%s3388_s9 + $0x44] ss:$8 sps:$4 sm:$0xff]  }
 0x180   :  { %v2283_v25 = vadd.f32 %v486_v24, %v167_v9  ;;  %v488_v26 = vpop.f32.mrb[6].mxu0  ;;  %v2432_v24 = vld [vmem:[%s3388_s9 + $0x54] ss:$8 sps:$4 sm:$0xff]   ;;  %v2471_v16 = vld [vmem:[#allocation4 + $0x4] ss:$8 sps:$4 sm:$0xff]  }
 0x181   :  { %v505_v27 = vmul.f32 0.70710677, %v2282_v23  ;;  %v2284_v28 = vadd.f32 %v488_v26, %v163_v8  ;;  %v490_v29 = vpop.f32.mrb[7].mxu0  ;;  %v497_v0 = vmul.f32 0.5, %v2282_v23  ;;  %1344 = vmatpush1.bf16.msra.mxu0 %v2418_v17  ;;  %v2427_v23 = vld [vmem:[%s3388_s9 + $0x40] ss:$8 sps:$4 sm:$0xff]   ;;  %1032 = vmatprep.subr.bf16.mxu1 %v2471_v16 }
 0x182   :  { %v506_v30 = vmul.f32 0.70710677, %v2283_v25  ;;  %v2285_v31 = vadd.f32 %v490_v29, %v167_v9  ;;  %v498_v3 = vmul.f32 0.5, %v2283_v25  ;;  %1345 = vmatprep.subr.bf16.mxu0 %v2423_v18  ;;  %v2430_v25 = vld [vmem:[%s3388_s9 + $0x50] ss:$8 sps:$4 sm:$0xff]  }
 0x183   :  { %2585 = verf.f32 %v505_v27  ;;  %v507_v32 = vmul.f32 0.70710677, %v2284_v28  ;;  %v499_v1 = vmul.f32 0.5, %v2284_v28  ;;  %v2435_v26 = vld [vmem:[%s3388_s9 + $0x64] ss:$8 sps:$4 sm:$0xff]  }
 0x184   :  { %2587 = verf.f32 %v506_v30  ;;  %v508_v33 = vmul.f32 0.70710677, %v2285_v31  ;;  %v500_v4 = vmul.f32 0.5, %v2285_v31  ;;  %v2433_v27 = vld [vmem:[%s3388_s9 + $0x60] ss:$8 sps:$4 sm:$0xff]  }
 0x185   :  { %v2578_v34 = vpop.eup %2577  ;;  %2589 = verf.f32 %v507_v32  ;;  %1346 = vmatpush1.bf16.msra.mxu0 %v2421_v19  ;;  %v2438_v28 = vld [vmem:[%s3388_s9 + $0x74] ss:$8 sps:$4 sm:$0xff]   ;;  %v2436_v29 = vld [vmem:[%s3388_s9 + $0x70] ss:$8 sps:$4 sm:$0xff]   ;;  %v2441_v30 = vld [vmem:[%s3388_s9 + $0x84] ss:$8 sps:$4 sm:$0xff]  }
 0x186   :  { %v2580_v35 = vpop.eup %2579  ;;  %v517_v36 = vadd.f32 1.0, %v2578_v34  ;;  %2591 = verf.f32 %v508_v33  ;;  %1347 = vmatprep.subr.bf16.mxu0 %v2426_v20  ;;  %v2439_v31 = vld [vmem:[%s3388_s9 + $0x80] ss:$8 sps:$4 sm:$0xff]   ;;  %v2444_v32 = vld [vmem:[%s3388_s9 + $0x94] ss:$8 sps:$4 sm:$0xff]  }
 0x187   :  { %v2582_v37 = vpop.eup %2581  ;;  %v518_v38 = vadd.f32 1.0, %v2580_v35  ;;  %v2442_v33 = vld [vmem:[%s3388_s9 + $0x90] ss:$8 sps:$4 sm:$0xff]   ;;  %v2447_v34 = vld [vmem:[%s3388_s9 + $0xa4] ss:$8 sps:$4 sm:$0xff]  }
 0x188   :  { %v2584_v39 = vpop.eup %2583  ;;  %v519_v42 = vadd.f32 1.0, %v2582_v37  ;;  %v525_v47 = vmul.f32 %v517_v36, %v493_v40  ;;  %v2445_v35 = vld [vmem:[%s3388_s9 + $0xa0] ss:$8 sps:$4 sm:$0xff]   ;;  %v2450_v36 = vld [vmem:[%s3388_s9 + $0xb4] ss:$8 sps:$4 sm:$0xff]  }
 0x189   :  { %v520_v45 = vadd.f32 1.0, %v2584_v39  ;;  %v526_v50 = vmul.f32 %v518_v38, %v494_v43  ;;  %1348 = vmatpush1.bf16.msra.mxu0 %v2424_v21  ;;  %v2448_v37 = vld [vmem:[%s3388_s9 + $0xb0] ss:$8 sps:$4 sm:$0xff]   ;;  %v2453_v38 = vld [vmem:[%s3388_s9 + $0xc4] ss:$8 sps:$4 sm:$0xff]  }
 0x18a   :  { %v527_v49 = vmul.f32 %v519_v42, %v495_v41  ;;  %1349 = vmatprep.subr.bf16.mxu0 %v2429_v22  ;;  %v2451_v39 = vld [vmem:[%s3388_s9 + $0xc0] ss:$8 sps:$4 sm:$0xff]   ;;  %v2456_v40 = vld [vmem:[%s3388_s9 + $0xd4] ss:$8 sps:$4 sm:$0xff]   ;;  %v2454_v41 = vld [vmem:[%s3388_s9 + $0xd0] ss:$8 sps:$4 sm:$0xff]  }
 0x18b   :  { %v528_v55 = vmul.f32 %v520_v45, %v496_v44  ;;  %v2459_v42 = vld [vmem:[%s3388_s9 + $0xe4] ss:$8 sps:$4 sm:$0xff]   ;;  %v2457_v43 = vld [vmem:[%s3388_s9 + $0xe0] ss:$8 sps:$4 sm:$0xff]   ;;  %v2462_v44 = vld [vmem:[%s3388_s9 + $0xf4] ss:$8 sps:$4 sm:$0xff]  }
 0x18c   :  { %v533_v56 = vpack.c.bf16 %v527_v49, %v525_v47  ;;  %v2460_v45 = vld [vmem:[%s3388_s9 + $0xf0] ss:$8 sps:$4 sm:$0xff]   ;;  %v2465_v47 = vld [vmem:[%s3388_s9 + $0x104] ss:$8 sps:$4 sm:$0xff]   ;;  %v2463_v49 = vld [vmem:[%s3388_s9 + $0x100] ss:$8 sps:$4 sm:$0xff]  }
 0x18d   :  { %v2586_v57 = vpop.eup %2585  ;;  %v534_v58 = vpack.c.bf16 %v528_v55, %v526_v50  ;;  %1350 = vmatpush1.bf16.msra.mxu0 %v2427_v23  ;;  %v2468_v50 = vld [vmem:[%s3388_s9 + $0x114] ss:$8 sps:$4 sm:$0xff]   ;;  %v2466_v55 = vld [vmem:[%s3388_s9 + $0x110] ss:$8 sps:$4 sm:$0xff]   ;;  %v2477_v19 = vld [vmem:[#allocation4 + $0x24] ss:$8 sps:$4 sm:$0xff]  }
 0x18e   :  { %v2588_v59 = vpop.eup %2587  ;;  %v521_v60 = vadd.f32 1.0, %v2586_v57  ;;  %1351 = vmatprep.subr.bf16.mxu0 %v2432_v24  ;;  %v2474_v17 = vld [vmem:[#allocation4 + $0x14] ss:$8 sps:$4 sm:$0xff]   ;;  %v2472_v18 = vld [vmem:[#allocation4 + $0x10] ss:$8 sps:$4 sm:$0xff]  }
 0x18f   :  { %v2590_v61 = vpop.eup %2589  ;;  %v522_v62 = vadd.f32 1.0, %v2588_v59  ;;  %2144 = vmatprep.mubr.msk.bf16.mxu1 %vm693_vm1, %v534_v58  ;;  %v2475_v20 = vld [vmem:[#allocation4 + $0x20] ss:$8 sps:$4 sm:$0xff]   ;;  %v2480_v21 = vld [vmem:[#allocation4 + $0x34] ss:$8 sps:$4 sm:$0xff]  }
 0x190   :  { %v2592_v63 = vpop.eup %2591  ;;  %v523_v2 = vadd.f32 1.0, %v2590_v61  ;;  %733 = vmatmul.mubr.bf16.vlgmr.msra.gmra.mrb[0].mxu1 %v533_v56  ;;  %v529_v8 = vmul.f32 %v521_v60, %v497_v0  ;;  %v2478_v22 = vld [vmem:[#allocation4 + $0x30] ss:$8 sps:$4 sm:$0xff]   ;;  %v2483_v23 = vld [vmem:[#allocation4 + $0x44] ss:$8 sps:$4 sm:$0xff]  }
 0x191   :  { %v524_v6 = vadd.f32 1.0, %v2592_v63  ;;  %v530_v10 = vmul.f32 %v522_v62, %v498_v3  ;;  %1352 = vmatpush1.bf16.msra.mxu0 %v2430_v25  ;;  %1033 = vmatpush1.bf16.msra.mxu1 %v2469_v15  ;;  %v2481_v24 = vld [vmem:[#allocation4 + $0x40] ss:$8 sps:$4 sm:$0xff]   ;;  %v2486_v25 = vld [vmem:[#allocation4 + $0x54] ss:$8 sps:$4 sm:$0xff]  }
 0x192   :  { %v531_v9 = vmul.f32 %v523_v2, %v499_v1  ;;  %1353 = vmatprep.subr.bf16.mxu0 %v2435_v26  ;;  %1034 = vmatprep.subr.bf16.mxu1 %v2474_v17  ;;  %v2484_v26 = vld [vmem:[#allocation4 + $0x50] ss:$8 sps:$4 sm:$0xff]  }
 0x193   :  { %v532_v11 = vmul.f32 %v524_v6, %v500_v4 }
 0x194   :  { %v535_v12 = vpack.c.bf16 %v531_v9, %v529_v8 }
 0x195   :  { %v536_v13 = vpack.c.bf16 %v532_v11, %v530_v10  ;;  %1354 = vmatpush1.bf16.msra.mxu0 %v2433_v27  ;;  %1035 = vmatpush1.bf16.msra.mxu1 %v2472_v18  ;;  %v2504_v18 = vld [vmem:[#allocation4 + $0xb4] ss:$8 sps:$4 sm:$0xff]  }
 0x196   :  { %1355 = vmatprep.subr.bf16.mxu0 %v2438_v28  ;;  %1036 = vmatprep.subr.bf16.mxu1 %v2477_v19  ;;  %v2502_v19 = vld [vmem:[#allocation4 + $0xb0] ss:$8 sps:$4 sm:$0xff]  }
 0x197   :  { %2145 = vmatprep.mubr.msk.bf16.mxu1 %vm693_vm1, %v536_v13 }
 0x198   :  { %743 = vmatmul.mubr.bf16.gmra.mrb[4].mxu1 %v535_v12 }
 0x199   :  { %1356 = vmatpush1.bf16.msra.mxu0 %v2436_v29  ;;  %1037 = vmatpush1.bf16.msra.mxu1 %v2475_v20 }
 0x19a   :  { %1357 = vmatprep.subr.bf16.mxu0 %v2441_v30  ;;  %1038 = vmatprep.subr.bf16.mxu1 %v2480_v21 }
 0x19d   :  { %1358 = vmatpush1.bf16.msra.mxu0 %v2439_v31  ;;  %1039 = vmatpush1.bf16.msra.mxu1 %v2478_v22 }
 0x19e   :  { %1359 = vmatprep.subr.bf16.mxu0 %v2444_v32  ;;  %1040 = vmatprep.subr.bf16.mxu1 %v2483_v23 }
 0x1a1   :  { %1360 = vmatpush1.bf16.msra.mxu0 %v2442_v33  ;;  %1041 = vmatpush1.bf16.msra.mxu1 %v2481_v24 }
 0x1a2   :  { %1361 = vmatprep.subr.bf16.mxu0 %v2447_v34  ;;  %1042 = vmatprep.subr.bf16.mxu1 %v2486_v25  ;;  %v2507_v25 = vld [vmem:[#allocation6 + $0x4] ss:$8 sps:$4 sm:$0xff]  }
 0x1a5   :  { %1362 = vmatpush1.bf16.msra.mxu0 %v2445_v35  ;;  %1043 = vmatpush1.bf16.msra.mxu1 %v2484_v26 }
 0x1a6   :  { %1363 = vmatprep.subr.bf16.mxu0 %v2450_v36 }
 0x1a9   :  { %1364 = vmatpush1.bf16.msra.mxu0 %v2448_v37 }
 0x1aa   :  { %1365 = vmatprep.subr.bf16.mxu0 %v2453_v38 }
 0x1ad   :  { %1366 = vmatpush1.bf16.msra.mxu0 %v2451_v39 }
 0x1ae   :  { %1367 = vmatprep.subr.bf16.mxu0 %v2456_v40 }
 0x1b1   :  { %1368 = vmatpush1.bf16.msra.mxu0 %v2454_v41 }
 0x1b2   :  { %1369 = vmatprep.subr.bf16.mxu0 %v2459_v42 }
 0x1b5   :  { %1370 = vmatpush1.bf16.msra.mxu0 %v2457_v43 }
 0x1b6   :  { %1371 = vmatprep.subr.bf16.mxu0 %v2462_v44 }
 0x1b9   :  { %1372 = vmatpush1.bf16.msra.mxu0 %v2460_v45 }
 0x1ba   :  { %1394 = vmatprep.subr.bf16.mxu0 %v2465_v47 }
 0x1bc   :  { %1374 = vmatmul.mubr.bf16.vlgmr.msra.gmra.mrb[8].mxu0 %v3003_v46  ;;  %v561_v46 = vld [vmem:[%s3383_s4] sm:$0x3] }
 0x1bd   :  { %1383 = vmatprep.mubr.bf16.mxu0 %v3011_v48  ;;  %1395 = vmatpush1.bf16.msra.mxu0 %v2463_v49  ;;  %v570_v48 = vrot.slane %v561_v46, %v3049_v7  ;;  %v566_v56 = vrot.slane %v561_v46, %v3044_v5 }
 0x1be   :  { %1396 = vmatprep.subr.bf16.mxu0 %v2468_v50 }
 0x1c1   :  { %1397 = vmatpush1.bf16.msra.mxu0 %v2466_v55 }
 0x1c4   :  { %1384 = vmatmul.mubr.bf16.gmra.mrb[12].mxu0 %v3024_v51 }
 0x1c5   :  { %1426 = vmatprep.mubr.bf16.mxu0 %v2725_v52 }
 0x1cc   :  { %2212 = vmatmul.mubr.msk.bf16.vlgmr.msra.gmra.mrb[8].mxu0 %vm380_vm0, %v3031_v53 }
 0x1cd   :  { %1436 = vmatprep.mubr.bf16.mxu0 %v2725_v52 }
 0x1d4   :  { %2213 = vmatmul.mubr.msk.bf16.gmra.mrb[12].mxu0 %vm380_vm0, %v3039_v54 }
 0x263   :  { %v734_v57 = vpop.f32.mrb[0].mxu1 }
 0x264   :  { %v736_v51 = vpop.f32.mrb[1].mxu1  ;;  %v735_v60 = vadd.f32 %v734_v57, %v566_v56 }
 0x265   :  { %v737_v58 = vadd.f32 %v736_v51, %v570_v48  ;;  %v738_v59 = vpop.f32.mrb[2].mxu1 }
 0x266   :  { %v740_v61 = vpop.f32.mrb[3].mxu1  ;;  %v739_v63 = vadd.f32 %v738_v59, %v566_v56 }
 0x267   :  { %v741_v53 = vadd.f32 %v740_v61, %v570_v48  ;;  %v755_v52 = vsel %vm693_vm1, %v737_v58, 0.0 }
 0x268   :  { %v756_v62 = vadd.f32 %v755_v52, %v735_v60  ;;  %v2487_v52 = vld [vmem:[#allocation4 + $0x60] ss:$8 sps:$4 sm:$0xff]  }
 0x269   :  { %v759_v54 = vsel %vm693_vm1, %v741_v53, 0.0 }
 0x26a   :  { %757 = vadd.xlane.f32.xlu0 %v756_v62  ;;  %v760_v2 = vadd.f32 %v759_v54, %v739_v63  ;;  %v2492_v62 = vld [vmem:[#allocation4 + $0x74] ss:$8 sps:$4 sm:$0xff]   ;;  %v2490_v54 = vld [vmem:[#allocation4 + $0x70] ss:$8 sps:$4 sm:$0xff]  }
 0x26b   :  { %v744_v0 = vpop.f32.mrb[4].mxu1 }
 0x26c   :  { %v746_v1 = vpop.f32.mrb[5].mxu1  ;;  %v745_v6 = vadd.f32 %v744_v0, %v566_v56  ;;  %v2493_v0 = vld [vmem:[#allocation4 + $0x80] ss:$8 sps:$4 sm:$0xff]  }
 0x26d   :  { %v747_v3 = vadd.f32 %v746_v1, %v570_v48  ;;  %v748_v4 = vpop.f32.mrb[6].mxu1  ;;  %v2498_v1 = vld [vmem:[#allocation4 + $0x94] ss:$8 sps:$4 sm:$0xff]  }
 0x26e   :  { %v750_v8 = vpop.f32.mrb[7].mxu1  ;;  %761 = vadd.xlane.f32.xlu0 %v760_v2  ;;  %v749_v13 = vadd.f32 %v748_v4, %v566_v56  ;;  %v2496_v2 = vld [vmem:[#allocation4 + $0x90] ss:$8 sps:$4 sm:$0xff]   ;;  %v2501_v4 = vld [vmem:[#allocation4 + $0xa4] ss:$8 sps:$4 sm:$0xff]  }
 0x26f   :  { %v751_v9 = vadd.f32 %v750_v8, %v570_v48  ;;  %v763_v10 = vsel %vm693_vm1, %v747_v3, 0.0  ;;  %v2499_v8 = vld [vmem:[#allocation4 + $0xa0] ss:$8 sps:$4 sm:$0xff]  }
 0x270   :  { %v764_v11 = vadd.f32 %v763_v10, %v745_v6 }
 0x271   :  { %v767_v12 = vsel %vm693_vm1, %v751_v9, 0.0 }
 0x272   :  { %765 = vadd.xlane.f32.xlu1 %v764_v11  ;;  %v768_v14 = vadd.f32 %v767_v12, %v749_v13 }
 0x276   :  { %769 = vadd.xlane.f32.xlu1 %v768_v14 }
 0x2f7   :  { %v758_v27 = vpop.xlane.xlu0 %757 }
 0x2f8   :  { %v772_v28 = vmul.f32 0.0052083335, %v758_v27 }
 0x2fa   :  { %v3181_v29 = vsub.f32 %v735_v60, %v772_v28  ;;  %v3183_v30 = vsub.f32 %v737_v58, %v772_v28 }
 0x2fb   :  { %v762_v31 = vpop.xlane.xlu0 %761 }
 0x2fc   :  { %v773_v32 = vmul.f32 0.0052083335, %v762_v31  ;;  %v784_v33 = vmul.f32 %v3181_v29, %v3181_v29  ;;  %v785_v34 = vmul.f32 %v3183_v30, %v3183_v30 }
 0x2fe   :  { %v3189_v35 = vsub.f32 %v739_v63, %v773_v32  ;;  %v3191_v36 = vsub.f32 %v741_v53, %v773_v32  ;;  %v792_v37 = vsel %vm693_vm1, %v785_v34, 0.0  ;;  %v2489_v53 = vld [vmem:[#allocation4 + $0x64] ss:$8 sps:$4 sm:$0xff]  }
 0x2ff   :  { %v766_v38 = vpop.xlane.xlu1 %765  ;;  %v793_v39 = vadd.f32 %v792_v37, %v784_v33  ;;  %1044 = vmatprep.subr.bf16.mxu1 %v2489_v53  ;;  %v2495_v63 = vld [vmem:[#allocation4 + $0x84] ss:$8 sps:$4 sm:$0xff]  }
 0x300   :  { %v774_v40 = vmul.f32 0.0052083335, %v766_v38  ;;  %v786_v41 = vmul.f32 %v3189_v35, %v3189_v35  ;;  %v787_v42 = vmul.f32 %v3191_v36, %v3191_v36  ;;  %1045 = vmatpush1.bf16.msra.mxu1 %v2487_v52 }
 0x301   :  { %794 = vadd.xlane.f32.xlu0 %v793_v39  ;;  %1046 = vmatprep.subr.bf16.mxu1 %v2492_v62 }
 0x302   :  { %v3198_v43 = vsub.f32 %v745_v6, %v774_v40  ;;  %v3200_v44 = vsub.f32 %v747_v3, %v774_v40  ;;  %v796_v45 = vsel %vm693_vm1, %v787_v42, 0.0  ;;  %v1428_v3 = vpop.f32.mrb[8].mxu0  ;;  %v1149_v6 = vld [vmem:[%s3389_s10] sm:$0x3] }
 0x303   :  { %v770_v47 = vpop.xlane.xlu1 %769  ;;  %v797_v49 = vadd.f32 %v796_v45, %v786_v41  ;;  %v1154_v10 = vrot.slane %v1149_v6, %v3044_v5  ;;  %v1158_v11 = vrot.slane %v1149_v6, %v3049_v7 }
 0x304   :  { %v775_v50 = vmul.f32 0.0052083335, %v770_v47  ;;  %v788_v55 = vmul.f32 %v3198_v43, %v3198_v43  ;;  %v789_v46 = vmul.f32 %v3200_v44, %v3200_v44  ;;  %1047 = vmatpush1.bf16.msra.mxu1 %v2490_v54 }
 0x305   :  { %798 = vadd.xlane.f32.xlu1 %v797_v49  ;;  %1048 = vmatprep.subr.bf16.mxu1 %v2495_v63  ;;  %v2286_v14 = vadd.f32 %v1428_v3, %v1154_v10 }
 0x306   :  { %v3207_v48 = vsub.f32 %v749_v13, %v775_v50  ;;  %v3209_v56 = vsub.f32 %v751_v9, %v775_v50  ;;  %v800_v57 = vsel %vm693_vm1, %v789_v46, 0.0  ;;  %v1430_v9 = vpop.f32.mrb[9].mxu0 }
 0x307   :  { %v801_v51 = vadd.f32 %v800_v57, %v788_v55  ;;  %v1432_v12 = vpop.f32.mrb[10].mxu0  ;;  %v2287_v15 = vadd.f32 %v1430_v9, %v1158_v11  ;;  %v1455_v20 = vmul.f32 0.70710677, %v2286_v14  ;;  %v1447_v41 = vmul.f32 0.5, %v2286_v14 }
 0x308   :  { %v790_v58 = vmul.f32 %v3207_v48, %v3207_v48  ;;  %v791_v59 = vmul.f32 %v3209_v56, %v3209_v56  ;;  %1049 = vmatpush1.bf16.msra.mxu1 %v2493_v0  ;;  %v1434_v13 = vpop.f32.mrb[11].mxu0  ;;  %v2288_v16 = vadd.f32 %v1432_v12, %v1154_v10 }
 0x309   :  { %802 = vadd.xlane.f32.xlu0 %v801_v51  ;;  %1050 = vmatprep.subr.bf16.mxu1 %v2498_v1  ;;  %v2289_v17 = vadd.f32 %v1434_v13, %v1158_v11  ;;  %v1456_v21 = vmul.f32 0.70710677, %v2287_v15  ;;  %2593 = verf.f32 %v1455_v20  ;;  %v1438_v24 = vpop.f32.mrb[12].mxu0  ;;  %v1448_v45 = vmul.f32 0.5, %v2287_v15 }
 0x30a   :  { %v804_v60 = vsel %vm693_vm1, %v791_v59, 0.0  ;;  %v1457_v22 = vmul.f32 0.70710677, %v2288_v16  ;;  %v1440_v26 = vpop.f32.mrb[13].mxu0  ;;  %v2290_v28 = vadd.f32 %v1438_v24, %v1154_v10  ;;  %v1449_v50 = vmul.f32 0.5, %v2288_v16 }
 0x30b   :  { %v805_v61 = vadd.f32 %v804_v60, %v790_v58  ;;  %v1458_v23 = vmul.f32 0.70710677, %v2289_v17  ;;  %2595 = verf.f32 %v1456_v21  ;;  %v1442_v27 = vpop.f32.mrb[14].mxu0  ;;  %v2291_v31 = vadd.f32 %v1440_v26, %v1158_v11 }
 0x30c   :  { %1051 = vmatpush1.bf16.msra.mxu1 %v2496_v2  ;;  %2597 = verf.f32 %v1457_v22  ;;  %v2292_v32 = vadd.f32 %v1442_v27, %v1154_v10  ;;  %v1444_v33 = vpop.f32.mrb[15].mxu0  ;;  %v1459_v34 = vmul.f32 0.70710677, %v2290_v28  ;;  %v1450_v57 = vmul.f32 0.5, %v2289_v17 }
 0x30d   :  { %806 = vadd.xlane.f32.xlu1 %v805_v61  ;;  %1052 = vmatprep.subr.bf16.mxu1 %v2501_v4  ;;  %2599 = verf.f32 %v1458_v23  ;;  %v1460_v37 = vmul.f32 0.70710677, %v2291_v31  ;;  %v2293_v39 = vadd.f32 %v1444_v33, %v1158_v11  ;;  %v1451_v62 = vmul.f32 0.5, %v2290_v28  ;;  %v753_v28 = vld [vmem:[%s3384_s5] sm:$0x3] }
 0x30e   :  { %v1461_v38 = vmul.f32 0.70710677, %v2292_v32  ;;  %2601 = verf.f32 %v1459_v34  ;;  %v1452_v0 = vmul.f32 0.5, %v2291_v31  ;;  %v1453_v4 = vmul.f32 0.5, %v2292_v32 }
 0x30f   :  { %2603 = verf.f32 %v1460_v37  ;;  %v1462_v40 = vmul.f32 0.70710677, %v2293_v39  ;;  %v1454_v9 = vmul.f32 0.5, %v2293_v39  ;;  %v832_v34 = vrot.slane %v753_v28, %v3044_v5 }
 0x310   :  { %1053 = vmatpush1.bf16.msra.mxu1 %v2499_v8  ;;  %2605 = verf.f32 %v1461_v38  ;;  %v836_v38 = vrot.slane %v753_v28, %v3049_v7  ;;  %v2522_v28 = vld [vmem:[#allocation6 + $0x54] ss:$8 sps:$4 sm:$0xff]  }
 0x311   :  { %1054 = vmatprep.subr.bf16.mxu1 %v2504_v18  ;;  %2607 = verf.f32 %v1462_v40 }
 0x313   :  { %v2594_v42 = vpop.eup %2593 }
 0x314   :  { %1055 = vmatpush1.bf16.msra.mxu1 %v2502_v19  ;;  %v1471_v49 = vadd.f32 1.0, %v2594_v42 }
 0x315   :  { %1653 = vmatprep.subr.bf16.mxu1 %v2507_v25  ;;  %v2596_v47 = vpop.eup %2595 }
 0x316   :  { %v2598_v55 = vpop.eup %2597  ;;  %v1472_v46 = vadd.f32 1.0, %v2596_v47  ;;  %v3222_v58 = vmul.f32 %v1471_v49, %v1447_v41  ;;  %v754_v41 = vld [vmem:[%s3385_s6] sm:$0x3] }
 0x317   :  { %v2600_v51 = vpop.eup %2599  ;;  %v1473_v59 = vadd.f32 1.0, %v2598_v55  ;;  %v851_v49 = vrot.slane %v754_v41, %v3044_v5 }
 0x318   :  { %v3224_v60 = vmul.f32 %v1472_v46, %v1448_v45  ;;  %v1474_v61 = vadd.f32 1.0, %v2600_v51  ;;  %v2602_v54 = vpop.eup %2601 }
 0x319   :  { %v3226_v53 = vmul.f32 %v1473_v59, %v1449_v50  ;;  %v2604_v1 = vpop.eup %2603  ;;  %v1475_v3 = vadd.f32 1.0, %v2602_v54  ;;  %v855_v50 = vrot.slane %v754_v41, %v3049_v7  ;;  %v2540_v41 = vld [vmem:[#allocation6 + $0xb4] ss:$8 sps:$4 sm:$0xff]  }
 0x31a   :  { %v3228_v52 = vmul.f32 %v1474_v61, %v1450_v57  ;;  %v2606_v6 = vpop.eup %2605  ;;  %v1476_v8 = vadd.f32 1.0, %v2604_v1 }
 0x31b   :  { %v1487_v63 = vpack.c.bf16 %v3226_v53, %v3222_v58  ;;  %v2608_v10 = vpop.eup %2607  ;;  %v3234_v11 = vmul.f32 %v1475_v3, %v1451_v62  ;;  %v1477_v12 = vadd.f32 1.0, %v2606_v6  ;;  %v2505_v3 = vld [vmem:[#allocation6] ss:$8 sps:$4 sm:$0xff]  }
 0x31c   :  { %v1488_v2 = vpack.c.bf16 %v3228_v52, %v3224_v60  ;;  %v3236_v13 = vmul.f32 %v1476_v8, %v1452_v0  ;;  %v1478_v14 = vadd.f32 1.0, %v2608_v10  ;;  %v2510_v8 = vld [vmem:[#allocation6 + $0x14] ss:$8 sps:$4 sm:$0xff]   ;;  %v2531_v60 = vld [vmem:[#allocation6 + $0x84] ss:$8 sps:$4 sm:$0xff]  }
 0x31d   :  { %v3238_v15 = vmul.f32 %v1477_v12, %v1453_v4  ;;  %v2529_v52 = vld [vmem:[#allocation6 + $0x80] ss:$8 sps:$4 sm:$0xff]  }
 0x31e   :  { %v3240_v16 = vmul.f32 %v1478_v14, %v1454_v9 }
 0x31f   :  { %v1489_v17 = vpack.c.bf16 %v3238_v15, %v3234_v11 }
 0x320   :  { %v1490_v18 = vpack.c.bf16 %v3240_v16, %v3236_v13 }
 0x38e   :  { %v795_v19 = vpop.xlane.xlu0 %794 }
 0x38f   :  { %v808_v20 = vmul.f32 0.0052083335, %v795_v19 }
 0x391   :  { %v812_v21 = vadd.f32 1e-06, %v808_v20 }
 0x392   :  { %v799_v22 = vpop.xlane.xlu1 %798 }
 0x393   :  { %2609 = vrsqrt.f32 %v812_v21  ;;  %v809_v23 = vmul.f32 0.0052083335, %v799_v22 }
 0x395   :  { %v813_v24 = vadd.f32 1e-06, %v809_v23 }
 0x396   :  { %v803_v25 = vpop.xlane.xlu0 %802 }
 0x397   :  { %2611 = vrsqrt.f32 %v813_v24  ;;  %v810_v26 = vmul.f32 0.0052083335, %v803_v25  ;;  %v2516_v25 = vld [vmem:[#allocation6 + $0x34] ss:$8 sps:$4 sm:$0xff]  }
 0x399   :  { %v814_v27 = vadd.f32 1e-06, %v810_v26  ;;  %v2519_v26 = vld [vmem:[#allocation6 + $0x44] ss:$8 sps:$4 sm:$0xff]  }
 0x39a   :  { %v807_v31 = vpop.xlane.xlu1 %806 }
 0x39b   :  { %2613 = vrsqrt.f32 %v814_v27  ;;  %v811_v32 = vmul.f32 0.0052083335, %v807_v31  ;;  %v2517_v27 = vld [vmem:[#allocation6 + $0x40] ss:$8 sps:$4 sm:$0xff]   ;;  %v2520_v31 = vld [vmem:[#allocation6 + $0x50] ss:$8 sps:$4 sm:$0xff]  }
 0x39d   :  { %v2610_v33 = vpop.eup %2609  ;;  %v815_v37 = vadd.f32 1e-06, %v811_v32  ;;  %v2525_v32 = vld [vmem:[#allocation6 + $0x64] ss:$8 sps:$4 sm:$0xff]  }
 0x39e   :  { %v820_v39 = vmul.f32 %v2610_v33, %v3181_v29  ;;  %v821_v40 = vmul.f32 %v2610_v33, %v3183_v30  ;;  %v2523_v33 = vld [vmem:[#allocation6 + $0x60] ss:$8 sps:$4 sm:$0xff]  }
 0x39f   :  { %2615 = vrsqrt.f32 %v815_v37  ;;  %v2526_v37 = vld [vmem:[#allocation6 + $0x70] ss:$8 sps:$4 sm:$0xff]  }
 0x3a0   :  { %v839_v45 = vmul.f32 %v832_v34, %v820_v39  ;;  %v840_v47 = vmul.f32 %v836_v38, %v821_v40  ;;  %v2537_v39 = vld [vmem:[#allocation6 + $0xa4] ss:$8 sps:$4 sm:$0xff]   ;;  %v2535_v40 = vld [vmem:[#allocation6 + $0xa0] ss:$8 sps:$4 sm:$0xff]  }
 0x3a1   :  { %v2612_v42 = vpop.eup %2611 }
 0x3a2   :  { %v822_v55 = vmul.f32 %v2612_v42, %v3189_v35  ;;  %v823_v46 = vmul.f32 %v2612_v42, %v3191_v36  ;;  %v859_v30 = vadd.f32 %v855_v50, %v840_v47  ;;  %v858_v59 = vadd.f32 %v851_v49, %v839_v45  ;;  %v2538_v42 = vld [vmem:[#allocation6 + $0xb0] ss:$8 sps:$4 sm:$0xff]   ;;  %v894_v45 = vld [vmem:[%s3387_s8] sm:$0x3] }
 0x3a3   :  { %v899_v47 = vrot.slane %v894_v45, %v3044_v5 }
 0x3a4   :  { %v841_v57 = vmul.f32 %v832_v34, %v822_v55  ;;  %v842_v29 = vmul.f32 %v836_v38, %v823_v46 }
 0x3a5   :  { %v2614_v51 = vpop.eup %2613 }
 0x3a6   :  { %v825_v61 = vmul.f32 %v2614_v51, %v3200_v44  ;;  %v861_v62 = vadd.f32 %v855_v50, %v842_v29  ;;  %v860_v54 = vadd.f32 %v851_v49, %v841_v57  ;;  %v824_v0 = vmul.f32 %v2614_v51, %v3198_v43  ;;  %v2508_v44 = vld [vmem:[#allocation6 + $0x10] ss:$8 sps:$4 sm:$0xff]   ;;  %v2513_v43 = vld [vmem:[#allocation6 + $0x24] ss:$8 sps:$4 sm:$0xff]  }
 0x3a8   :  { %v867_v1 = vpack.c.bf16 %v861_v62, %v859_v30  ;;  %v866_v4 = vpack.c.bf16 %v860_v54, %v858_v59  ;;  %v844_v36 = vmul.f32 %v836_v38, %v825_v61  ;;  %v843_v10 = vmul.f32 %v832_v34, %v824_v0  ;;  %v1515_v0 = vld [vmem:[%s3391_s12] sm:$0x3] }
 0x3a9   :  { %v2616_v6 = vpop.eup %2615 }
 0x3aa   :  { %v827_v35 = vmul.f32 %v2616_v6, %v3209_v56  ;;  %2170 = vmatprep.mubr.msk.bf16.mxu1 %vm693_vm1, %v867_v1  ;;  %v826_v9 = vmul.f32 %v2616_v6, %v3207_v48  ;;  %v863_v19 = vadd.f32 %v855_v50, %v844_v36  ;;  %v862_v21 = vadd.f32 %v851_v49, %v843_v10  ;;  %v2511_v56 = vld [vmem:[#allocation6 + $0x20] ss:$8 sps:$4 sm:$0xff]   ;;  %v2514_v48 = vld [vmem:[#allocation6 + $0x30] ss:$8 sps:$4 sm:$0xff]  }
 0x3ab   :  { %1065 = vmatmul.mubr.bf16.vlgmr.msra.gmra.mrb[8].mxu1 %v866_v4  ;;  %v1524_v1 = vrot.slane %v1515_v0, %v3049_v7 }
 0x3ac   :  { %1654 = vmatpush1.bf16.msra.mxu1 %v2505_v3  ;;  %v846_v12 = vmul.f32 %v836_v38, %v827_v35  ;;  %v845_v14 = vmul.f32 %v832_v34, %v826_v9  ;;  %v2528_v34 = vld [vmem:[#allocation6 + $0x74] ss:$8 sps:$4 sm:$0xff]   ;;  %v2532_v38 = vld [vmem:[#allocation6 + $0x90] ss:$8 sps:$4 sm:$0xff]   ;;  %v1520_v3 = vrot.slane %v1515_v0, %v3044_v5 }
 0x3ad   :  { %1655 = vmatprep.subr.bf16.mxu1 %v2510_v8 }
 0x3ae   :  { %v865_v20 = vadd.f32 %v855_v50, %v846_v12  ;;  %v864_v22 = vadd.f32 %v851_v49, %v845_v14  ;;  %v903_v49 = vrot.slane %v894_v45, %v3049_v7 }
 0x3b0   :  { %1656 = vmatpush1.bf16.msra.mxu1 %v2508_v44  ;;  %v869_v23 = vpack.c.bf16 %v865_v20, %v863_v19  ;;  %v868_v24 = vpack.c.bf16 %v864_v22, %v862_v21 }
 0x3b1   :  { %1657 = vmatprep.subr.bf16.mxu1 %v2513_v43 }
 0x3b2   :  { %2171 = vmatprep.mubr.msk.bf16.mxu1 %vm693_vm1, %v869_v23 }
 0x3b3   :  { %1075 = vmatmul.mubr.bf16.gmra.mrb[12].mxu1 %v868_v24 }
 0x3b4   :  { %1658 = vmatpush1.bf16.msra.mxu1 %v2511_v56  ;;  %2238 = vmatprep.mubr.msk.bf16.mxu1 %vm693_vm1, %v1488_v2  ;;  %v2534_v2 = vld [vmem:[#allocation6 + $0x94] ss:$8 sps:$4 sm:$0xff]  }
 0x3b5   :  { %1659 = vmatprep.subr.bf16.mxu1 %v2516_v25 }
 0x3b8   :  { %1660 = vmatpush1.bf16.msra.mxu1 %v2514_v48 }
 0x3b9   :  { %1661 = vmatprep.subr.bf16.mxu1 %v2519_v26 }
 0x3bc   :  { %1662 = vmatpush1.bf16.msra.mxu1 %v2517_v27 }
 0x3bd   :  { %1663 = vmatprep.subr.bf16.mxu1 %v2522_v28 }
 0x3c0   :  { %1664 = vmatpush1.bf16.msra.mxu1 %v2520_v31 }
 0x3c1   :  { %1665 = vmatprep.subr.bf16.mxu1 %v2525_v32  ;;  %v2541_v32 = vld [vmem:[#allocation7] ss:$8 sps:$4 sm:$0xff]  }
 0x3c4   :  { %1666 = vmatpush1.bf16.msra.mxu1 %v2523_v33  ;;  %v2543_v33 = vld [vmem:[#allocation7 + $0x4] ss:$8 sps:$4 sm:$0xff]  }
 0x3c5   :  { %1667 = vmatprep.subr.bf16.mxu1 %v2528_v34  ;;  %v2546_v34 = vld [vmem:[#allocation7 + $0x14] ss:$8 sps:$4 sm:$0xff]  }
 0x3c8   :  { %1668 = vmatpush1.bf16.msra.mxu1 %v2526_v37  ;;  %v2544_v37 = vld [vmem:[#allocation7 + $0x10] ss:$8 sps:$4 sm:$0xff]  }
 0x3c9   :  { %1669 = vmatprep.subr.bf16.mxu1 %v2531_v60  ;;  %v2549_v60 = vld [vmem:[#allocation7 + $0x24] ss:$8 sps:$4 sm:$0xff]  }
 0x3cc   :  { %1670 = vmatpush1.bf16.msra.mxu1 %v2529_v52  ;;  %v2547_v52 = vld [vmem:[#allocation7 + $0x20] ss:$8 sps:$4 sm:$0xff]  }
 0x3cd   :  { %1671 = vmatprep.subr.bf16.mxu1 %v2534_v2  ;;  %v2552_v2 = vld [vmem:[#allocation7 + $0x34] ss:$8 sps:$4 sm:$0xff]  }
 0x3d0   :  { %1672 = vmatpush1.bf16.msra.mxu1 %v2532_v38  ;;  %v2550_v38 = vld [vmem:[#allocation7 + $0x30] ss:$8 sps:$4 sm:$0xff]  }
 0x3d1   :  { %1673 = vmatprep.subr.bf16.mxu1 %v2537_v39  ;;  %v2555_v39 = vld [vmem:[#allocation7 + $0x44] ss:$8 sps:$4 sm:$0xff]  }
 0x3d4   :  { %1674 = vmatpush1.bf16.msra.mxu1 %v2535_v40  ;;  %v2553_v40 = vld [vmem:[#allocation7 + $0x40] ss:$8 sps:$4 sm:$0xff]  }
 0x3d5   :  { %1675 = vmatprep.subr.bf16.mxu1 %v2540_v41  ;;  %v2558_v41 = vld [vmem:[#allocation7 + $0x54] ss:$8 sps:$4 sm:$0xff]  }
 0x3d8   :  { %1676 = vmatpush1.bf16.msra.mxu1 %v2538_v42  ;;  %v2556_v42 = vld [vmem:[#allocation7 + $0x50] ss:$8 sps:$4 sm:$0xff]  }
 0x3d9   :  { %1984 = vmatprep.subr.bf16.mxu1 %v2543_v33 }
 0x3db   :  { %1686 = vmatmul.mubr.bf16.vlgmr.msra.gmra.mrb[16].mxu1 %v1487_v63 }
 0x3dc   :  { %2239 = vmatprep.mubr.msk.bf16.mxu1 %vm693_vm1, %v1490_v18  ;;  %1985 = vmatpush1.bf16.msra.mxu1 %v2541_v32 }
 0x3dd   :  { %1986 = vmatprep.subr.bf16.mxu1 %v2546_v34 }
 0x3e0   :  { %1987 = vmatpush1.bf16.msra.mxu1 %v2544_v37  ;;  %v1706_v37 = vld [vmem:[%s3392_s13] sm:$0x3] }
 0x3e1   :  { %1988 = vmatprep.subr.bf16.mxu1 %v2549_v60 }
 0x3e3   :  { %1696 = vmatmul.mubr.bf16.gmra.mrb[20].mxu1 %v1489_v17 }
 0x3e4   :  { %1989 = vmatpush1.bf16.msra.mxu1 %v2547_v52 }
 0x3e5   :  { %1990 = vmatprep.subr.bf16.mxu1 %v2552_v2 }
 0x3e8   :  { %1991 = vmatpush1.bf16.msra.mxu1 %v2550_v38  ;;  %v1784_v38 = vrot.slane %v1706_v37, %v3044_v5 }
 0x3e9   :  { %1992 = vmatprep.subr.bf16.mxu1 %v2555_v39  ;;  %v1707_v39 = vld [vmem:[%s3393_s14] sm:$0x3] }
 0x3ec   :  { %1993 = vmatpush1.bf16.msra.mxu1 %v2553_v40  ;;  %v1788_v40 = vrot.slane %v1706_v37, %v3049_v7 }
 0x3ed   :  { %1994 = vmatprep.subr.bf16.mxu1 %v2558_v41 }
 0x3f0   :  { %1995 = vmatpush1.bf16.msra.mxu1 %v2556_v42 }
 0x47e   :  { %v1066_v50 = vpop.f32.mrb[8].mxu1 }
 0x47f   :  { %v1067_v58 = vadd.f32 %v1066_v50, %v899_v47  ;;  %v1068_v53 = vpop.f32.mrb[9].mxu1 }
 0x480   :  { %v1069_v63 = vadd.f32 %v1068_v53, %v903_v49  ;;  %v1070_v55 = vpop.f32.mrb[10].mxu1 }
 0x481   :  { %v1071_v13 = vadd.f32 %v1070_v55, %v899_v47  ;;  %v1072_v16 = vpop.f32.mrb[11].mxu1 }
 0x482   :  { %v2270_v18 = vpack.c.bf16 %v1069_v63, %v1067_v58  ;;  %v1073_v46 = vadd.f32 %v1072_v16, %v903_v49 }
 0x484   :  { %1109 = vst [vmem:[%s3396_s17] sm:$0xff] %v2270_v18  ;;  %v2271_v11 = vpack.c.bf16 %v1073_v46, %v1071_v13 }
 0x486   :  { %1110 = vst [vmem:[%s3396_s17 + $0x8] sm:$0xff] %v2271_v11  ;;  %v1076_v15 = vpop.f32.mrb[12].mxu1 }
 0x487   :  { %v1077_v17 = vadd.f32 %v1076_v15, %v899_v47  ;;  %v1078_v57 = vpop.f32.mrb[13].mxu1 }
 0x488   :  { %v1079_v29 = vadd.f32 %v1078_v57, %v903_v49  ;;  %v1080_v51 = vpop.f32.mrb[14].mxu1 }
 0x489   :  { %v1081_v30 = vadd.f32 %v1080_v51, %v899_v47  ;;  %v1082_v59 = vpop.f32.mrb[15].mxu1 }
 0x48a   :  { %v2272_v61 = vpack.c.bf16 %v1079_v29, %v1077_v17  ;;  %v1083_v62 = vadd.f32 %v1082_v59, %v903_v49 }
 0x48c   :  { %1111 = vst [vmem:[%s3396_s17 + $0x10] sm:$0xff] %v2272_v61  ;;  %v2273_v54 = vpack.c.bf16 %v1083_v62, %v1081_v30 }
 0x48e   :  { %1112 = vst [vmem:[%s3396_s17 + $0x18] sm:$0xff] %v2273_v54 }
 0x4ae   :  { %v1687_v4 = vpop.f32.mrb[16].mxu1 }
 0x4af   :  { %v1689_v6 = vpop.f32.mrb[17].mxu1  ;;  %v1688_v36 = vadd.f32 %v1687_v4, %v1520_v3 }
 0x4b0   :  { %v1690_v8 = vadd.f32 %v1689_v6, %v1524_v1  ;;  %v1691_v35 = vpop.f32.mrb[18].mxu1 }
 0x4b1   :  { %v1693_v9 = vpop.f32.mrb[19].mxu1  ;;  %v1692_v12 = vadd.f32 %v1691_v35, %v1520_v3 }
 0x4b2   :  { %v1694_v10 = vadd.f32 %v1693_v9, %v1524_v1  ;;  %v1708_v44 = vsel %vm693_vm1, %v1690_v8, 0.0 }
 0x4b3   :  { %v1709_v14 = vadd.f32 %v1708_v44, %v1688_v36  ;;  %v2559_v44 = vld [vmem:[#allocation7 + $0x60] ss:$8 sps:$4 sm:$0xff]  }
 0x4b4   :  { %v1712_v43 = vsel %vm693_vm1, %v1694_v10, 0.0 }
 0x4b5   :  { %1710 = vadd.xlane.f32.xlu0 %v1709_v14  ;;  %v1713_v19 = vadd.f32 %v1712_v43, %v1692_v12  ;;  %v2562_v14 = vld [vmem:[#allocation7 + $0x70] ss:$8 sps:$4 sm:$0xff]   ;;  %v2567_v43 = vld [vmem:[#allocation7 + $0x84] ss:$8 sps:$4 sm:$0xff]  }
 0x4b6   :  { %v1697_v20 = vpop.f32.mrb[20].mxu1 }
 0x4b7   :  { %v1699_v21 = vpop.f32.mrb[21].mxu1  ;;  %1714 = vadd.xlane.f32.xlu1 %v1713_v19  ;;  %v1698_v56 = vadd.f32 %v1697_v20, %v1520_v3  ;;  %v2565_v19 = vld [vmem:[#allocation7 + $0x80] ss:$8 sps:$4 sm:$0xff]   ;;  %v2570_v20 = vld [vmem:[#allocation7 + $0x94] ss:$8 sps:$4 sm:$0xff]  }
 0x4b8   :  { %v1700_v22 = vadd.f32 %v1699_v21, %v1524_v1  ;;  %v1701_v23 = vpop.f32.mrb[22].mxu1  ;;  %v2568_v21 = vld [vmem:[#allocation7 + $0x90] ss:$8 sps:$4 sm:$0xff]  }
 0x4b9   :  { %v1703_v24 = vpop.f32.mrb[23].mxu1  ;;  %v1702_v26 = vadd.f32 %v1701_v23, %v1520_v3  ;;  %v2571_v23 = vld [vmem:[#allocation7 + $0xa0] ss:$8 sps:$4 sm:$0xff]  }
 0x4ba   :  { %v1704_v25 = vadd.f32 %v1703_v24, %v1524_v1  ;;  %v1716_v48 = vsel %vm693_vm1, %v1700_v22, 0.0  ;;  %v2574_v24 = vld [vmem:[#allocation7 + $0xb0] ss:$8 sps:$4 sm:$0xff]  }
 0x4bb   :  { %v1717_v27 = vadd.f32 %v1716_v48, %v1698_v56 }
 0x4bc   :  { %v1720_v28 = vsel %vm693_vm1, %v1704_v25, 0.0 }
 0x4bd   :  { %1718 = vadd.xlane.f32.xlu0 %v1717_v27  ;;  %v1721_v31 = vadd.f32 %v1720_v28, %v1702_v26 }
 0x4bf   :  { %1722 = vadd.xlane.f32.xlu1 %v1721_v31 }
 0x542   :  { %v1711_v45 = vpop.xlane.xlu0 %1710 }
 0x543   :  { %v1724_v47 = vmul.f32 0.0052083335, %v1711_v45 }
 0x544   :  { %v1715_v49 = vpop.xlane.xlu1 %1714 }
 0x545   :  { %v3306_v50 = vsub.f32 %v1688_v36, %v1724_v47  ;;  %v3308_v58 = vsub.f32 %v1690_v8, %v1724_v47  ;;  %v1725_v53 = vmul.f32 0.0052083335, %v1715_v49  ;;  %v1803_v49 = vrot.slane %v1707_v39, %v3044_v5 }
 0x547   :  { %v3310_v63 = vsub.f32 %v1692_v12, %v1725_v53  ;;  %v3312_v55 = vsub.f32 %v1694_v10, %v1725_v53  ;;  %v1736_v13 = vmul.f32 %v3306_v50, %v3306_v50  ;;  %v1737_v16 = vmul.f32 %v3308_v58, %v3308_v58  ;;  %v2561_v10 = vld [vmem:[#allocation7 + $0x64] ss:$8 sps:$4 sm:$0xff]   ;;  %v2564_v12 = vld [vmem:[#allocation7 + $0x74] ss:$8 sps:$4 sm:$0xff]  }
 0x548   :  { %1996 = vmatprep.subr.bf16.mxu1 %v2561_v10  ;;  %v1807_v53 = vrot.slane %v1707_v39, %v3049_v7 }
 0x549   :  { %v1744_v18 = vsel %vm693_vm1, %v1737_v16, 0.0  ;;  %v1738_v46 = vmul.f32 %v3310_v63, %v3310_v63  ;;  %v1739_v11 = vmul.f32 %v3312_v55, %v3312_v55  ;;  %1997 = vmatpush1.bf16.msra.mxu1 %v2559_v44 }
 0x54a   :  { %v1719_v15 = vpop.xlane.xlu0 %1718  ;;  %v1745_v17 = vadd.f32 %v1744_v18, %v1736_v13  ;;  %1998 = vmatprep.subr.bf16.mxu1 %v2564_v12 }
 0x54b   :  { %v1726_v57 = vmul.f32 0.0052083335, %v1719_v15  ;;  %v1748_v29 = vsel %vm693_vm1, %v1739_v11, 0.0 }
 0x54c   :  { %v1723_v51 = vpop.xlane.xlu1 %1722  ;;  %1746 = vadd.xlane.f32.xlu0 %v1745_v17  ;;  %v1749_v30 = vadd.f32 %v1748_v29, %v1738_v46 }
 0x54d   :  { %v3324_v59 = vsub.f32 %v1698_v56, %v1726_v57  ;;  %v3326_v61 = vsub.f32 %v1700_v22, %v1726_v57  ;;  %v1727_v62 = vmul.f32 0.0052083335, %v1723_v51  ;;  %1999 = vmatpush1.bf16.msra.mxu1 %v2562_v14  ;;  %v2573_v22 = vld [vmem:[#allocation7 + $0xa4] ss:$8 sps:$4 sm:$0xff]   ;;  %v2576_v56 = vld [vmem:[#allocation7 + $0xb4] ss:$8 sps:$4 sm:$0xff]  }
 0x54e   :  { %1750 = vadd.xlane.f32.xlu1 %v1749_v30  ;;  %2000 = vmatprep.subr.bf16.mxu1 %v2567_v43 }
 0x54f   :  { %v3328_v54 = vsub.f32 %v1702_v26, %v1727_v62  ;;  %v3330_v0 = vsub.f32 %v1704_v25, %v1727_v62  ;;  %v1740_v1 = vmul.f32 %v3324_v59, %v3324_v59  ;;  %v1741_v3 = vmul.f32 %v3326_v61, %v3326_v61 }
 0x551   :  { %v1752_v4 = vsel %vm693_vm1, %v1741_v3, 0.0  ;;  %v1742_v6 = vmul.f32 %v3328_v54, %v3328_v54  ;;  %v1743_v8 = vmul.f32 %v3330_v0, %v3330_v0  ;;  %2001 = vmatpush1.bf16.msra.mxu1 %v2565_v19 }
 0x552   :  { %v1753_v35 = vadd.f32 %v1752_v4, %v1740_v1  ;;  %2002 = vmatprep.subr.bf16.mxu1 %v2570_v20 }
 0x553   :  { %v1756_v36 = vsel %vm693_vm1, %v1743_v8, 0.0 }
 0x554   :  { %1754 = vadd.xlane.f32.xlu0 %v1753_v35  ;;  %v1757_v9 = vadd.f32 %v1756_v36, %v1742_v6 }
 0x555   :  { %2003 = vmatpush1.bf16.msra.mxu1 %v2568_v21 }
 0x556   :  { %1758 = vadd.xlane.f32.xlu1 %v1757_v9  ;;  %2004 = vmatprep.subr.bf16.mxu1 %v2573_v22 }
 0x559   :  { %2005 = vmatpush1.bf16.msra.mxu1 %v2571_v23 }
 0x55a   :  { %2006 = vmatprep.subr.bf16.mxu1 %v2576_v56 }
 0x55d   :  { %2007 = vmatpush1.bf16.msra.mxu1 %v2574_v24 }
 0x5d9   :  { %v1747_v25 = vpop.xlane.xlu0 %1746 }
 0x5da   :  { %v1760_v48 = vmul.f32 0.0052083335, %v1747_v25 }
 0x5db   :  { %v1751_v26 = vpop.xlane.xlu1 %1750 }
 0x5dc   :  { %v1764_v27 = vadd.f32 1e-06, %v1760_v48  ;;  %v1761_v28 = vmul.f32 0.0052083335, %v1751_v26 }
 0x5de   :  { %2617 = vrsqrt.f32 %v1764_v27  ;;  %v1765_v31 = vadd.f32 1e-06, %v1761_v28 }
 0x5e0   :  { %2619 = vrsqrt.f32 %v1765_v31 }
 0x5e1   :  { %v1755_v32 = vpop.xlane.xlu0 %1754 }
 0x5e2   :  { %v1762_v33 = vmul.f32 0.0052083335, %v1755_v32 }
 0x5e3   :  { %v1759_v34 = vpop.xlane.xlu1 %1758 }
 0x5e4   :  { %v1766_v60 = vadd.f32 1e-06, %v1762_v33  ;;  %v1763_v52 = vmul.f32 0.0052083335, %v1759_v34 }
 0x5e6   :  { %2621 = vrsqrt.f32 %v1766_v60  ;;  %v1767_v2 = vadd.f32 1e-06, %v1763_v52 }
 0x5e8   :  { %v2618_v41 = vpop.eup %2617  ;;  %2623 = vrsqrt.f32 %v1767_v2 }
 0x5e9   :  { %v1772_v42 = vmul.f32 %v2618_v41, %v3306_v50  ;;  %v1773_v45 = vmul.f32 %v2618_v41, %v3308_v58 }
 0x5ea   :  { %v2620_v47 = vpop.eup %2619 }
 0x5eb   :  { %v1791_v13 = vmul.f32 %v1784_v38, %v1772_v42  ;;  %v1774_v16 = vmul.f32 %v2620_v47, %v3310_v63  ;;  %v1775_v18 = vmul.f32 %v2620_v47, %v3312_v55  ;;  %v1792_v46 = vmul.f32 %v1788_v40, %v1773_v45 }
 0x5ed   :  { %v1793_v11 = vmul.f32 %v1784_v38, %v1774_v16  ;;  %v1794_v15 = vmul.f32 %v1788_v40, %v1775_v18  ;;  %v1811_v17 = vadd.f32 %v1807_v53, %v1792_v46  ;;  %v1810_v29 = vadd.f32 %v1803_v49, %v1791_v13 }
 0x5ef   :  { %v1813_v57 = vadd.f32 %v1807_v53, %v1794_v15  ;;  %v1812_v51 = vadd.f32 %v1803_v49, %v1793_v11 }
 0x5f0   :  { %v2622_v50 = vpop.eup %2621 }
 0x5f1   :  { %v1777_v58 = vmul.f32 %v2622_v50, %v3326_v61  ;;  %v1819_v30 = vpack.c.bf16 %v1813_v57, %v1811_v17  ;;  %v1818_v62 = vpack.c.bf16 %v1812_v51, %v1810_v29  ;;  %v1776_v1 = vmul.f32 %v2622_v50, %v3324_v59  ;;  %v1846_v59 = vld [vmem:[%s3395_s16] sm:$0x3] }
 0x5f2   :  { %v2624_v3 = vpop.eup %2623 }
 0x5f3   :  { %v1779_v4 = vmul.f32 %v2624_v3, %v3330_v0  ;;  %2264 = vmatprep.mubr.msk.bf16.mxu1 %vm693_vm1, %v1819_v30  ;;  %v1796_v63 = vmul.f32 %v1788_v40, %v1777_v58  ;;  %v1778_v55 = vmul.f32 %v2624_v3, %v3328_v54  ;;  %v1795_v6 = vmul.f32 %v1784_v38, %v1776_v1 }
 0x5f4   :  { %2017 = vmatmul.mubr.bf16.vlgmr.msra.gmra.mrb[24].mxu1 %v1818_v62  ;;  %v1851_v0 = vrot.slane %v1846_v59, %v3044_v5  ;;  %v1855_v54 = vrot.slane %v1846_v59, %v3049_v7 }
 0x5f5   :  { %v1798_v8 = vmul.f32 %v1788_v40, %v1779_v4  ;;  %v1797_v35 = vmul.f32 %v1784_v38, %v1778_v55  ;;  %v1815_v36 = vadd.f32 %v1807_v53, %v1796_v63  ;;  %v1814_v10 = vadd.f32 %v1803_v49, %v1795_v6 }
 0x5f7   :  { %v1817_v9 = vadd.f32 %v1807_v53, %v1798_v8  ;;  %v1816_v61 = vadd.f32 %v1803_v49, %v1797_v35 }
 0x5f9   :  { %v1821_v44 = vpack.c.bf16 %v1817_v9, %v1815_v36  ;;  %v1820_v12 = vpack.c.bf16 %v1816_v61, %v1814_v10 }
 0x5fb   :  { %2265 = vmatprep.mubr.msk.bf16.mxu1 %vm693_vm1, %v1821_v44 }
 0x5fc   :  { %2027 = vmatmul.mubr.bf16.gmra.mrb[28].mxu1 %v1820_v12 }
 0x6c7   :  { %v2018_v14 = vpop.f32.mrb[24].mxu1 }
 0x6c8   :  { %v2019_v43 = vadd.f32 %v2018_v14, %v1851_v0  ;;  %v2020_v19 = vpop.f32.mrb[25].mxu1 }
 0x6c9   :  { %v2021_v20 = vadd.f32 %v2020_v19, %v1855_v54  ;;  %v2022_v21 = vpop.f32.mrb[26].mxu1 }
 0x6ca   :  { %v2023_v22 = vadd.f32 %v2022_v21, %v1851_v0  ;;  %v2024_v23 = vpop.f32.mrb[27].mxu1 }
 0x6cb   :  { %v2274_v56 = vpack.c.bf16 %v2021_v20, %v2019_v43  ;;  %v2025_v24 = vadd.f32 %v2024_v23, %v1855_v54 }
 0x6cd   :  { %2061 = vst [vmem:[%s3397_s18] sm:$0xff] %v2274_v56  ;;  %v2275_v25 = vpack.c.bf16 %v2025_v24, %v2023_v22 }
 0x6cf   :  { %2062 = vst [vmem:[%s3397_s18 + $0x8] sm:$0xff] %v2275_v25  ;;  %v2028_v5 = vpop.f32.mrb[28].mxu1 }
 0x6d0   :  { %v2029_v7 = vadd.f32 %v2028_v5, %v1851_v0  ;;  %v2030_v48 = vpop.f32.mrb[29].mxu1 }
 0x6d1   :  { %v2031_v26 = vadd.f32 %v2030_v48, %v1855_v54  ;;  %v2032_v27 = vpop.f32.mrb[30].mxu1 }
 0x6d2   :  { %v2033_v28 = vadd.f32 %v2032_v27, %v1851_v0  ;;  %v2034_v31 = vpop.f32.mrb[31].mxu1 }
 0x6d3   :  { %v2276_v32 = vpack.c.bf16 %v2031_v26, %v2029_v7  ;;  %v2035_v33 = vadd.f32 %v2034_v31, %v1855_v54 }
 0x6d5   :  { %2063 = vst [vmem:[%s3397_s18 + $0x10] sm:$0xff] %v2276_v32  ;;  %v2277_v34 = vpack.c.bf16 %v2035_v33, %v2033_v28 }
 0x6d7   :  { %2064 = vst [vmem:[%s3397_s18 + $0x18] sm:$0xff] %v2277_v34 }
 0x6d8   :  { %2073 = vsyncpa [#allocation3], 1 }
 0x6d9   :  { %2074 = vsyncpa [#allocation5], 1 }
 0x6da   :  { %2075 = vsyncpa [#allocation8], 1 }

// kernel: ffm_forward.7
= control target key start
LH: loop header
LB: loop body
LE: loop exit
PB: predicated region body
PF: predicated region fallthrough
CT: control target
= control target key end

     0   :  { %s1046_s0 = inlined_call_operand.vmem [shape: bf16[16,256], index: 0, kind: input, shape index: {}]   ;;  %s1047_s1 = inlined_call_operand.vmem [shape: bf16[256,192], index: 1, kind: input, shape index: {}]   ;;  %s1048_s2 = inlined_call_operand.vmem [shape: f32[1,192], index: 2, kind: input, shape index: {}]   ;;  %s1049_s3 = inlined_call_operand.vmem [shape: bf16[192,192], index: 3, kind: input, shape index: {}]   ;;  %s1050_s4 = inlined_call_operand.vmem [shape: f32[1,192], index: 4, kind: input, shape index: {}]   ;;  %s1051_s5 = inlined_call_operand.vmem [shape: f32[1,192], index: 5, kind: input, shape index: {}]   ;;  %s1052_s6 = inlined_call_operand.vmem [shape: f32[1,192], index: 6, kind: input, shape index: {}]   ;;  %s1053_s7 = inlined_call_operand.vmem [shape: f32[16,192], index: 7, kind: input, shape index: {}]   ;;  %s1054_s8 = inlined_call_operand.hbm [shape: f32[16,192], index: 8, kind: output, shape index: {}]  }
   0x1   :  { %v654_v0 = vld [vmem:[%s1047_s1 + $0x4] ss:$8 sps:$4 sm:$0xff]   ;;  %v656_v1 = vld [vmem:[%s1047_s1] ss:$8 sps:$4 sm:$0xff]   ;;  %v657_v2 = vld [vmem:[%s1047_s1 + $0x14] ss:$8 sps:$4 sm:$0xff]  }
   0x2   :  { %247 = vmatprep.subr.bf16.mxu0 %v654_v0  ;;  %v659_v3 = vld [vmem:[%s1047_s1 + $0x10] ss:$8 sps:$4 sm:$0xff]   ;;  %v660_v4 = vld [vmem:[%s1047_s1 + $0x24] ss:$8 sps:$4 sm:$0xff]   ;;  %v662_v5 = vld [vmem:[%s1047_s1 + $0x20] ss:$8 sps:$4 sm:$0xff]  }
   0x3   :  { %248 = vmatpush1.bf16.msra.mxu0 %v656_v1  ;;  %v663_v6 = vld [vmem:[%s1047_s1 + $0x34] ss:$8 sps:$4 sm:$0xff]   ;;  %v665_v7 = vld [vmem:[%s1047_s1 + $0x30] ss:$8 sps:$4 sm:$0xff]   ;;  %v666_v8 = vld [vmem:[%s1047_s1 + $0x44] ss:$8 sps:$4 sm:$0xff]  }
   0x4   :  { %249 = vmatprep.subr.bf16.mxu0 %v657_v2  ;;  %v668_v9 = vld [vmem:[%s1047_s1 + $0x40] ss:$8 sps:$4 sm:$0xff]   ;;  %v669_v10 = vld [vmem:[%s1047_s1 + $0x54] ss:$8 sps:$4 sm:$0xff]   ;;  %v671_v11 = vld [vmem:[%s1047_s1 + $0x50] ss:$8 sps:$4 sm:$0xff]  }
   0x5   :  { %v672_v12 = vld [vmem:[%s1047_s1 + $0x64] ss:$8 sps:$4 sm:$0xff]   ;;  %v674_v13 = vld [vmem:[%s1047_s1 + $0x60] ss:$8 sps:$4 sm:$0xff]   ;;  %v675_v14 = vld [vmem:[%s1047_s1 + $0x74] ss:$8 sps:$4 sm:$0xff]  }
   0x6   :  { %v704_v15 = vld [vmem:[%s1046_s0 + $0x4] ss:$8 sps:$4 sm:$0xff]   ;;  %v707_v17 = vld [vmem:[%s1049_s3] ss:$8 sps:$4 sm:$0xff]   ;;  %v708_v18 = vld [vmem:[%s1049_s3 + $0x14] ss:$8 sps:$4 sm:$0xff]  }
   0x7   :  { %250 = vmatpush1.bf16.msra.mxu0 %v659_v3  ;;  %v705_v16 = vld [vmem:[%s1049_s3 + $0x4] ss:$8 sps:$4 sm:$0xff]   ;;  %279 = vmatprep.mubr.bf16.mxu0 %v704_v15  ;;  %v710_v19 = vld [vmem:[%s1049_s3 + $0x10] ss:$8 sps:$4 sm:$0xff]   ;;  %v713_v23 = vld [vmem:[%s1049_s3 + $0x20] ss:$8 sps:$4 sm:$0xff]  }
   0x8   :  { %251 = vmatprep.subr.bf16.mxu0 %v660_v4  ;;  %452 = vmatprep.subr.bf16.mxu1 %v705_v16  ;;  %v677_v20 = vld [vmem:[%s1047_s1 + $0x70] ss:$8 sps:$4 sm:$0xff]   ;;  %v711_v21 = vld [vmem:[%s1049_s3 + $0x24] ss:$8 sps:$4 sm:$0xff]   ;;  %v680_v24 = vld [vmem:[%s1047_s1 + $0x80] ss:$8 sps:$4 sm:$0xff]  }
   0x9   :  { %453 = vmatpush1.bf16.msra.mxu1 %v707_v17  ;;  %v678_v22 = vld [vmem:[%s1047_s1 + $0x84] ss:$8 sps:$4 sm:$0xff]   ;;  %v714_v25 = vld [vmem:[%s1049_s3 + $0x34] ss:$8 sps:$4 sm:$0xff]   ;;  %v716_v27 = vld [vmem:[%s1049_s3 + $0x30] ss:$8 sps:$4 sm:$0xff]  }
   0xa   :  { %454 = vmatprep.subr.bf16.mxu1 %v708_v18  ;;  %v681_v26 = vld [vmem:[%s1047_s1 + $0x94] ss:$8 sps:$4 sm:$0xff]   ;;  %v683_v28 = vld [vmem:[%s1047_s1 + $0x90] ss:$8 sps:$4 sm:$0xff]   ;;  %v717_v29 = vld [vmem:[%s1049_s3 + $0x44] ss:$8 sps:$4 sm:$0xff]  }
   0xb   :  { %252 = vmatpush1.bf16.msra.mxu0 %v662_v5  ;;  %v684_v30 = vld [vmem:[%s1047_s1 + $0xa4] ss:$8 sps:$4 sm:$0xff]  }
   0xc   :  { %253 = vmatprep.subr.bf16.mxu0 %v663_v6 }
   0xd   :  { %455 = vmatpush1.bf16.msra.mxu1 %v710_v19 }
   0xe   :  { %456 = vmatprep.subr.bf16.mxu1 %v711_v21 }
   0xf   :  { %254 = vmatpush1.bf16.msra.mxu0 %v665_v7 }
  0x10   :  { %255 = vmatprep.subr.bf16.mxu0 %v666_v8 }
  0x11   :  { %457 = vmatpush1.bf16.msra.mxu1 %v713_v23 }
  0x12   :  { %458 = vmatprep.subr.bf16.mxu1 %v714_v25 }
  0x13   :  { %256 = vmatpush1.bf16.msra.mxu0 %v668_v9 }
  0x14   :  { %257 = vmatprep.subr.bf16.mxu0 %v669_v10 }
  0x17   :  { %258 = vmatpush1.bf16.msra.mxu0 %v671_v11 }
  0x18   :  { %259 = vmatprep.subr.bf16.mxu0 %v672_v12 }
  0x1b   :  { %260 = vmatpush1.bf16.msra.mxu0 %v674_v13 }
  0x1c   :  { %261 = vmatprep.subr.bf16.mxu0 %v675_v14 }
  0x1f   :  { %262 = vmatpush1.bf16.msra.mxu0 %v677_v20 }
  0x20   :  { %263 = vmatprep.subr.bf16.mxu0 %v678_v22 }
  0x23   :  { %264 = vmatpush1.bf16.msra.mxu0 %v680_v24 }
  0x24   :  { %265 = vmatprep.subr.bf16.mxu0 %v681_v26 }
  0x25   :  { %13 = vsyncpa [#allocation3], 0  ;;  %459 = vmatpush1.bf16.msra.mxu1 %v716_v27  ;;  %v719_v31 = vld [vmem:[%s1049_s3 + $0x40] ss:$8 sps:$4 sm:$0xff]   ;;  %v720_v33 = vld [vmem:[%s1049_s3 + $0x54] ss:$8 sps:$4 sm:$0xff]   ;;  %v67_v58 = vlaneseq }
  0x26   :  { %v686_v32 = vld [vmem:[%s1047_s1 + $0xa0] ss:$8 sps:$4 sm:$0xff]   ;;  %460 = vmatprep.subr.bf16.mxu1 %v717_v29  ;;  %v687_v34 = vld [vmem:[%s1047_s1 + $0xb4] ss:$8 sps:$4 sm:$0xff]   ;;  %v722_v35 = vld [vmem:[%s1049_s3 + $0x50] ss:$8 sps:$4 sm:$0xff]  }
  0x27   :  { %266 = vmatpush1.bf16.msra.mxu0 %v683_v28  ;;  %v689_v36 = vld [vmem:[%s1047_s1 + $0xb0] ss:$8 sps:$4 sm:$0xff]   ;;  %v723_v37 = vld [vmem:[%s1049_s3 + $0x64] ss:$8 sps:$4 sm:$0xff]   ;;  %v725_v39 = vld [vmem:[%s1049_s3 + $0x60] ss:$8 sps:$4 sm:$0xff]  }
  0x28   :  { %267 = vmatprep.subr.bf16.mxu0 %v684_v30  ;;  %v690_v38 = vld [vmem:[%s1047_s1 + $0xc4] ss:$8 sps:$4 sm:$0xff]   ;;  %v692_v40 = vld [vmem:[%s1047_s1 + $0xc0] ss:$8 sps:$4 sm:$0xff]   ;;  %v726_v41 = vld [vmem:[%s1049_s3 + $0x74] ss:$8 sps:$4 sm:$0xff]  }
  0x29   :  { %461 = vmatpush1.bf16.msra.mxu1 %v719_v31  ;;  %v693_v42 = vld [vmem:[%s1047_s1 + $0xd4] ss:$8 sps:$4 sm:$0xff]   ;;  %v728_v43 = vld [vmem:[%s1049_s3 + $0x70] ss:$8 sps:$4 sm:$0xff]   ;;  %v729_v45 = vld [vmem:[%s1049_s3 + $0x84] ss:$8 sps:$4 sm:$0xff]  }
  0x2a   :  { %462 = vmatprep.subr.bf16.mxu1 %v720_v33  ;;  %v695_v44 = vld [vmem:[%s1047_s1 + $0xd0] ss:$8 sps:$4 sm:$0xff]   ;;  %v696_v46 = vld [vmem:[%s1047_s1 + $0xe4] ss:$8 sps:$4 sm:$0xff]   ;;  %v731_v47 = vld [vmem:[%s1049_s3 + $0x80] ss:$8 sps:$4 sm:$0xff]  }
  0x2b   :  { %268 = vmatpush1.bf16.msra.mxu0 %v686_v32  ;;  %v698_v48 = vld [vmem:[%s1047_s1 + $0xe0] ss:$8 sps:$4 sm:$0xff]   ;;  %v732_v49 = vld [vmem:[%s1049_s3 + $0x94] ss:$8 sps:$4 sm:$0xff]   ;;  %v734_v51 = vld [vmem:[%s1049_s3 + $0x90] ss:$8 sps:$4 sm:$0xff]  }
  0x2c   :  { %269 = vmatprep.subr.bf16.mxu0 %v687_v34  ;;  %v699_v50 = vld [vmem:[%s1047_s1 + $0xf4] ss:$8 sps:$4 sm:$0xff]   ;;  %v701_v52 = vld [vmem:[%s1047_s1 + $0xf0] ss:$8 sps:$4 sm:$0xff]   ;;  %v702_v53 = vld [vmem:[%s1046_s0] ss:$8 sps:$4 sm:$0xff]  }
  0x2d   :  { %463 = vmatpush1.bf16.msra.mxu1 %v722_v35  ;;  %v735_v54 = vld [vmem:[%s1049_s3 + $0xa4] ss:$8 sps:$4 sm:$0xff]   ;;  %v737_v55 = vld [vmem:[%s1049_s3 + $0xa0] ss:$8 sps:$4 sm:$0xff]   ;;  %v738_v56 = vld [vmem:[%s1049_s3 + $0xb4] ss:$8 sps:$4 sm:$0xff]  }
  0x2e   :  { %464 = vmatprep.subr.bf16.mxu1 %v723_v37  ;;  %v740_v57 = vld [vmem:[%s1049_s3 + $0xb0] ss:$8 sps:$4 sm:$0xff]   ;;  %v68_v59 = vshrl.u32 %v67_v58, 7  ;;  %v65_v61 = vld [vmem:[%s1048_s2] sm:$0x3]  ;;  %vm448_vm0 = vcmask 523264  }
  0x2f   :  { %270 = vmatpush1.bf16.msra.mxu0 %v689_v36  ;;  %v316_v11 = vld [vmem:[%s1050_s4] sm:$0x3]  ;;  %v496_v17 = vld [vmem:[%s1053_s7 + $0x8] sm:$0xff]  ;;  %v498_v22 = vld [vmem:[%s1053_s7 + $0x18] sm:$0xff] }
  0x30   :  { %271 = vmatprep.subr.bf16.mxu0 %v690_v38  ;;  %v991_v60 = vsub.s32 0, %v68_v59  ;;  %v996_v62 = vsub.s32 1, %v68_v59  ;;  %v495_v20 = vld [vmem:[%s1053_s7] sm:$0xff]  ;;  %v497_v27 = vld [vmem:[%s1053_s7 + $0x10] sm:$0xff] }
  0x31   :  { %465 = vmatpush1.bf16.msra.mxu1 %v725_v39 }
  0x32   :  { %466 = vmatprep.subr.bf16.mxu1 %v726_v41  ;;  %v70_v63 = vrot.slane %v65_v61, %v991_v60  ;;  %v74_v1 = vrot.slane %v65_v61, %v996_v62  ;;  %v321_v12 = vrot.slane %v316_v11, %v991_v60  ;;  %v325_v13 = vrot.slane %v316_v11, %v996_v62 }
  0x33   :  { %272 = vmatpush1.bf16.msra.mxu0 %v692_v40 }
  0x34   :  { %273 = vmatprep.subr.bf16.mxu0 %v693_v42 }
  0x35   :  { %467 = vmatpush1.bf16.msra.mxu1 %v728_v43 }
  0x36   :  { %468 = vmatprep.subr.bf16.mxu1 %v729_v45 }
  0x37   :  { %274 = vmatpush1.bf16.msra.mxu0 %v695_v44 }
  0x38   :  { %275 = vmatprep.subr.bf16.mxu0 %v696_v46 }
  0x39   :  { %469 = vmatpush1.bf16.msra.mxu1 %v731_v47 }
  0x3a   :  { %470 = vmatprep.subr.bf16.mxu1 %v732_v49 }
  0x3b   :  { %276 = vmatpush1.bf16.msra.mxu0 %v698_v48 }
  0x3c   :  { %277 = vmatprep.subr.bf16.mxu0 %v699_v50 }
  0x3d   :  { %471 = vmatpush1.bf16.msra.mxu1 %v734_v51 }
  0x3e   :  { %472 = vmatprep.subr.bf16.mxu1 %v735_v54 }
  0x3f   :  { %278 = vmatpush1.bf16.msra.mxu0 %v701_v52 }
  0x41   :  { %473 = vmatpush1.bf16.msra.mxu1 %v737_v55 }
  0x42   :  { %280 = vmatmul.mubr.bf16.vlgmr.msra.gmra.mrb[0].mxu0 %v702_v53  ;;  %474 = vmatprep.subr.bf16.mxu1 %v738_v56  ;;  %v503_v56 = vld [vmem:[%s1051_s5] sm:$0x3]  ;;  %s769_s5 = smov [#allocation2]  }
  0x43   :  { %v546_v58 = vrot.slane %v503_v56, %v991_v60  ;;  %v550_v59 = vrot.slane %v503_v56, %v996_v62 }
  0x45   :  { %475 = vmatpush1.bf16.msra.mxu1 %v740_v57  ;;  %v504_v57 = vld [vmem:[%s1052_s6] sm:$0x3]  ;;  %s581_s6 = sshll.u32 %s769_s5, 4  ;;  %s582_s6 = int_to_ptr.vmem [resolvable:$true] %s581_s6 }
  0x46   :  { %s745_s21 = scalar_lea.vmem %s582_s6, 512  ;;  %p750_p1 = scmp.lt.s32.totalorder %s582_s6, %s582_s6 }
  0x47   :  { %p746_p0 = scmp.ne.s32.totalorder %s582_s6, %s745_s21  ;;  %p751_p2 = scmp.lt.s32.totalorder %s745_s21, %s745_s21 }
  0x49   :  { %p752_p3 = por %p751_p2, %p750_p1 }
  0x4b   :  { %p753_p4 = pnand %p752_p3, %p746_p0 }
 0x115   :  { %v281_v0 = vpop.f32.mrb[0].mxu0 }
 0x116   :  { %v283_v2 = vpop.f32.mrb[1].mxu0  ;;  %v282_v4 = vadd.f32 %v281_v0, %v70_v63 }
 0x117   :  { %v285_v3 = vpop.f32.mrb[2].mxu0  ;;  %v284_v7 = vadd.f32 %v283_v2, %v74_v1  ;;  %v561_v2 = vrot.slane %v504_v57, %v991_v60 }
 0x118   :  { %v286_v5 = vadd.f32 %v285_v3, %v70_v63  ;;  %v287_v6 = vpop.f32.mrb[3].mxu0  ;;  %v565_v63 = vrot.slane %v504_v57, %v996_v62 }
 0x119   :  { %v288_v8 = vadd.f32 %v287_v6, %v74_v1 }
 0x11a   :  { %v290_v9 = vpack.c.bf16 %v286_v5, %v282_v4 }
 0x11b   :  { %v291_v10 = vpack.c.bf16 %v288_v8, %v284_v7 }
 0x11d   :  { %650 = vmatprep.mubr.msk.bf16.mxu1 %vm448_vm0, %v291_v10 }
 0x11e   :  { %485 = vmatmul.mubr.bf16.vlgmr.msra.gmra.mrb[0].mxu1 %v290_v9 }
 0x1f1   :  { %v486_v14 = vpop.f32.mrb[0].mxu1 }
 0x1f2   :  { %v487_v15 = vadd.f32 %v486_v14, %v321_v12  ;;  %v488_v16 = vpop.f32.mrb[1].mxu1 }
 0x1f3   :  { %v489_v18 = vadd.f32 %v488_v16, %v325_v13  ;;  %v490_v19 = vpop.f32.mrb[2].mxu1 }
 0x1f4   :  { %v492_v21 = vpop.f32.mrb[3].mxu1  ;;  %v491_v25 = vadd.f32 %v490_v19, %v321_v12  ;;  %v499_v26 = vadd.f32 %v495_v20, %v487_v15 }
 0x1f5   :  { %v500_v23 = vadd.f32 %v496_v17, %v489_v18  ;;  %v493_v24 = vadd.f32 %v492_v21, %v325_v13 }
 0x1f6   :  { %v501_v32 = vadd.f32 %v497_v27, %v491_v25 }
 0x1f7   :  { %v502_v28 = vadd.f32 %v498_v22, %v493_v24  ;;  %v505_v29 = vsel %vm448_vm0, %v500_v23, 0.0 }
 0x1f8   :  { %v506_v30 = vadd.f32 %v505_v29, %v499_v26 }
 0x1f9   :  { %v509_v31 = vsel %vm448_vm0, %v502_v28, 0.0 }
 0x1fa   :  { %507 = vadd.xlane.f32.xlu0 %v506_v30  ;;  %v510_v33 = vadd.f32 %v509_v31, %v501_v32 }
 0x1fe   :  { %511 = vadd.xlane.f32.xlu0 %v510_v33 }
 0x287   :  { %v508_v34 = vpop.xlane.xlu0 %507 }
 0x288   :  { %v514_v35 = vmul.f32 0.0052083335, %v508_v34 }
 0x28a   :  { %v516_v36 = vsub.f32 %v499_v26, %v514_v35  ;;  %v517_v37 = vsub.f32 %v500_v23, %v514_v35 }
 0x28b   :  { %v512_v38 = vpop.xlane.xlu0 %511 }
 0x28c   :  { %v515_v39 = vmul.f32 0.0052083335, %v512_v38  ;;  %v520_v40 = vmul.f32 %v516_v36, %v516_v36  ;;  %v521_v41 = vmul.f32 %v517_v37, %v517_v37 }
 0x28e   :  { %v518_v42 = vsub.f32 %v501_v32, %v515_v39  ;;  %v519_v43 = vsub.f32 %v502_v28, %v515_v39  ;;  %v524_v44 = vsel %vm448_vm0, %v521_v41, 0.0 }
 0x28f   :  { %v525_v45 = vadd.f32 %v524_v44, %v520_v40 }
 0x290   :  { %v523_v46 = vmul.f32 %v519_v43, %v519_v43  ;;  %v522_v47 = vmul.f32 %v518_v42, %v518_v42 }
 0x291   :  { %526 = vadd.xlane.f32.xlu1 %v525_v45 }
 0x292   :  { %v528_v48 = vsel %vm448_vm0, %v523_v46, 0.0 }
 0x293   :  { %v529_v49 = vadd.f32 %v528_v48, %v522_v47 }
 0x295   :  { %530 = vadd.xlane.f32.xlu1 %v529_v49 }
 0x31e   :  { %v527_v50 = vpop.xlane.xlu1 %526 }
 0x31f   :  { %v532_v51 = vmul.f32 0.0052083335, %v527_v50 }
 0x321   :  { %v534_v52 = vadd.f32 1e-06, %v532_v51 }
 0x322   :  { %v531_v53 = vpop.xlane.xlu1 %530 }
 0x323   :  { %741 = vrsqrt.f32 %v534_v52  ;;  %v533_v54 = vmul.f32 0.0052083335, %v531_v53 }
 0x325   :  { %v535_v55 = vadd.f32 1e-06, %v533_v54 }
 0x327   :  { %743 = vrsqrt.f32 %v535_v55 }
 0x32d   :  { %v742_v61 = vpop.eup %741 }
 0x32e   :  { %v538_v0 = vmul.f32 %v742_v61, %v516_v36  ;;  %v539_v1 = vmul.f32 %v742_v61, %v517_v37 }
 0x330   :  { %v553_v3 = vmul.f32 %v546_v58, %v538_v0  ;;  %v554_v4 = vmul.f32 %v550_v59, %v539_v1 }
 0x331   :  { %v744_v5 = vpop.eup %743 }
 0x332   :  { %v569_v6 = vadd.f32 %v565_v63, %v554_v4  ;;  %v540_v7 = vmul.f32 %v744_v5, %v518_v42  ;;  %v541_v8 = vmul.f32 %v744_v5, %v519_v43  ;;  %v568_v9 = vadd.f32 %v561_v2, %v553_v3 }
 0x334   :  { %573 = vst.msk [vmem:[#allocation2 + $0x8] sm:$0xff] %vm448_vm0, %v569_v6  ;;  %v555_v10 = vmul.f32 %v546_v58, %v540_v7  ;;  %v556_v11 = vmul.f32 %v550_v59, %v541_v8  ;;  %572 = vst [vmem:[#allocation2] sm:$0xff] %v568_v9 }
 0x336   :  { %v570_v62 = vadd.f32 %v561_v2, %v555_v10  ;;  %v571_v12 = vadd.f32 %v565_v63, %v556_v11 }
 0x338   :  { %574 = vst [vmem:[#allocation2 + $0x10] sm:$0xff] %v570_v62  ;;  %575 = vst.msk [vmem:[#allocation2 + $0x18] sm:$0xff] %vm448_vm0, %v571_v12 }
 0x339   :  { %756 = shalt.err (!%p753_p4)
}
 0x33a   :  { %s757_s24 = scalar_lea.hbm %s1054_s8, 512 }
 0x33b   :  { %p758_p5 = scmp.ne.s32.totalorder %s1054_s8, %s757_s24  ;;  %p761_p6 = scmp.lt.u32.totalorder %s757_s24, %s1054_s8 }
 0x33d   :  { %p763_p7 = pnand %p761_p6, %p758_p5 }
 0x33f   :  { %766 = shalt.err (!%p763_p7)
}
 0x340   :  { %s770_s1 = smov 256   ;;  %s771_s29 = smov 16  }
 0x341   :  { %587 = dma.vmem_to_hbm [thread:$0]  %s582_s6, 512, %s1054_s8, [#allocation3], %s770_s1, %s770_s1, %s771_s29  }
 0x342   :  { %767 = dma.done.wait [#allocation3], 512  }
 0x343   :  { %768 = vsyncadd [#allocation3], 4294966784 }
 0x344   :  { %591 = vsyncpa [#allocation3], 1 }

</bundles_post_ra>
